<compile_context>
chip_gen: v5e
topology: v5e:2x2
jax: 0.10.0
libtpu: 0.0.40
codegen_flags: <defaults>
</compile_context>

<pallas_src>
from typing import List

import jax
import jax.numpy as jnp
from jax import lax
from jax.experimental import pallas as pl
from jax.experimental.pallas import tpu as pltpu


# ----------------------------------------------------------------------------
# Pallas kernel: fused (conv_d + conv_f + mlp) pointwise MLP, spatial pool over
# K neighbors, temporal pool over the temporal kernel window.
# Grid: (T_out, P // TP, TK); TK is the reduction ("arbitrary") axis.
# Output block (Cout, TP) is resident across TK and accumulated in place.
# ----------------------------------------------------------------------------
_FMA_UNROLL_LIMIT = 256   # use unrolled VPU FMAs when cin*cout <= this


def _make_p4d_kernel(kinds, operator, spatial_pooling, temporal_pooling,
                     act0, mlp_acts, tk_count):
    n_layers = len(kinds)

    def _linear(x, w_ref, b_ref, kind):
        # x: (Cin, K, TP) f32 value -> (Cout, K, TP) f32 value.
        cin, kb, tp = x.shape
        if kind == "fma":
            # Scalar weights live in SMEM; lane axis (TP) is dense -> pure VPU work.
            cout = w_ref.shape[1]
            xs = [x[c] for c in range(cin)]          # hoisted (K, TP) slabs
            rows = []
            for o in range(cout):
                r = xs[0] * w_ref[0, o]
                for c in range(1, cin):
                    r = r + xs[c] * w_ref[c, o]
                rows.append(r + b_ref[o])
            return jnp.stack(rows, axis=0)
        # MXU path for wide layers: w_ref is (Cout, Cin) bf16, b_ref is (Cout, 1) f32.
        cout = w_ref.shape[0]
        x2 = x.reshape(cin, kb * tp).astype(w_ref.dtype)
        y2 = jnp.dot(w_ref[...], x2, preferred_element_type=jnp.float32)
        y2 = y2 + b_ref[...]
        return y2.reshape(cout, kb, tp)

    def kernel(disp_ref, feat_ref, *rest):
        wrefs = rest[:2 * n_layers]
        out_ref = rest[2 * n_layers]                 # (Cout, TP) f32, resident over tk

        tk = pl.program_id(2)

        @pl.when(tk == 0)
        def _init():
            if temporal_pooling == "max":
                out_ref[...] = jnp.full(out_ref.shape, -jnp.inf, out_ref.dtype)
            else:
                out_ref[...] = jnp.zeros(out_ref.shape, out_ref.dtype)

        d = disp_ref[...].astype(jnp.float32)        # (4,   K, TP)
        f = feat_ref[...].astype(jnp.float32)        # (Cin, K, TP)

        hd = _linear(d, wrefs[0], wrefs[1], kinds[0])
        hf = _linear(f, wrefs[2], wrefs[3], kinds[1])
        if act0:
            hd = jnp.maximum(hd, 0.0)
            hf = jnp.maximum(hf, 0.0)
        h = hd + hf if operator == "+" else hd * hf  # (C0, K, TP) f32

        for j in range(2, n_layers):
            h = _linear(h, wrefs[2 * j], wrefs[2 * j + 1], kinds[j])
            if mlp_acts[j - 2]:
                h = jnp.maximum(h, 0.0)

        # Spatial pool over K (sits on the sublane axis -> cheap reduce).
        kb = h.shape[1]
        if spatial_pooling == "max":
            pooled = jnp.max(h, axis=1)
        elif spatial_pooling == "sum":
            pooled = jnp.sum(h, axis=1)
        else:
            pooled = jnp.sum(h, axis=1) * (1.0 / float(kb))

        # pooled is (Cout, TP): lane-dense, already in output layout (no transpose).
        if temporal_pooling == "max":
            out_ref[...] = jnp.maximum(out_ref[...], pooled)
        else:
            out_ref[...] = out_ref[...] + pooled

        if temporal_pooling == "mean":
            @pl.when(tk == pl.num_programs(2) - 1)
            def _finalize():
                out_ref[...] = out_ref[...] * (1.0 / float(tk_count))

    return kernel


# ----------------------------------------------------------------------------
# Tile selection under a per-generation VMEM budget.
# ----------------------------------------------------------------------------
def _pad_up(n, m):
    return -(-n // m) * m


def _vmem_estimate(tp, K, cin, layer_couts):
    """Rough VMEM bytes for one grid step (double-buffered blocks + live f32)."""
    lanes = _pad_up(tp, 128)
    kp_bf16 = _pad_up(K, 16)
    kp_f32 = _pad_up(K, 8)
    b = 0
    b += 2 * 4 * kp_bf16 * lanes * 2                     # disp block (double buffered)
    b += 2 * cin * kp_bf16 * lanes * 2                   # feat block (double buffered)
    b += 2 * _pad_up(layer_couts[-1], 8) * lanes * 4     # output block
    # Live f32 intermediates: max over consecutive layer pairs (not the sum).
    c0 = layer_couts[0]
    live = (_pad_up(4, 8) + _pad_up(cin, 8) + 2 * _pad_up(c0, 8)) * kp_f32 * lanes * 4
    prev = c0
    for c in layer_couts[1:]:
        live = max(live, (_pad_up(prev, 8) + _pad_up(c, 8)) * kp_f32 * lanes * 4)
        prev = c
    return b + live + (1 << 20)                          # weights / SMEM / slack


def _vmem_budget_and_limit():
    cap = None
    try:
        cap = getattr(pltpu.get_tpu_info(), "vmem_capacity_bytes", None)
    except Exception:
        cap = None
    if not cap:
        cap = 64 << 20                      # conservative (v7x-sized) default
    if cap >= (96 << 20):                   # v5e / v6e: 128 MiB physical VMEM
        return 64 << 20, 100 << 20
    return 28 << 20, 48 << 20               # v7x: 64 MiB per TensorCore


def _pick_tile_p(P, K, cin, layer_couts, T_out, tile_p_max, budget):
    # Valid TP: divides P and (TP == P or TP % 128 == 0) so all blocks are
    # lane-aligned (or full-extent).
    cands = [d for d in range(min(tile_p_max, P), 0, -1)
             if P % d == 0 and (d == P or d % 128 == 0)]
    if not cands:
        return P
    fits = [d for d in cands if _vmem_estimate(d, K, cin, layer_couts) <= budget]
    pool = fits if fits else [cands[-1]]
    # Megacore (v7x): prefer an even, >=2 parallel grid extent; free on 1-TC parts.
    for d in pool:
        n_par = T_out * (P // d)
        if n_par >= 2 and n_par % 2 == 0:
            return d
    return pool[0]


# ----------------------------------------------------------------------------
# Host-side layer packing: BN already folded; fold activation-free MLP pairs and
# pick the FMA (SMEM scalar weights) vs. MXU (VMEM bf16 weights) path per layer.
# ----------------------------------------------------------------------------
def _fold_mlp(mlp_wb, mlp_acts):
    out = []
    i, n = 0, len(mlp_wb)
    while i < n:
        w, b = mlp_wb[i]
        act = mlp_acts[i]
        while (not act) and (i + 1 < n):
            w2, b2 = mlp_wb[i + 1]
            w = w @ w2
            b = b @ w2 + b2
            act = mlp_acts[i + 1]
            i += 1
        out.append((w, b, act))
        i += 1
    return out


def _pack_layer(w, b):
    """w: (Cin, Cout) f32, b: (Cout,) f32 -> kernel-ready layer descriptor."""
    cin, cout = w.shape
    if cin * cout <= _FMA_UNROLL_LIMIT:
        return dict(kind="fma", cout=cout,
                    w=jnp.asarray(w, jnp.float32),
                    b=jnp.asarray(b, jnp.float32).reshape(cout))
    return dict(kind="mxu", cout=cout,
                w=jnp.asarray(w.T, jnp.bfloat16),
                b=jnp.asarray(b, jnp.float32).reshape(cout, 1))


def p4dconv_pallas(disp_cm, feat_cm, layers, *, operator="+",
                   spatial_pooling="max", temporal_pooling="sum",
                   act0=True, mlp_acts=(), tile_p=2048):
    """disp_cm: (T_out, TK, 4, K, P) bf16, feat_cm: (T_out, TK, Cin, K, P) bf16.
       Returns (T_out, Cout, P) f32 (lane-dense point axis last)."""
    T_out, TK, _, K, P = disp_cm.shape
    cin = feat_cm.shape[2]
    cout = layers[-1]["cout"]
    kinds = [l["kind"] for l in layers]
    layer_couts = [layers[0]["cout"]] + [l["cout"] for l in layers[2:]]

    budget, vmem_limit = _vmem_budget_and_limit()
    TP = _pick_tile_p(P, K, cin, layer_couts, T_out, tile_p, budget)
    assert P % TP == 0, "internal: TP must divide P"

    kernel = _make_p4d_kernel(kinds, operator, spatial_pooling, temporal_pooling,
                              act0, list(mlp_acts), TK)

    in_specs = [
        pl.BlockSpec((None, None, 4, K, TP), lambda to, pi, tk: (to, tk, 0, 0, pi)),
        pl.BlockSpec((None, None, cin, K, TP), lambda to, pi, tk: (to, tk, 0, 0, pi)),
    ]
    flat_args = [disp_cm.astype(jnp.bfloat16), feat_cm.astype(jnp.bfloat16)]
    for lay in layers:
        w, b = lay["w"], lay["b"]
        if lay["kind"] == "fma":
            in_specs.append(pl.BlockSpec(memory_space=pltpu.MemorySpace.SMEM))
            in_specs.append(pl.BlockSpec(memory_space=pltpu.MemorySpace.SMEM))
        else:
            in_specs.append(pl.BlockSpec(w.shape, lambda to, pi, tk: (0, 0)))
            in_specs.append(pl.BlockSpec(b.shape, lambda to, pi, tk: (0, 0)))
        flat_args += [w, b]

    # Lane-dense output (T_out, Cout, P), block (Cout, TP); index_map ignores tk
    # so the block stays resident across the temporal reduction (accumulator).
    out_spec = pl.BlockSpec((None, cout, TP), lambda to, pi, tk: (to, 0, pi))

    grid = (T_out, P // TP, TK)
    # TODO(synk): sweep pl.Buffered(3) on the two streaming inputs for 128 MiB
    # VMEM parts (v5e/v6e) once pipeline_mode coverage is confirmed on target.
    out = pl.pallas_call(
        kernel,
        out_shape=jax.ShapeDtypeStruct((T_out, cout, P), jnp.float32),
        grid_spec=pltpu.PrefetchScalarGridSpec(
            num_scalar_prefetch=0,
            grid=grid,
            in_specs=in_specs,
            out_specs=out_spec,
        ),
        compiler_params=pltpu.CompilerParams(
            dimension_semantics=("parallel", "parallel", "arbitrary"),
            vmem_limit_bytes=vmem_limit),
    )(*flat_args)
    return out                                # (T_out, Cout, P)


# ----------------------------------------------------------------------------
# Plain-JAX glue: FPS / ball query / grouping (data-dependent gathers).
# TODO(synk): these irregular gathers stay outside the Pallas kernel; a
#   manual-DMA gather kernel is possible but not needed for correctness.
# ----------------------------------------------------------------------------
def furthest_point_sample(xyz, m):
    """xyz: (B, N, 3) -> (B, m) int32. Deterministic (starts at index 0)."""
    B, N, _ = xyz.shape

    def body(i, state):
        idxs, dists, last = state
        last_pt = jnp.take_along_axis(xyz, last[:, None, None], axis=1)   # (B,1,3)
        d = jnp.sum((xyz - last_pt) ** 2, axis=-1)                        # (B,N)
        dists = jnp.minimum(dists, d)
        last = jnp.argmax(dists, axis=-1).astype(jnp.int32)
        idxs = idxs.at[:, i].set(last)
        return idxs, dists, last

    init = (jnp.zeros((B, m), jnp.int32),
            jnp.full((B, N), 1e10, jnp.float32),
            jnp.zeros((B,), jnp.int32))
    idxs, _, _ = lax.fori_loop(1, m, body, init)
    return idxs


def ball_query(radius, k, neighbor_xyz, anchor_xyz):
    """neighbor: (..., N, 3), anchor: (..., M, 3) -> (..., M, k) int32
       (pointnet2 semantics: first k in-radius indices, padded with the first)."""
    N = neighbor_xyz.shape[-2]
    d2 = jnp.sum((anchor_xyz[..., :, None, :] - neighbor_xyz[..., None, :, :]) ** 2,
                 axis=-1)                                        # (..., M, N)
    within = d2 < radius * radius
    cand = jnp.where(within, jnp.arange(N, dtype=jnp.int32), N)
    neg_topk, _ = lax.top_k(-cand, k)                            # k smallest, ascending
    idx = -neg_topk
    first = idx[..., :1]
    idx = jnp.where(idx >= N, first, idx)                        # pad with first valid
    idx = jnp.where(idx >= N, 0, idx)                            # no valid neighbor -> 0
    return idx.astype(jnp.int32)


def group_points(points, idx):
    """points: (..., N, C), idx: (..., M, K) -> (..., M, K, C)."""
    lead = idx.shape[:-2]
    M, K = idx.shape[-2:]
    C = points.shape[-1]
    flat = idx.reshape(lead + (M * K, 1))
    g = jnp.take_along_axis(points, flat, axis=-2)
    return g.reshape(lead + (M, K, C))


# ----------------------------------------------------------------------------
# Parameter construction (deterministic, synthetic). BN (eval mode, default
# stats) folded into the 1x1 conv weights: y = x @ (W*scale) + shift.
# ----------------------------------------------------------------------------
def init_params(key, in_planes: int, mlp_planes: List[int], mlp_bn: List[bool],
                bn_eps: float = 1e-5):
    n_layers = 2 + max(0, len(mlp_planes) - 1)
    keys = jax.random.split(key, n_layers)

    def make(k, cin, cout, use_bn):
        w = jax.random.normal(k, (cin, cout), jnp.float32) * 0.1
        if use_bn:
            gamma = jnp.ones((cout,), jnp.float32)
            beta = jnp.zeros((cout,), jnp.float32)
            mean = jnp.zeros((cout,), jnp.float32)
            var = jnp.ones((cout,), jnp.float32)
            scale = gamma / jnp.sqrt(var + bn_eps)
            w = w * scale[None, :]
            b = beta - mean * scale
        else:
            b = jnp.zeros((cout,), jnp.float32)
        return w, b

    wd, bd = make(keys[0], 4, mlp_planes[0], mlp_bn[0])
    wf, bf = make(keys[1], in_planes, mlp_planes[0], mlp_bn[0])
    mlp_wb = []
    for i in range(1, len(mlp_planes)):
        w, b = make(keys[1 + i], mlp_planes[i - 1], mlp_planes[i], mlp_bn[i])
        mlp_wb.append((w, b))
    return wd, bd, wf, bf, mlp_wb


# ----------------------------------------------------------------------------
# Full forward (matches PyTorch P4DConv.forward semantics).
# ----------------------------------------------------------------------------
def p4dconv_forward(xyzs, features, params, cfg):
    """xyzs: (B, T, N, 3), features: (B, T, C, N)
       returns new_xyzs: (B, T_out, M, 3), new_features: (B, T_out, Cout, M)."""
    wd, bd, wf, bf, mlp_wb = params
    B, T, N, _ = xyzs.shape
    r, K = cfg["spatial_kernel_size"]
    M = N // cfg["spatial_stride"]
    tks = cfg["temporal_kernel_size"]
    tstride = cfg["temporal_stride"]
    pad = cfg["temporal_padding"]
    pad_mode = cfg["temporal_padding_mode"]
    assert tks % 2 == 1, "P4DConv: Temporal kernel size should be odd!"
    assert (T + sum(pad) - tks) % tstride == 0, "P4DConv: Temporal length error!"
    assert features is not None and cfg["in_planes"] > 0
    # TODO(synk): the in_planes == 0 variant of the PyTorch module (conv_d only)
    # is not implemented here.

    cin = features.shape[2]
    feats_tn = jnp.transpose(features, (0, 1, 3, 2))  # (B, T, N, C)

    if pad_mode == "zeros":
        # TODO(synk): zero-padded frames fall back to neighbor index 0 in ball
        # query; verify against the CUDA ball-query fallback before relying on it.
        xyzs_p = jnp.pad(xyzs, ((0, 0), (pad[0], pad[1]), (0, 0), (0, 0)))
        feats_p = jnp.pad(feats_tn, ((0, 0), (pad[0], pad[1]), (0, 0), (0, 0)))
    else:  # replicate
        order = jnp.array([0] * pad[0] + list(range(T)) + [T - 1] * pad[1])
        xyzs_p = xyzs[:, order]
        feats_p = feats_tn[:, order]

    T_pad = T + pad[0] + pad[1]
    half = tks // 2
    T_out = (T_pad - tks) // tstride + 1

    anchor_t = jnp.arange(T_out) * tstride + half                     # (T_out,)
    anchor_frames = xyzs_p[:, anchor_t]                               # (B, T_out, N, 3)

    anchor_idx = furthest_point_sample(
        anchor_frames.reshape(B * T_out, N, 3), M).reshape(B, T_out, M)
    anchor_xyz = jnp.take_along_axis(anchor_frames, anchor_idx[..., None], axis=2)

    rel = jnp.arange(tks) - half                                      # (TK,)
    win_t = anchor_t[:, None] + rel[None, :]                          # (T_out, TK)
    neigh_xyz = xyzs_p[:, win_t]                                      # (B,T_out,TK,N,3)
    neigh_feat = feats_p[:, win_t]                                    # (B,T_out,TK,N,Cin)

    idx = ball_query(r, K, neigh_xyz, anchor_xyz[:, :, None, :, :])   # (B,T_out,TK,M,K)
    gx = group_points(neigh_xyz, idx)                                 # (B,T_out,TK,M,K,3)
    gf = group_points(neigh_feat, idx)                                # (B,T_out,TK,M,K,Cin)

    dx = gx - anchor_xyz[:, :, None, :, None, :]
    td = jnp.broadcast_to(rel.astype(jnp.float32)[None, None, :, None, None, None],
                          (B, T_out, tks, M, K, 1))
    disp = jnp.concatenate([dx, td], axis=-1)                         # (B,T_out,TK,M,K,4)

    # Kernel layout: (T_out, TK, C, K, P) with P = B*M (lane-dense point axis).
    # The bf16 cast happens here so the only HBM materialization is kernel-ready
    # (no separate cast/reshape pass before the pallas_call).
    def to_kernel_layout(x):
        c = x.shape[-1]
        x = jnp.transpose(x, (1, 2, 5, 4, 0, 3))                      # (T_out,TK,C,K,B,M)
        return x.reshape(T_out, tks, c, K, B * M).astype(jnp.bfloat16)

    disp_cm = to_kernel_layout(disp)
    feat_cm = to_kernel_layout(gf)

    mlp_folded = _fold_mlp(mlp_wb, list(cfg["mlp_activation"][1:]))
    layers = [_pack_layer(wd, bd), _pack_layer(wf, bf)] + \
             [_pack_layer(w, b) for (w, b, _) in mlp_folded]
    mlp_acts_folded = [a for (_, _, a) in mlp_folded]

    out = p4dconv_pallas(
        disp_cm, feat_cm, layers,
        operator=cfg["operator"],
        spatial_pooling=cfg["spatial_pooling"],
        temporal_pooling=cfg["temporal_pooling"],
        act0=cfg["mlp_activation"][0],
        mlp_acts=mlp_acts_folded,
    )                                                                  # (T_out, Cout, P)

    cout = out.shape[1]
    new_features = jnp.transpose(out.reshape(T_out, cout, B, M), (2, 0, 1, 3))
    new_xyzs = anchor_xyz                                              # (B, T_out, M, 3)
    return new_xyzs, new_features, (disp_cm, feat_cm)


def _reference(disp_cm, feat_cm, params, cfg):
    """Pure-JAX reference of the fused hot path (mirrors the bf16 input casts)."""
    wd, bd, wf, bf, mlp_wb = params
    d = disp_cm.astype(jnp.float32)     # (T_out, TK, 4,   K, P)
    f = feat_cm.astype(jnp.float32)     # (T_out, TK, Cin, K, P)

    def lin(x, w, b):
        return jnp.einsum("atckp,co->atokp", x, w) + b.reshape(1, 1, -1, 1, 1)

    hd = lin(d, wd, bd)
    hf = lin(f, wf, bf)
    if cfg["mlp_activation"][0]:
        hd, hf = jnp.maximum(hd, 0.0), jnp.maximum(hf, 0.0)
    h = hd + hf if cfg["operator"] == "+" else hd * hf
    for (w, b), act in zip(mlp_wb, cfg["mlp_activation"][1:]):
        h = lin(h, w, b)
        if act:
            h = jnp.maximum(h, 0.0)

    sp = cfg["spatial_pooling"]
    h = jnp.max(h, axis=3) if sp == "max" else (
        jnp.sum(h, axis=3) if sp == "sum" else jnp.mean(h, axis=3))
    tp = cfg["temporal_pooling"]
    h = jnp.max(h, axis=1) if tp == "max" else (
        jnp.sum(h, axis=1) if tp == "sum" else jnp.mean(h, axis=1))
    return h                             # (T_out, Cout, P)


if __name__ == "__main__":
    cfg = dict(
        in_planes=4,
        mlp_planes=[8, 16],
        mlp_batch_norm=[True, True],
        mlp_activation=[True, True],
        spatial_kernel_size=(0.6, 8),    # (radius r, k neighbors)
        spatial_stride=2,
        temporal_kernel_size=3,
        temporal_stride=1,
        temporal_padding=[1, 1],
        temporal_padding_mode="replicate",
        operator="+",
        spatial_pooling="max",
        temporal_pooling="sum",
    )

    key = jax.random.PRNGKey(0)
    kx, kf, kp = jax.random.split(key, 3)
    B, T, N, C = 2, 4, 16, cfg["in_planes"]
    xyzs = jax.random.uniform(kx, (B, T, N, 3), jnp.float32)        # (B,T,N,3)
    features = jax.random.normal(kf, (B, T, C, N), jnp.float32)     # (B,T,C,N)

    params = init_params(kp, cfg["in_planes"], cfg["mlp_planes"], cfg["mlp_batch_norm"])

    new_xyzs, new_features, (disp_cm, feat_cm) = p4dconv_forward(xyzs, features, params, cfg)
    jax.block_until_ready((new_xyzs, new_features))

    # Sanity check against a pure-JAX reference of the fused hot path.
    ref = _reference(disp_cm, feat_cm, params, cfg)                  # (T_out, Cout, P)
    T_out, Cout, P = ref.shape
    got = jnp.transpose(new_features, (1, 2, 0, 3)).reshape(T_out, Cout, P)

    M = N // cfg["spatial_stride"]
    assert new_xyzs.shape == (B, T_out, M, 3)
    assert new_features.shape == (B, T_out, cfg["mlp_planes"][-1], M)
    assert jnp.allclose(got, ref, rtol=1e-2, atol=1e-2), \
        float(jnp.max(jnp.abs(got - ref)))
    # TODO(synk): bf16 input streaming is only validated against a bf16-mirrored
    # reference; validate against the f32 PyTorch P4DConv for accuracy drift.

    print("KERNEL_OK")
</pallas_src>

<mosaic_0001>
module attributes {stable_mosaic.version = 11 : i64} {
  func.func @kernel(%arg0: i32, %arg1: i32, %arg2: i32, %arg3: memref<1x1x4x8x16xbf16, #tpu.memory_space<vmem>>, %arg4: memref<1x1x4x8x16xbf16, #tpu.memory_space<vmem>>, %arg5: memref<4x8xf32, #tpu.memory_space<smem>>, %arg6: memref<8xf32, #tpu.memory_space<smem>>, %arg7: memref<4x8xf32, #tpu.memory_space<smem>>, %arg8: memref<8xf32, #tpu.memory_space<smem>>, %arg9: memref<8x16xf32, #tpu.memory_space<smem>>, %arg10: memref<16xf32, #tpu.memory_space<smem>>, %arg11: memref<1x16x16xf32, #tpu.memory_space<vmem>>) attributes {dimension_semantics = [#tpu.dimension_semantics<parallel>, #tpu.dimension_semantics<parallel>, #tpu.dimension_semantics<arbitrary>], iteration_bounds = array<i64: 4, 1, 3>, scalar_prefetch = 0 : i64, scratch_operands = 0 : i64, tpu.core_type = #tpu.core_type<tc>, window_params = [{transform_indices = @transform_0, window_bounds = array<i64: 1, 1, 4, 8, 16>}, {transform_indices = @transform_1, window_bounds = array<i64: 1, 1, 4, 8, 16>}, {transform_indices = @transform_2, window_bounds = array<i64: 4, 8>}, {transform_indices = @transform_3, window_bounds = array<i64: 8>}, {transform_indices = @transform_4, window_bounds = array<i64: 4, 8>}, {transform_indices = @transform_5, window_bounds = array<i64: 8>}, {transform_indices = @transform_6, window_bounds = array<i64: 8, 16>}, {transform_indices = @transform_7, window_bounds = array<i64: 16>}, {transform_indices = @transform_8, window_bounds = array<i64: 1, 16, 16>}]} {
    %c0_i32 = arith.constant 0 : i32
    %0 = arith.cmpi eq, %arg2, %c0_i32 : i32
    %1 = arith.extui %0 : i1 to i32
    %c0_i32_0 = arith.constant 0 : i32
    %2 = arith.cmpi ne, %1, %c0_i32_0 : i32
    scf.if %2 {
      %cst_420 = arith.constant 0.000000e+00 : f32
      %922 = vector.broadcast %cst_420 : f32 to vector<16x16xf32>
      %c0_421 = arith.constant 0 : index
      %c0_422 = arith.constant 0 : index
      %c0_423 = arith.constant 0 : index
      %923 = vector.load %arg11[%c0_421, %c0_422, %c0_423] : memref<1x16x16xf32, #tpu.memory_space<vmem>>, vector<1x16x16xf32>
      %924 = vector.shape_cast %923 : vector<1x16x16xf32> to vector<16x16xf32>
      %925 = vector.shape_cast %922 : vector<16x16xf32> to vector<1x16x16xf32>
      tpu.vector_store %arg11[%c0_421, %c0_422, %c0_423], %925 {strides = array<i32>} : memref<1x16x16xf32, #tpu.memory_space<vmem>>, vector<1x16x16xf32>,
    } else {
    }
    %c0 = arith.constant 0 : index
    %c0_1 = arith.constant 0 : index
    %c0_2 = arith.constant 0 : index
    %c0_3 = arith.constant 0 : index
    %c0_4 = arith.constant 0 : index
    %3 = vector.load %arg3[%c0, %c0_1, %c0_2, %c0_3, %c0_4] : memref<1x1x4x8x16xbf16, #tpu.memory_space<vmem>>, vector<1x1x4x8x16xbf16>
    %4 = vector.shape_cast %3 : vector<1x1x4x8x16xbf16> to vector<4x8x16xbf16>
    %5 = arith.extf %4 : vector<4x8x16xbf16> to vector<4x8x16xf32>
    %c0_5 = arith.constant 0 : index
    %c0_6 = arith.constant 0 : index
    %c0_7 = arith.constant 0 : index
    %c0_8 = arith.constant 0 : index
    %c0_9 = arith.constant 0 : index
    %6 = vector.load %arg4[%c0_5, %c0_6, %c0_7, %c0_8, %c0_9] : memref<1x1x4x8x16xbf16, #tpu.memory_space<vmem>>, vector<1x1x4x8x16xbf16>
    %7 = vector.shape_cast %6 : vector<1x1x4x8x16xbf16> to vector<4x8x16xbf16>
    %8 = arith.extf %7 : vector<4x8x16xbf16> to vector<4x8x16xf32>
    %9 = vector.extract_strided_slice %5 {offsets = [0, 0, 0], sizes = [1, 8, 16], strides = [1, 1, 1]} : vector<4x8x16xf32> to vector<1x8x16xf32>
    %10 = vector.shape_cast %9 : vector<1x8x16xf32> to vector<8x16xf32>
    %11 = vector.extract_strided_slice %5 {offsets = [1, 0, 0], sizes = [1, 8, 16], strides = [1, 1, 1]} : vector<4x8x16xf32> to vector<1x8x16xf32>
    %12 = vector.shape_cast %11 : vector<1x8x16xf32> to vector<8x16xf32>
    %13 = vector.extract_strided_slice %5 {offsets = [2, 0, 0], sizes = [1, 8, 16], strides = [1, 1, 1]} : vector<4x8x16xf32> to vector<1x8x16xf32>
    %14 = vector.shape_cast %13 : vector<1x8x16xf32> to vector<8x16xf32>
    %15 = vector.extract_strided_slice %5 {offsets = [3, 0, 0], sizes = [1, 8, 16], strides = [1, 1, 1]} : vector<4x8x16xf32> to vector<1x8x16xf32>
    %16 = vector.shape_cast %15 : vector<1x8x16xf32> to vector<8x16xf32>
    %c0_10 = arith.constant 0 : index
    %c0_11 = arith.constant 0 : index
    %17 = memref.load %arg5[%c0_10, %c0_11] : memref<4x8xf32, #tpu.memory_space<smem>>
    %18 = vector.broadcast %17 : f32 to vector<8x16xf32>
    %19 = arith.mulf %10, %18 : vector<8x16xf32>
    %c1 = arith.constant 1 : index
    %c0_12 = arith.constant 0 : index
    %20 = memref.load %arg5[%c1, %c0_12] : memref<4x8xf32, #tpu.memory_space<smem>>
    %21 = vector.broadcast %20 : f32 to vector<8x16xf32>
    %22 = arith.mulf %12, %21 : vector<8x16xf32>
    %23 = arith.addf %19, %22 : vector<8x16xf32>
    %c2 = arith.constant 2 : index
    %c0_13 = arith.constant 0 : index
    %24 = memref.load %arg5[%c2, %c0_13] : memref<4x8xf32, #tpu.memory_space<smem>>
    %25 = vector.broadcast %24 : f32 to vector<8x16xf32>
    %26 = arith.mulf %14, %25 : vector<8x16xf32>
    %27 = arith.addf %23, %26 : vector<8x16xf32>
    %c3 = arith.constant 3 : index
    %c0_14 = arith.constant 0 : index
    %28 = memref.load %arg5[%c3, %c0_14] : memref<4x8xf32, #tpu.memory_space<smem>>
    %29 = vector.broadcast %28 : f32 to vector<8x16xf32>
    %30 = arith.mulf %16, %29 : vector<8x16xf32>
    %31 = arith.addf %27, %30 : vector<8x16xf32>
    %c0_15 = arith.constant 0 : index
    %32 = memref.load %arg6[%c0_15] : memref<8xf32, #tpu.memory_space<smem>>
    %33 = vector.broadcast %32 : f32 to vector<8x16xf32>
    %34 = arith.addf %31, %33 : vector<8x16xf32>
    %c0_16 = arith.constant 0 : index
    %c1_17 = arith.constant 1 : index
    %35 = memref.load %arg5[%c0_16, %c1_17] : memref<4x8xf32, #tpu.memory_space<smem>>
    %36 = vector.broadcast %35 : f32 to vector<8x16xf32>
    %37 = arith.mulf %10, %36 : vector<8x16xf32>
    %c1_18 = arith.constant 1 : index
    %c1_19 = arith.constant 1 : index
    %38 = memref.load %arg5[%c1_18, %c1_19] : memref<4x8xf32, #tpu.memory_space<smem>>
    %39 = vector.broadcast %38 : f32 to vector<8x16xf32>
    %40 = arith.mulf %12, %39 : vector<8x16xf32>
    %41 = arith.addf %37, %40 : vector<8x16xf32>
    %c2_20 = arith.constant 2 : index
    %c1_21 = arith.constant 1 : index
    %42 = memref.load %arg5[%c2_20, %c1_21] : memref<4x8xf32, #tpu.memory_space<smem>>
    %43 = vector.broadcast %42 : f32 to vector<8x16xf32>
    %44 = arith.mulf %14, %43 : vector<8x16xf32>
    %45 = arith.addf %41, %44 : vector<8x16xf32>
    %c3_22 = arith.constant 3 : index
    %c1_23 = arith.constant 1 : index
    %46 = memref.load %arg5[%c3_22, %c1_23] : memref<4x8xf32, #tpu.memory_space<smem>>
    %47 = vector.broadcast %46 : f32 to vector<8x16xf32>
    %48 = arith.mulf %16, %47 : vector<8x16xf32>
    %49 = arith.addf %45, %48 : vector<8x16xf32>
    %c1_24 = arith.constant 1 : index
    %50 = memref.load %arg6[%c1_24] : memref<8xf32, #tpu.memory_space<smem>>
    %51 = vector.broadcast %50 : f32 to vector<8x16xf32>
    %52 = arith.addf %49, %51 : vector<8x16xf32>
    %c0_25 = arith.constant 0 : index
    %c2_26 = arith.constant 2 : index
    %53 = memref.load %arg5[%c0_25, %c2_26] : memref<4x8xf32, #tpu.memory_space<smem>>
    %54 = vector.broadcast %53 : f32 to vector<8x16xf32>
    %55 = arith.mulf %10, %54 : vector<8x16xf32>
    %c1_27 = arith.constant 1 : index
    %c2_28 = arith.constant 2 : index
    %56 = memref.load %arg5[%c1_27, %c2_28] : memref<4x8xf32, #tpu.memory_space<smem>>
    %57 = vector.broadcast %56 : f32 to vector<8x16xf32>
    %58 = arith.mulf %12, %57 : vector<8x16xf32>
    %59 = arith.addf %55, %58 : vector<8x16xf32>
    %c2_29 = arith.constant 2 : index
    %c2_30 = arith.constant 2 : index
    %60 = memref.load %arg5[%c2_29, %c2_30] : memref<4x8xf32, #tpu.memory_space<smem>>
    %61 = vector.broadcast %60 : f32 to vector<8x16xf32>
    %62 = arith.mulf %14, %61 : vector<8x16xf32>
    %63 = arith.addf %59, %62 : vector<8x16xf32>
    %c3_31 = arith.constant 3 : index
    %c2_32 = arith.constant 2 : index
    %64 = memref.load %arg5[%c3_31, %c2_32] : memref<4x8xf32, #tpu.memory_space<smem>>
    %65 = vector.broadcast %64 : f32 to vector<8x16xf32>
    %66 = arith.mulf %16, %65 : vector<8x16xf32>
    %67 = arith.addf %63, %66 : vector<8x16xf32>
    %c2_33 = arith.constant 2 : index
    %68 = memref.load %arg6[%c2_33] : memref<8xf32, #tpu.memory_space<smem>>
    %69 = vector.broadcast %68 : f32 to vector<8x16xf32>
    %70 = arith.addf %67, %69 : vector<8x16xf32>
    %c0_34 = arith.constant 0 : index
    %c3_35 = arith.constant 3 : index
    %71 = memref.load %arg5[%c0_34, %c3_35] : memref<4x8xf32, #tpu.memory_space<smem>>
    %72 = vector.broadcast %71 : f32 to vector<8x16xf32>
    %73 = arith.mulf %10, %72 : vector<8x16xf32>
    %c1_36 = arith.constant 1 : index
    %c3_37 = arith.constant 3 : index
    %74 = memref.load %arg5[%c1_36, %c3_37] : memref<4x8xf32, #tpu.memory_space<smem>>
    %75 = vector.broadcast %74 : f32 to vector<8x16xf32>
    %76 = arith.mulf %12, %75 : vector<8x16xf32>
    %77 = arith.addf %73, %76 : vector<8x16xf32>
    %c2_38 = arith.constant 2 : index
    %c3_39 = arith.constant 3 : index
    %78 = memref.load %arg5[%c2_38, %c3_39] : memref<4x8xf32, #tpu.memory_space<smem>>
    %79 = vector.broadcast %78 : f32 to vector<8x16xf32>
    %80 = arith.mulf %14, %79 : vector<8x16xf32>
    %81 = arith.addf %77, %80 : vector<8x16xf32>
    %c3_40 = arith.constant 3 : index
    %c3_41 = arith.constant 3 : index
    %82 = memref.load %arg5[%c3_40, %c3_41] : memref<4x8xf32, #tpu.memory_space<smem>>
    %83 = vector.broadcast %82 : f32 to vector<8x16xf32>
    %84 = arith.mulf %16, %83 : vector<8x16xf32>
    %85 = arith.addf %81, %84 : vector<8x16xf32>
    %c3_42 = arith.constant 3 : index
    %86 = memref.load %arg6[%c3_42] : memref<8xf32, #tpu.memory_space<smem>>
    %87 = vector.broadcast %86 : f32 to vector<8x16xf32>
    %88 = arith.addf %85, %87 : vector<8x16xf32>
    %c0_43 = arith.constant 0 : index
    %c4 = arith.constant 4 : index
    %89 = memref.load %arg5[%c0_43, %c4] : memref<4x8xf32, #tpu.memory_space<smem>>
    %90 = vector.broadcast %89 : f32 to vector<8x16xf32>
    %91 = arith.mulf %10, %90 : vector<8x16xf32>
    %c1_44 = arith.constant 1 : index
    %c4_45 = arith.constant 4 : index
    %92 = memref.load %arg5[%c1_44, %c4_45] : memref<4x8xf32, #tpu.memory_space<smem>>
    %93 = vector.broadcast %92 : f32 to vector<8x16xf32>
    %94 = arith.mulf %12, %93 : vector<8x16xf32>
    %95 = arith.addf %91, %94 : vector<8x16xf32>
    %c2_46 = arith.constant 2 : index
    %c4_47 = arith.constant 4 : index
    %96 = memref.load %arg5[%c2_46, %c4_47] : memref<4x8xf32, #tpu.memory_space<smem>>
    %97 = vector.broadcast %96 : f32 to vector<8x16xf32>
    %98 = arith.mulf %14, %97 : vector<8x16xf32>
    %99 = arith.addf %95, %98 : vector<8x16xf32>
    %c3_48 = arith.constant 3 : index
    %c4_49 = arith.constant 4 : index
    %100 = memref.load %arg5[%c3_48, %c4_49] : memref<4x8xf32, #tpu.memory_space<smem>>
    %101 = vector.broadcast %100 : f32 to vector<8x16xf32>
    %102 = arith.mulf %16, %101 : vector<8x16xf32>
    %103 = arith.addf %99, %102 : vector<8x16xf32>
    %c4_50 = arith.constant 4 : index
    %104 = memref.load %arg6[%c4_50] : memref<8xf32, #tpu.memory_space<smem>>
    %105 = vector.broadcast %104 : f32 to vector<8x16xf32>
    %106 = arith.addf %103, %105 : vector<8x16xf32>
    %c0_51 = arith.constant 0 : index
    %c5 = arith.constant 5 : index
    %107 = memref.load %arg5[%c0_51, %c5] : memref<4x8xf32, #tpu.memory_space<smem>>
    %108 = vector.broadcast %107 : f32 to vector<8x16xf32>
    %109 = arith.mulf %10, %108 : vector<8x16xf32>
    %c1_52 = arith.constant 1 : index
    %c5_53 = arith.constant 5 : index
    %110 = memref.load %arg5[%c1_52, %c5_53] : memref<4x8xf32, #tpu.memory_space<smem>>
    %111 = vector.broadcast %110 : f32 to vector<8x16xf32>
    %112 = arith.mulf %12, %111 : vector<8x16xf32>
    %113 = arith.addf %109, %112 : vector<8x16xf32>
    %c2_54 = arith.constant 2 : index
    %c5_55 = arith.constant 5 : index
    %114 = memref.load %arg5[%c2_54, %c5_55] : memref<4x8xf32, #tpu.memory_space<smem>>
    %115 = vector.broadcast %114 : f32 to vector<8x16xf32>
    %116 = arith.mulf %14, %115 : vector<8x16xf32>
    %117 = arith.addf %113, %116 : vector<8x16xf32>
    %c3_56 = arith.constant 3 : index
    %c5_57 = arith.constant 5 : index
    %118 = memref.load %arg5[%c3_56, %c5_57] : memref<4x8xf32, #tpu.memory_space<smem>>
    %119 = vector.broadcast %118 : f32 to vector<8x16xf32>
    %120 = arith.mulf %16, %119 : vector<8x16xf32>
    %121 = arith.addf %117, %120 : vector<8x16xf32>
    %c5_58 = arith.constant 5 : index
    %122 = memref.load %arg6[%c5_58] : memref<8xf32, #tpu.memory_space<smem>>
    %123 = vector.broadcast %122 : f32 to vector<8x16xf32>
    %124 = arith.addf %121, %123 : vector<8x16xf32>
    %c0_59 = arith.constant 0 : index
    %c6 = arith.constant 6 : index
    %125 = memref.load %arg5[%c0_59, %c6] : memref<4x8xf32, #tpu.memory_space<smem>>
    %126 = vector.broadcast %125 : f32 to vector<8x16xf32>
    %127 = arith.mulf %10, %126 : vector<8x16xf32>
    %c1_60 = arith.constant 1 : index
    %c6_61 = arith.constant 6 : index
    %128 = memref.load %arg5[%c1_60, %c6_61] : memref<4x8xf32, #tpu.memory_space<smem>>
    %129 = vector.broadcast %128 : f32 to vector<8x16xf32>
    %130 = arith.mulf %12, %129 : vector<8x16xf32>
    %131 = arith.addf %127, %130 : vector<8x16xf32>
    %c2_62 = arith.constant 2 : index
    %c6_63 = arith.constant 6 : index
    %132 = memref.load %arg5[%c2_62, %c6_63] : memref<4x8xf32, #tpu.memory_space<smem>>
    %133 = vector.broadcast %132 : f32 to vector<8x16xf32>
    %134 = arith.mulf %14, %133 : vector<8x16xf32>
    %135 = arith.addf %131, %134 : vector<8x16xf32>
    %c3_64 = arith.constant 3 : index
    %c6_65 = arith.constant 6 : index
    %136 = memref.load %arg5[%c3_64, %c6_65] : memref<4x8xf32, #tpu.memory_space<smem>>
    %137 = vector.broadcast %136 : f32 to vector<8x16xf32>
    %138 = arith.mulf %16, %137 : vector<8x16xf32>
    %139 = arith.addf %135, %138 : vector<8x16xf32>
    %c6_66 = arith.constant 6 : index
    %140 = memref.load %arg6[%c6_66] : memref<8xf32, #tpu.memory_space<smem>>
    %141 = vector.broadcast %140 : f32 to vector<8x16xf32>
    %142 = arith.addf %139, %141 : vector<8x16xf32>
    %c0_67 = arith.constant 0 : index
    %c7 = arith.constant 7 : index
    %143 = memref.load %arg5[%c0_67, %c7] : memref<4x8xf32, #tpu.memory_space<smem>>
    %144 = vector.broadcast %143 : f32 to vector<8x16xf32>
    %145 = arith.mulf %10, %144 : vector<8x16xf32>
    %c1_68 = arith.constant 1 : index
    %c7_69 = arith.constant 7 : index
    %146 = memref.load %arg5[%c1_68, %c7_69] : memref<4x8xf32, #tpu.memory_space<smem>>
    %147 = vector.broadcast %146 : f32 to vector<8x16xf32>
    %148 = arith.mulf %12, %147 : vector<8x16xf32>
    %149 = arith.addf %145, %148 : vector<8x16xf32>
    %c2_70 = arith.constant 2 : index
    %c7_71 = arith.constant 7 : index
    %150 = memref.load %arg5[%c2_70, %c7_71] : memref<4x8xf32, #tpu.memory_space<smem>>
    %151 = vector.broadcast %150 : f32 to vector<8x16xf32>
    %152 = arith.mulf %14, %151 : vector<8x16xf32>
    %153 = arith.addf %149, %152 : vector<8x16xf32>
    %c3_72 = arith.constant 3 : index
    %c7_73 = arith.constant 7 : index
    %154 = memref.load %arg5[%c3_72, %c7_73] : memref<4x8xf32, #tpu.memory_space<smem>>
    %155 = vector.broadcast %154 : f32 to vector<8x16xf32>
    %156 = arith.mulf %16, %155 : vector<8x16xf32>
    %157 = arith.addf %153, %156 : vector<8x16xf32>
    %c7_74 = arith.constant 7 : index
    %158 = memref.load %arg6[%c7_74] : memref<8xf32, #tpu.memory_space<smem>>
    %159 = vector.broadcast %158 : f32 to vector<8x16xf32>
    %160 = arith.addf %157, %159 : vector<8x16xf32>
    %161 = vector.shape_cast %34 : vector<8x16xf32> to vector<1x8x16xf32>
    %162 = vector.shape_cast %52 : vector<8x16xf32> to vector<1x8x16xf32>
    %163 = vector.shape_cast %70 : vector<8x16xf32> to vector<1x8x16xf32>
    %164 = vector.shape_cast %88 : vector<8x16xf32> to vector<1x8x16xf32>
    %165 = vector.shape_cast %106 : vector<8x16xf32> to vector<1x8x16xf32>
    %166 = vector.shape_cast %124 : vector<8x16xf32> to vector<1x8x16xf32>
    %167 = vector.shape_cast %142 : vector<8x16xf32> to vector<1x8x16xf32>
    %168 = vector.shape_cast %160 : vector<8x16xf32> to vector<1x8x16xf32>
    %169 = tpu.concatenate %161, %162, %163, %164, %165, %166, %167, %168 in 0 : vector<1x8x16xf32>, vector<1x8x16xf32>, vector<1x8x16xf32>, vector<1x8x16xf32>, vector<1x8x16xf32>, vector<1x8x16xf32>, vector<1x8x16xf32>, vector<1x8x16xf32> -> vector<8x8x16xf32>
    %170 = vector.extract_strided_slice %8 {offsets = [0, 0, 0], sizes = [1, 8, 16], strides = [1, 1, 1]} : vector<4x8x16xf32> to vector<1x8x16xf32>
    %171 = vector.shape_cast %170 : vector<1x8x16xf32> to vector<8x16xf32>
    %172 = vector.extract_strided_slice %8 {offsets = [1, 0, 0], sizes = [1, 8, 16], strides = [1, 1, 1]} : vector<4x8x16xf32> to vector<1x8x16xf32>
    %173 = vector.shape_cast %172 : vector<1x8x16xf32> to vector<8x16xf32>
    %174 = vector.extract_strided_slice %8 {offsets = [2, 0, 0], sizes = [1, 8, 16], strides = [1, 1, 1]} : vector<4x8x16xf32> to vector<1x8x16xf32>
    %175 = vector.shape_cast %174 : vector<1x8x16xf32> to vector<8x16xf32>
    %176 = vector.extract_strided_slice %8 {offsets = [3, 0, 0], sizes = [1, 8, 16], strides = [1, 1, 1]} : vector<4x8x16xf32> to vector<1x8x16xf32>
    %177 = vector.shape_cast %176 : vector<1x8x16xf32> to vector<8x16xf32>
    %c0_75 = arith.constant 0 : index
    %c0_76 = arith.constant 0 : index
    %178 = memref.load %arg7[%c0_75, %c0_76] : memref<4x8xf32, #tpu.memory_space<smem>>
    %179 = vector.broadcast %178 : f32 to vector<8x16xf32>
    %180 = arith.mulf %171, %179 : vector<8x16xf32>
    %c1_77 = arith.constant 1 : index
    %c0_78 = arith.constant 0 : index
    %181 = memref.load %arg7[%c1_77, %c0_78] : memref<4x8xf32, #tpu.memory_space<smem>>
    %182 = vector.broadcast %181 : f32 to vector<8x16xf32>
    %183 = arith.mulf %173, %182 : vector<8x16xf32>
    %184 = arith.addf %180, %183 : vector<8x16xf32>
    %c2_79 = arith.constant 2 : index
    %c0_80 = arith.constant 0 : index
    %185 = memref.load %arg7[%c2_79, %c0_80] : memref<4x8xf32, #tpu.memory_space<smem>>
    %186 = vector.broadcast %185 : f32 to vector<8x16xf32>
    %187 = arith.mulf %175, %186 : vector<8x16xf32>
    %188 = arith.addf %184, %187 : vector<8x16xf32>
    %c3_81 = arith.constant 3 : index
    %c0_82 = arith.constant 0 : index
    %189 = memref.load %arg7[%c3_81, %c0_82] : memref<4x8xf32, #tpu.memory_space<smem>>
    %190 = vector.broadcast %189 : f32 to vector<8x16xf32>
    %191 = arith.mulf %177, %190 : vector<8x16xf32>
    %192 = arith.addf %188, %191 : vector<8x16xf32>
    %c0_83 = arith.constant 0 : index
    %193 = memref.load %arg8[%c0_83] : memref<8xf32, #tpu.memory_space<smem>>
    %194 = vector.broadcast %193 : f32 to vector<8x16xf32>
    %195 = arith.addf %192, %194 : vector<8x16xf32>
    %c0_84 = arith.constant 0 : index
    %c1_85 = arith.constant 1 : index
    %196 = memref.load %arg7[%c0_84, %c1_85] : memref<4x8xf32, #tpu.memory_space<smem>>
    %197 = vector.broadcast %196 : f32 to vector<8x16xf32>
    %198 = arith.mulf %171, %197 : vector<8x16xf32>
    %c1_86 = arith.constant 1 : index
    %c1_87 = arith.constant 1 : index
    %199 = memref.load %arg7[%c1_86, %c1_87] : memref<4x8xf32, #tpu.memory_space<smem>>
    %200 = vector.broadcast %199 : f32 to vector<8x16xf32>
    %201 = arith.mulf %173, %200 : vector<8x16xf32>
    %202 = arith.addf %198, %201 : vector<8x16xf32>
    %c2_88 = arith.constant 2 : index
    %c1_89 = arith.constant 1 : index
    %203 = memref.load %arg7[%c2_88, %c1_89] : memref<4x8xf32, #tpu.memory_space<smem>>
    %204 = vector.broadcast %203 : f32 to vector<8x16xf32>
    %205 = arith.mulf %175, %204 : vector<8x16xf32>
    %206 = arith.addf %202, %205 : vector<8x16xf32>
    %c3_90 = arith.constant 3 : index
    %c1_91 = arith.constant 1 : index
    %207 = memref.load %arg7[%c3_90, %c1_91] : memref<4x8xf32, #tpu.memory_space<smem>>
    %208 = vector.broadcast %207 : f32 to vector<8x16xf32>
    %209 = arith.mulf %177, %208 : vector<8x16xf32>
    %210 = arith.addf %206, %209 : vector<8x16xf32>
    %c1_92 = arith.constant 1 : index
    %211 = memref.load %arg8[%c1_92] : memref<8xf32, #tpu.memory_space<smem>>
    %212 = vector.broadcast %211 : f32 to vector<8x16xf32>
    %213 = arith.addf %210, %212 : vector<8x16xf32>
    %c0_93 = arith.constant 0 : index
    %c2_94 = arith.constant 2 : index
    %214 = memref.load %arg7[%c0_93, %c2_94] : memref<4x8xf32, #tpu.memory_space<smem>>
    %215 = vector.broadcast %214 : f32 to vector<8x16xf32>
    %216 = arith.mulf %171, %215 : vector<8x16xf32>
    %c1_95 = arith.constant 1 : index
    %c2_96 = arith.constant 2 : index
    %217 = memref.load %arg7[%c1_95, %c2_96] : memref<4x8xf32, #tpu.memory_space<smem>>
    %218 = vector.broadcast %217 : f32 to vector<8x16xf32>
    %219 = arith.mulf %173, %218 : vector<8x16xf32>
    %220 = arith.addf %216, %219 : vector<8x16xf32>
    %c2_97 = arith.constant 2 : index
    %c2_98 = arith.constant 2 : index
    %221 = memref.load %arg7[%c2_97, %c2_98] : memref<4x8xf32, #tpu.memory_space<smem>>
    %222 = vector.broadcast %221 : f32 to vector<8x16xf32>
    %223 = arith.mulf %175, %222 : vector<8x16xf32>
    %224 = arith.addf %220, %223 : vector<8x16xf32>
    %c3_99 = arith.constant 3 : index
    %c2_100 = arith.constant 2 : index
    %225 = memref.load %arg7[%c3_99, %c2_100] : memref<4x8xf32, #tpu.memory_space<smem>>
    %226 = vector.broadcast %225 : f32 to vector<8x16xf32>
    %227 = arith.mulf %177, %226 : vector<8x16xf32>
    %228 = arith.addf %224, %227 : vector<8x16xf32>
    %c2_101 = arith.constant 2 : index
    %229 = memref.load %arg8[%c2_101] : memref<8xf32, #tpu.memory_space<smem>>
    %230 = vector.broadcast %229 : f32 to vector<8x16xf32>
    %231 = arith.addf %228, %230 : vector<8x16xf32>
    %c0_102 = arith.constant 0 : index
    %c3_103 = arith.constant 3 : index
    %232 = memref.load %arg7[%c0_102, %c3_103] : memref<4x8xf32, #tpu.memory_space<smem>>
    %233 = vector.broadcast %232 : f32 to vector<8x16xf32>
    %234 = arith.mulf %171, %233 : vector<8x16xf32>
    %c1_104 = arith.constant 1 : index
    %c3_105 = arith.constant 3 : index
    %235 = memref.load %arg7[%c1_104, %c3_105] : memref<4x8xf32, #tpu.memory_space<smem>>
    %236 = vector.broadcast %235 : f32 to vector<8x16xf32>
    %237 = arith.mulf %173, %236 : vector<8x16xf32>
    %238 = arith.addf %234, %237 : vector<8x16xf32>
    %c2_106 = arith.constant 2 : index
    %c3_107 = arith.constant 3 : index
    %239 = memref.load %arg7[%c2_106, %c3_107] : memref<4x8xf32, #tpu.memory_space<smem>>
    %240 = vector.broadcast %239 : f32 to vector<8x16xf32>
    %241 = arith.mulf %175, %240 : vector<8x16xf32>
    %242 = arith.addf %238, %241 : vector<8x16xf32>
    %c3_108 = arith.constant 3 : index
    %c3_109 = arith.constant 3 : index
    %243 = memref.load %arg7[%c3_108, %c3_109] : memref<4x8xf32, #tpu.memory_space<smem>>
    %244 = vector.broadcast %243 : f32 to vector<8x16xf32>
    %245 = arith.mulf %177, %244 : vector<8x16xf32>
    %246 = arith.addf %242, %245 : vector<8x16xf32>
    %c3_110 = arith.constant 3 : index
    %247 = memref.load %arg8[%c3_110] : memref<8xf32, #tpu.memory_space<smem>>
    %248 = vector.broadcast %247 : f32 to vector<8x16xf32>
    %249 = arith.addf %246, %248 : vector<8x16xf32>
    %c0_111 = arith.constant 0 : index
    %c4_112 = arith.constant 4 : index
    %250 = memref.load %arg7[%c0_111, %c4_112] : memref<4x8xf32, #tpu.memory_space<smem>>
    %251 = vector.broadcast %250 : f32 to vector<8x16xf32>
    %252 = arith.mulf %171, %251 : vector<8x16xf32>
    %c1_113 = arith.constant 1 : index
    %c4_114 = arith.constant 4 : index
    %253 = memref.load %arg7[%c1_113, %c4_114] : memref<4x8xf32, #tpu.memory_space<smem>>
    %254 = vector.broadcast %253 : f32 to vector<8x16xf32>
    %255 = arith.mulf %173, %254 : vector<8x16xf32>
    %256 = arith.addf %252, %255 : vector<8x16xf32>
    %c2_115 = arith.constant 2 : index
    %c4_116 = arith.constant 4 : index
    %257 = memref.load %arg7[%c2_115, %c4_116] : memref<4x8xf32, #tpu.memory_space<smem>>
    %258 = vector.broadcast %257 : f32 to vector<8x16xf32>
    %259 = arith.mulf %175, %258 : vector<8x16xf32>
    %260 = arith.addf %256, %259 : vector<8x16xf32>
    %c3_117 = arith.constant 3 : index
    %c4_118 = arith.constant 4 : index
    %261 = memref.load %arg7[%c3_117, %c4_118] : memref<4x8xf32, #tpu.memory_space<smem>>
    %262 = vector.broadcast %261 : f32 to vector<8x16xf32>
    %263 = arith.mulf %177, %262 : vector<8x16xf32>
    %264 = arith.addf %260, %263 : vector<8x16xf32>
    %c4_119 = arith.constant 4 : index
    %265 = memref.load %arg8[%c4_119] : memref<8xf32, #tpu.memory_space<smem>>
    %266 = vector.broadcast %265 : f32 to vector<8x16xf32>
    %267 = arith.addf %264, %266 : vector<8x16xf32>
    %c0_120 = arith.constant 0 : index
    %c5_121 = arith.constant 5 : index
    %268 = memref.load %arg7[%c0_120, %c5_121] : memref<4x8xf32, #tpu.memory_space<smem>>
    %269 = vector.broadcast %268 : f32 to vector<8x16xf32>
    %270 = arith.mulf %171, %269 : vector<8x16xf32>
    %c1_122 = arith.constant 1 : index
    %c5_123 = arith.constant 5 : index
    %271 = memref.load %arg7[%c1_122, %c5_123] : memref<4x8xf32, #tpu.memory_space<smem>>
    %272 = vector.broadcast %271 : f32 to vector<8x16xf32>
    %273 = arith.mulf %173, %272 : vector<8x16xf32>
    %274 = arith.addf %270, %273 : vector<8x16xf32>
    %c2_124 = arith.constant 2 : index
    %c5_125 = arith.constant 5 : index
    %275 = memref.load %arg7[%c2_124, %c5_125] : memref<4x8xf32, #tpu.memory_space<smem>>
    %276 = vector.broadcast %275 : f32 to vector<8x16xf32>
    %277 = arith.mulf %175, %276 : vector<8x16xf32>
    %278 = arith.addf %274, %277 : vector<8x16xf32>
    %c3_126 = arith.constant 3 : index
    %c5_127 = arith.constant 5 : index
    %279 = memref.load %arg7[%c3_126, %c5_127] : memref<4x8xf32, #tpu.memory_space<smem>>
    %280 = vector.broadcast %279 : f32 to vector<8x16xf32>
    %281 = arith.mulf %177, %280 : vector<8x16xf32>
    %282 = arith.addf %278, %281 : vector<8x16xf32>
    %c5_128 = arith.constant 5 : index
    %283 = memref.load %arg8[%c5_128] : memref<8xf32, #tpu.memory_space<smem>>
    %284 = vector.broadcast %283 : f32 to vector<8x16xf32>
    %285 = arith.addf %282, %284 : vector<8x16xf32>
    %c0_129 = arith.constant 0 : index
    %c6_130 = arith.constant 6 : index
    %286 = memref.load %arg7[%c0_129, %c6_130] : memref<4x8xf32, #tpu.memory_space<smem>>
    %287 = vector.broadcast %286 : f32 to vector<8x16xf32>
    %288 = arith.mulf %171, %287 : vector<8x16xf32>
    %c1_131 = arith.constant 1 : index
    %c6_132 = arith.constant 6 : index
    %289 = memref.load %arg7[%c1_131, %c6_132] : memref<4x8xf32, #tpu.memory_space<smem>>
    %290 = vector.broadcast %289 : f32 to vector<8x16xf32>
    %291 = arith.mulf %173, %290 : vector<8x16xf32>
    %292 = arith.addf %288, %291 : vector<8x16xf32>
    %c2_133 = arith.constant 2 : index
    %c6_134 = arith.constant 6 : index
    %293 = memref.load %arg7[%c2_133, %c6_134] : memref<4x8xf32, #tpu.memory_space<smem>>
    %294 = vector.broadcast %293 : f32 to vector<8x16xf32>
    %295 = arith.mulf %175, %294 : vector<8x16xf32>
    %296 = arith.addf %292, %295 : vector<8x16xf32>
    %c3_135 = arith.constant 3 : index
    %c6_136 = arith.constant 6 : index
    %297 = memref.load %arg7[%c3_135, %c6_136] : memref<4x8xf32, #tpu.memory_space<smem>>
    %298 = vector.broadcast %297 : f32 to vector<8x16xf32>
    %299 = arith.mulf %177, %298 : vector<8x16xf32>
    %300 = arith.addf %296, %299 : vector<8x16xf32>
    %c6_137 = arith.constant 6 : index
    %301 = memref.load %arg8[%c6_137] : memref<8xf32, #tpu.memory_space<smem>>
    %302 = vector.broadcast %301 : f32 to vector<8x16xf32>
    %303 = arith.addf %300, %302 : vector<8x16xf32>
    %c0_138 = arith.constant 0 : index
    %c7_139 = arith.constant 7 : index
    %304 = memref.load %arg7[%c0_138, %c7_139] : memref<4x8xf32, #tpu.memory_space<smem>>
    %305 = vector.broadcast %304 : f32 to vector<8x16xf32>
    %306 = arith.mulf %171, %305 : vector<8x16xf32>
    %c1_140 = arith.constant 1 : index
    %c7_141 = arith.constant 7 : index
    %307 = memref.load %arg7[%c1_140, %c7_141] : memref<4x8xf32, #tpu.memory_space<smem>>
    %308 = vector.broadcast %307 : f32 to vector<8x16xf32>
    %309 = arith.mulf %173, %308 : vector<8x16xf32>
    %310 = arith.addf %306, %309 : vector<8x16xf32>
    %c2_142 = arith.constant 2 : index
    %c7_143 = arith.constant 7 : index
    %311 = memref.load %arg7[%c2_142, %c7_143] : memref<4x8xf32, #tpu.memory_space<smem>>
    %312 = vector.broadcast %311 : f32 to vector<8x16xf32>
    %313 = arith.mulf %175, %312 : vector<8x16xf32>
    %314 = arith.addf %310, %313 : vector<8x16xf32>
    %c3_144 = arith.constant 3 : index
    %c7_145 = arith.constant 7 : index
    %315 = memref.load %arg7[%c3_144, %c7_145] : memref<4x8xf32, #tpu.memory_space<smem>>
    %316 = vector.broadcast %315 : f32 to vector<8x16xf32>
    %317 = arith.mulf %177, %316 : vector<8x16xf32>
    %318 = arith.addf %314, %317 : vector<8x16xf32>
    %c7_146 = arith.constant 7 : index
    %319 = memref.load %arg8[%c7_146] : memref<8xf32, #tpu.memory_space<smem>>
    %320 = vector.broadcast %319 : f32 to vector<8x16xf32>
    %321 = arith.addf %318, %320 : vector<8x16xf32>
    %322 = vector.shape_cast %195 : vector<8x16xf32> to vector<1x8x16xf32>
    %323 = vector.shape_cast %213 : vector<8x16xf32> to vector<1x8x16xf32>
    %324 = vector.shape_cast %231 : vector<8x16xf32> to vector<1x8x16xf32>
    %325 = vector.shape_cast %249 : vector<8x16xf32> to vector<1x8x16xf32>
    %326 = vector.shape_cast %267 : vector<8x16xf32> to vector<1x8x16xf32>
    %327 = vector.shape_cast %285 : vector<8x16xf32> to vector<1x8x16xf32>
    %328 = vector.shape_cast %303 : vector<8x16xf32> to vector<1x8x16xf32>
    %329 = vector.shape_cast %321 : vector<8x16xf32> to vector<1x8x16xf32>
    %330 = tpu.concatenate %322, %323, %324, %325, %326, %327, %328, %329 in 0 : vector<1x8x16xf32>, vector<1x8x16xf32>, vector<1x8x16xf32>, vector<1x8x16xf32>, vector<1x8x16xf32>, vector<1x8x16xf32>, vector<1x8x16xf32>, vector<1x8x16xf32> -> vector<8x8x16xf32>
    %cst = arith.constant 0.000000e+00 : f32
    %331 = vector.broadcast %cst : f32 to vector<8x8x16xf32>
    %332 = arith.maximumf %169, %331 : vector<8x8x16xf32>
    %cst_147 = arith.constant 0.000000e+00 : f32
    %333 = vector.broadcast %cst_147 : f32 to vector<8x8x16xf32>
    %334 = arith.maximumf %330, %333 : vector<8x8x16xf32>
    %335 = arith.addf %332, %334 : vector<8x8x16xf32>
    %336 = vector.extract_strided_slice %335 {offsets = [0, 0, 0], sizes = [1, 8, 16], strides = [1, 1, 1]} : vector<8x8x16xf32> to vector<1x8x16xf32>
    %337 = vector.shape_cast %336 : vector<1x8x16xf32> to vector<8x16xf32>
    %338 = vector.extract_strided_slice %335 {offsets = [1, 0, 0], sizes = [1, 8, 16], strides = [1, 1, 1]} : vector<8x8x16xf32> to vector<1x8x16xf32>
    %339 = vector.shape_cast %338 : vector<1x8x16xf32> to vector<8x16xf32>
    %340 = vector.extract_strided_slice %335 {offsets = [2, 0, 0], sizes = [1, 8, 16], strides = [1, 1, 1]} : vector<8x8x16xf32> to vector<1x8x16xf32>
    %341 = vector.shape_cast %340 : vector<1x8x16xf32> to vector<8x16xf32>
    %342 = vector.extract_strided_slice %335 {offsets = [3, 0, 0], sizes = [1, 8, 16], strides = [1, 1, 1]} : vector<8x8x16xf32> to vector<1x8x16xf32>
    %343 = vector.shape_cast %342 : vector<1x8x16xf32> to vector<8x16xf32>
    %344 = vector.extract_strided_slice %335 {offsets = [4, 0, 0], sizes = [1, 8, 16], strides = [1, 1, 1]} : vector<8x8x16xf32> to vector<1x8x16xf32>
    %345 = vector.shape_cast %344 : vector<1x8x16xf32> to vector<8x16xf32>
    %346 = vector.extract_strided_slice %335 {offsets = [5, 0, 0], sizes = [1, 8, 16], strides = [1, 1, 1]} : vector<8x8x16xf32> to vector<1x8x16xf32>
    %347 = vector.shape_cast %346 : vector<1x8x16xf32> to vector<8x16xf32>
    %348 = vector.extract_strided_slice %335 {offsets = [6, 0, 0], sizes = [1, 8, 16], strides = [1, 1, 1]} : vector<8x8x16xf32> to vector<1x8x16xf32>
    %349 = vector.shape_cast %348 : vector<1x8x16xf32> to vector<8x16xf32>
    %350 = vector.extract_strided_slice %335 {offsets = [7, 0, 0], sizes = [1, 8, 16], strides = [1, 1, 1]} : vector<8x8x16xf32> to vector<1x8x16xf32>
    %351 = vector.shape_cast %350 : vector<1x8x16xf32> to vector<8x16xf32>
    %c0_148 = arith.constant 0 : index
    %c0_149 = arith.constant 0 : index
    %352 = memref.load %arg9[%c0_148, %c0_149] : memref<8x16xf32, #tpu.memory_space<smem>>
    %353 = vector.broadcast %352 : f32 to vector<8x16xf32>
    %354 = arith.mulf %337, %353 : vector<8x16xf32>
    %c1_150 = arith.constant 1 : index
    %c0_151 = arith.constant 0 : index
    %355 = memref.load %arg9[%c1_150, %c0_151] : memref<8x16xf32, #tpu.memory_space<smem>>
    %356 = vector.broadcast %355 : f32 to vector<8x16xf32>
    %357 = arith.mulf %339, %356 : vector<8x16xf32>
    %358 = arith.addf %354, %357 : vector<8x16xf32>
    %c2_152 = arith.constant 2 : index
    %c0_153 = arith.constant 0 : index
    %359 = memref.load %arg9[%c2_152, %c0_153] : memref<8x16xf32, #tpu.memory_space<smem>>
    %360 = vector.broadcast %359 : f32 to vector<8x16xf32>
    %361 = arith.mulf %341, %360 : vector<8x16xf32>
    %362 = arith.addf %358, %361 : vector<8x16xf32>
    %c3_154 = arith.constant 3 : index
    %c0_155 = arith.constant 0 : index
    %363 = memref.load %arg9[%c3_154, %c0_155] : memref<8x16xf32, #tpu.memory_space<smem>>
    %364 = vector.broadcast %363 : f32 to vector<8x16xf32>
    %365 = arith.mulf %343, %364 : vector<8x16xf32>
    %366 = arith.addf %362, %365 : vector<8x16xf32>
    %c4_156 = arith.constant 4 : index
    %c0_157 = arith.constant 0 : index
    %367 = memref.load %arg9[%c4_156, %c0_157] : memref<8x16xf32, #tpu.memory_space<smem>>
    %368 = vector.broadcast %367 : f32 to vector<8x16xf32>
    %369 = arith.mulf %345, %368 : vector<8x16xf32>
    %370 = arith.addf %366, %369 : vector<8x16xf32>
    %c5_158 = arith.constant 5 : index
    %c0_159 = arith.constant 0 : index
    %371 = memref.load %arg9[%c5_158, %c0_159] : memref<8x16xf32, #tpu.memory_space<smem>>
    %372 = vector.broadcast %371 : f32 to vector<8x16xf32>
    %373 = arith.mulf %347, %372 : vector<8x16xf32>
    %374 = arith.addf %370, %373 : vector<8x16xf32>
    %c6_160 = arith.constant 6 : index
    %c0_161 = arith.constant 0 : index
    %375 = memref.load %arg9[%c6_160, %c0_161] : memref<8x16xf32, #tpu.memory_space<smem>>
    %376 = vector.broadcast %375 : f32 to vector<8x16xf32>
    %377 = arith.mulf %349, %376 : vector<8x16xf32>
    %378 = arith.addf %374, %377 : vector<8x16xf32>
    %c7_162 = arith.constant 7 : index
    %c0_163 = arith.constant 0 : index
    %379 = memref.load %arg9[%c7_162, %c0_163] : memref<8x16xf32, #tpu.memory_space<smem>>
    %380 = vector.broadcast %379 : f32 to vector<8x16xf32>
    %381 = arith.mulf %351, %380 : vector<8x16xf32>
    %382 = arith.addf %378, %381 : vector<8x16xf32>
    %c0_164 = arith.constant 0 : index
    %383 = memref.load %arg10[%c0_164] : memref<16xf32, #tpu.memory_space<smem>>
    %384 = vector.broadcast %383 : f32 to vector<8x16xf32>
    %385 = arith.addf %382, %384 : vector<8x16xf32>
    %c0_165 = arith.constant 0 : index
    %c1_166 = arith.constant 1 : index
    %386 = memref.load %arg9[%c0_165, %c1_166] : memref<8x16xf32, #tpu.memory_space<smem>>
    %387 = vector.broadcast %386 : f32 to vector<8x16xf32>
    %388 = arith.mulf %337, %387 : vector<8x16xf32>
    %c1_167 = arith.constant 1 : index
    %c1_168 = arith.constant 1 : index
    %389 = memref.load %arg9[%c1_167, %c1_168] : memref<8x16xf32, #tpu.memory_space<smem>>
    %390 = vector.broadcast %389 : f32 to vector<8x16xf32>
    %391 = arith.mulf %339, %390 : vector<8x16xf32>
    %392 = arith.addf %388, %391 : vector<8x16xf32>
    %c2_169 = arith.constant 2 : index
    %c1_170 = arith.constant 1 : index
    %393 = memref.load %arg9[%c2_169, %c1_170] : memref<8x16xf32, #tpu.memory_space<smem>>
    %394 = vector.broadcast %393 : f32 to vector<8x16xf32>
    %395 = arith.mulf %341, %394 : vector<8x16xf32>
    %396 = arith.addf %392, %395 : vector<8x16xf32>
    %c3_171 = arith.constant 3 : index
    %c1_172 = arith.constant 1 : index
    %397 = memref.load %arg9[%c3_171, %c1_172] : memref<8x16xf32, #tpu.memory_space<smem>>
    %398 = vector.broadcast %397 : f32 to vector<8x16xf32>
    %399 = arith.mulf %343, %398 : vector<8x16xf32>
    %400 = arith.addf %396, %399 : vector<8x16xf32>
    %c4_173 = arith.constant 4 : index
    %c1_174 = arith.constant 1 : index
    %401 = memref.load %arg9[%c4_173, %c1_174] : memref<8x16xf32, #tpu.memory_space<smem>>
    %402 = vector.broadcast %401 : f32 to vector<8x16xf32>
    %403 = arith.mulf %345, %402 : vector<8x16xf32>
    %404 = arith.addf %400, %403 : vector<8x16xf32>
    %c5_175 = arith.constant 5 : index
    %c1_176 = arith.constant 1 : index
    %405 = memref.load %arg9[%c5_175, %c1_176] : memref<8x16xf32, #tpu.memory_space<smem>>
    %406 = vector.broadcast %405 : f32 to vector<8x16xf32>
    %407 = arith.mulf %347, %406 : vector<8x16xf32>
    %408 = arith.addf %404, %407 : vector<8x16xf32>
    %c6_177 = arith.constant 6 : index
    %c1_178 = arith.constant 1 : index
    %409 = memref.load %arg9[%c6_177, %c1_178] : memref<8x16xf32, #tpu.memory_space<smem>>
    %410 = vector.broadcast %409 : f32 to vector<8x16xf32>
    %411 = arith.mulf %349, %410 : vector<8x16xf32>
    %412 = arith.addf %408, %411 : vector<8x16xf32>
    %c7_179 = arith.constant 7 : index
    %c1_180 = arith.constant 1 : index
    %413 = memref.load %arg9[%c7_179, %c1_180] : memref<8x16xf32, #tpu.memory_space<smem>>
    %414 = vector.broadcast %413 : f32 to vector<8x16xf32>
    %415 = arith.mulf %351, %414 : vector<8x16xf32>
    %416 = arith.addf %412, %415 : vector<8x16xf32>
    %c1_181 = arith.constant 1 : index
    %417 = memref.load %arg10[%c1_181] : memref<16xf32, #tpu.memory_space<smem>>
    %418 = vector.broadcast %417 : f32 to vector<8x16xf32>
    %419 = arith.addf %416, %418 : vector<8x16xf32>
    %c0_182 = arith.constant 0 : index
    %c2_183 = arith.constant 2 : index
    %420 = memref.load %arg9[%c0_182, %c2_183] : memref<8x16xf32, #tpu.memory_space<smem>>
    %421 = vector.broadcast %420 : f32 to vector<8x16xf32>
    %422 = arith.mulf %337, %421 : vector<8x16xf32>
    %c1_184 = arith.constant 1 : index
    %c2_185 = arith.constant 2 : index
    %423 = memref.load %arg9[%c1_184, %c2_185] : memref<8x16xf32, #tpu.memory_space<smem>>
    %424 = vector.broadcast %423 : f32 to vector<8x16xf32>
    %425 = arith.mulf %339, %424 : vector<8x16xf32>
    %426 = arith.addf %422, %425 : vector<8x16xf32>
    %c2_186 = arith.constant 2 : index
    %c2_187 = arith.constant 2 : index
    %427 = memref.load %arg9[%c2_186, %c2_187] : memref<8x16xf32, #tpu.memory_space<smem>>
    %428 = vector.broadcast %427 : f32 to vector<8x16xf32>
    %429 = arith.mulf %341, %428 : vector<8x16xf32>
    %430 = arith.addf %426, %429 : vector<8x16xf32>
    %c3_188 = arith.constant 3 : index
    %c2_189 = arith.constant 2 : index
    %431 = memref.load %arg9[%c3_188, %c2_189] : memref<8x16xf32, #tpu.memory_space<smem>>
    %432 = vector.broadcast %431 : f32 to vector<8x16xf32>
    %433 = arith.mulf %343, %432 : vector<8x16xf32>
    %434 = arith.addf %430, %433 : vector<8x16xf32>
    %c4_190 = arith.constant 4 : index
    %c2_191 = arith.constant 2 : index
    %435 = memref.load %arg9[%c4_190, %c2_191] : memref<8x16xf32, #tpu.memory_space<smem>>
    %436 = vector.broadcast %435 : f32 to vector<8x16xf32>
    %437 = arith.mulf %345, %436 : vector<8x16xf32>
    %438 = arith.addf %434, %437 : vector<8x16xf32>
    %c5_192 = arith.constant 5 : index
    %c2_193 = arith.constant 2 : index
    %439 = memref.load %arg9[%c5_192, %c2_193] : memref<8x16xf32, #tpu.memory_space<smem>>
    %440 = vector.broadcast %439 : f32 to vector<8x16xf32>
    %441 = arith.mulf %347, %440 : vector<8x16xf32>
    %442 = arith.addf %438, %441 : vector<8x16xf32>
    %c6_194 = arith.constant 6 : index
    %c2_195 = arith.constant 2 : index
    %443 = memref.load %arg9[%c6_194, %c2_195] : memref<8x16xf32, #tpu.memory_space<smem>>
    %444 = vector.broadcast %443 : f32 to vector<8x16xf32>
    %445 = arith.mulf %349, %444 : vector<8x16xf32>
    %446 = arith.addf %442, %445 : vector<8x16xf32>
    %c7_196 = arith.constant 7 : index
    %c2_197 = arith.constant 2 : index
    %447 = memref.load %arg9[%c7_196, %c2_197] : memref<8x16xf32, #tpu.memory_space<smem>>
    %448 = vector.broadcast %447 : f32 to vector<8x16xf32>
    %449 = arith.mulf %351, %448 : vector<8x16xf32>
    %450 = arith.addf %446, %449 : vector<8x16xf32>
    %c2_198 = arith.constant 2 : index
    %451 = memref.load %arg10[%c2_198] : memref<16xf32, #tpu.memory_space<smem>>
    %452 = vector.broadcast %451 : f32 to vector<8x16xf32>
    %453 = arith.addf %450, %452 : vector<8x16xf32>
    %c0_199 = arith.constant 0 : index
    %c3_200 = arith.constant 3 : index
    %454 = memref.load %arg9[%c0_199, %c3_200] : memref<8x16xf32, #tpu.memory_space<smem>>
    %455 = vector.broadcast %454 : f32 to vector<8x16xf32>
    %456 = arith.mulf %337, %455 : vector<8x16xf32>
    %c1_201 = arith.constant 1 : index
    %c3_202 = arith.constant 3 : index
    %457 = memref.load %arg9[%c1_201, %c3_202] : memref<8x16xf32, #tpu.memory_space<smem>>
    %458 = vector.broadcast %457 : f32 to vector<8x16xf32>
    %459 = arith.mulf %339, %458 : vector<8x16xf32>
    %460 = arith.addf %456, %459 : vector<8x16xf32>
    %c2_203 = arith.constant 2 : index
    %c3_204 = arith.constant 3 : index
    %461 = memref.load %arg9[%c2_203, %c3_204] : memref<8x16xf32, #tpu.memory_space<smem>>
    %462 = vector.broadcast %461 : f32 to vector<8x16xf32>
    %463 = arith.mulf %341, %462 : vector<8x16xf32>
    %464 = arith.addf %460, %463 : vector<8x16xf32>
    %c3_205 = arith.constant 3 : index
    %c3_206 = arith.constant 3 : index
    %465 = memref.load %arg9[%c3_205, %c3_206] : memref<8x16xf32, #tpu.memory_space<smem>>
    %466 = vector.broadcast %465 : f32 to vector<8x16xf32>
    %467 = arith.mulf %343, %466 : vector<8x16xf32>
    %468 = arith.addf %464, %467 : vector<8x16xf32>
    %c4_207 = arith.constant 4 : index
    %c3_208 = arith.constant 3 : index
    %469 = memref.load %arg9[%c4_207, %c3_208] : memref<8x16xf32, #tpu.memory_space<smem>>
    %470 = vector.broadcast %469 : f32 to vector<8x16xf32>
    %471 = arith.mulf %345, %470 : vector<8x16xf32>
    %472 = arith.addf %468, %471 : vector<8x16xf32>
    %c5_209 = arith.constant 5 : index
    %c3_210 = arith.constant 3 : index
    %473 = memref.load %arg9[%c5_209, %c3_210] : memref<8x16xf32, #tpu.memory_space<smem>>
    %474 = vector.broadcast %473 : f32 to vector<8x16xf32>
    %475 = arith.mulf %347, %474 : vector<8x16xf32>
    %476 = arith.addf %472, %475 : vector<8x16xf32>
    %c6_211 = arith.constant 6 : index
    %c3_212 = arith.constant 3 : index
    %477 = memref.load %arg9[%c6_211, %c3_212] : memref<8x16xf32, #tpu.memory_space<smem>>
    %478 = vector.broadcast %477 : f32 to vector<8x16xf32>
    %479 = arith.mulf %349, %478 : vector<8x16xf32>
    %480 = arith.addf %476, %479 : vector<8x16xf32>
    %c7_213 = arith.constant 7 : index
    %c3_214 = arith.constant 3 : index
    %481 = memref.load %arg9[%c7_213, %c3_214] : memref<8x16xf32, #tpu.memory_space<smem>>
    %482 = vector.broadcast %481 : f32 to vector<8x16xf32>
    %483 = arith.mulf %351, %482 : vector<8x16xf32>
    %484 = arith.addf %480, %483 : vector<8x16xf32>
    %c3_215 = arith.constant 3 : index
    %485 = memref.load %arg10[%c3_215] : memref<16xf32, #tpu.memory_space<smem>>
    %486 = vector.broadcast %485 : f32 to vector<8x16xf32>
    %487 = arith.addf %484, %486 : vector<8x16xf32>
    %c0_216 = arith.constant 0 : index
    %c4_217 = arith.constant 4 : index
    %488 = memref.load %arg9[%c0_216, %c4_217] : memref<8x16xf32, #tpu.memory_space<smem>>
    %489 = vector.broadcast %488 : f32 to vector<8x16xf32>
    %490 = arith.mulf %337, %489 : vector<8x16xf32>
    %c1_218 = arith.constant 1 : index
    %c4_219 = arith.constant 4 : index
    %491 = memref.load %arg9[%c1_218, %c4_219] : memref<8x16xf32, #tpu.memory_space<smem>>
    %492 = vector.broadcast %491 : f32 to vector<8x16xf32>
    %493 = arith.mulf %339, %492 : vector<8x16xf32>
    %494 = arith.addf %490, %493 : vector<8x16xf32>
    %c2_220 = arith.constant 2 : index
    %c4_221 = arith.constant 4 : index
    %495 = memref.load %arg9[%c2_220, %c4_221] : memref<8x16xf32, #tpu.memory_space<smem>>
    %496 = vector.broadcast %495 : f32 to vector<8x16xf32>
    %497 = arith.mulf %341, %496 : vector<8x16xf32>
    %498 = arith.addf %494, %497 : vector<8x16xf32>
    %c3_222 = arith.constant 3 : index
    %c4_223 = arith.constant 4 : index
    %499 = memref.load %arg9[%c3_222, %c4_223] : memref<8x16xf32, #tpu.memory_space<smem>>
    %500 = vector.broadcast %499 : f32 to vector<8x16xf32>
    %501 = arith.mulf %343, %500 : vector<8x16xf32>
    %502 = arith.addf %498, %501 : vector<8x16xf32>
    %c4_224 = arith.constant 4 : index
    %c4_225 = arith.constant 4 : index
    %503 = memref.load %arg9[%c4_224, %c4_225] : memref<8x16xf32, #tpu.memory_space<smem>>
    %504 = vector.broadcast %503 : f32 to vector<8x16xf32>
    %505 = arith.mulf %345, %504 : vector<8x16xf32>
    %506 = arith.addf %502, %505 : vector<8x16xf32>
    %c5_226 = arith.constant 5 : index
    %c4_227 = arith.constant 4 : index
    %507 = memref.load %arg9[%c5_226, %c4_227] : memref<8x16xf32, #tpu.memory_space<smem>>
    %508 = vector.broadcast %507 : f32 to vector<8x16xf32>
    %509 = arith.mulf %347, %508 : vector<8x16xf32>
    %510 = arith.addf %506, %509 : vector<8x16xf32>
    %c6_228 = arith.constant 6 : index
    %c4_229 = arith.constant 4 : index
    %511 = memref.load %arg9[%c6_228, %c4_229] : memref<8x16xf32, #tpu.memory_space<smem>>
    %512 = vector.broadcast %511 : f32 to vector<8x16xf32>
    %513 = arith.mulf %349, %512 : vector<8x16xf32>
    %514 = arith.addf %510, %513 : vector<8x16xf32>
    %c7_230 = arith.constant 7 : index
    %c4_231 = arith.constant 4 : index
    %515 = memref.load %arg9[%c7_230, %c4_231] : memref<8x16xf32, #tpu.memory_space<smem>>
    %516 = vector.broadcast %515 : f32 to vector<8x16xf32>
    %517 = arith.mulf %351, %516 : vector<8x16xf32>
    %518 = arith.addf %514, %517 : vector<8x16xf32>
    %c4_232 = arith.constant 4 : index
    %519 = memref.load %arg10[%c4_232] : memref<16xf32, #tpu.memory_space<smem>>
    %520 = vector.broadcast %519 : f32 to vector<8x16xf32>
    %521 = arith.addf %518, %520 : vector<8x16xf32>
    %c0_233 = arith.constant 0 : index
    %c5_234 = arith.constant 5 : index
    %522 = memref.load %arg9[%c0_233, %c5_234] : memref<8x16xf32, #tpu.memory_space<smem>>
    %523 = vector.broadcast %522 : f32 to vector<8x16xf32>
    %524 = arith.mulf %337, %523 : vector<8x16xf32>
    %c1_235 = arith.constant 1 : index
    %c5_236 = arith.constant 5 : index
    %525 = memref.load %arg9[%c1_235, %c5_236] : memref<8x16xf32, #tpu.memory_space<smem>>
    %526 = vector.broadcast %525 : f32 to vector<8x16xf32>
    %527 = arith.mulf %339, %526 : vector<8x16xf32>
    %528 = arith.addf %524, %527 : vector<8x16xf32>
    %c2_237 = arith.constant 2 : index
    %c5_238 = arith.constant 5 : index
    %529 = memref.load %arg9[%c2_237, %c5_238] : memref<8x16xf32, #tpu.memory_space<smem>>
    %530 = vector.broadcast %529 : f32 to vector<8x16xf32>
    %531 = arith.mulf %341, %530 : vector<8x16xf32>
    %532 = arith.addf %528, %531 : vector<8x16xf32>
    %c3_239 = arith.constant 3 : index
    %c5_240 = arith.constant 5 : index
    %533 = memref.load %arg9[%c3_239, %c5_240] : memref<8x16xf32, #tpu.memory_space<smem>>
    %534 = vector.broadcast %533 : f32 to vector<8x16xf32>
    %535 = arith.mulf %343, %534 : vector<8x16xf32>
    %536 = arith.addf %532, %535 : vector<8x16xf32>
    %c4_241 = arith.constant 4 : index
    %c5_242 = arith.constant 5 : index
    %537 = memref.load %arg9[%c4_241, %c5_242] : memref<8x16xf32, #tpu.memory_space<smem>>
    %538 = vector.broadcast %537 : f32 to vector<8x16xf32>
    %539 = arith.mulf %345, %538 : vector<8x16xf32>
    %540 = arith.addf %536, %539 : vector<8x16xf32>
    %c5_243 = arith.constant 5 : index
    %c5_244 = arith.constant 5 : index
    %541 = memref.load %arg9[%c5_243, %c5_244] : memref<8x16xf32, #tpu.memory_space<smem>>
    %542 = vector.broadcast %541 : f32 to vector<8x16xf32>
    %543 = arith.mulf %347, %542 : vector<8x16xf32>
    %544 = arith.addf %540, %543 : vector<8x16xf32>
    %c6_245 = arith.constant 6 : index
    %c5_246 = arith.constant 5 : index
    %545 = memref.load %arg9[%c6_245, %c5_246] : memref<8x16xf32, #tpu.memory_space<smem>>
    %546 = vector.broadcast %545 : f32 to vector<8x16xf32>
    %547 = arith.mulf %349, %546 : vector<8x16xf32>
    %548 = arith.addf %544, %547 : vector<8x16xf32>
    %c7_247 = arith.constant 7 : index
    %c5_248 = arith.constant 5 : index
    %549 = memref.load %arg9[%c7_247, %c5_248] : memref<8x16xf32, #tpu.memory_space<smem>>
    %550 = vector.broadcast %549 : f32 to vector<8x16xf32>
    %551 = arith.mulf %351, %550 : vector<8x16xf32>
    %552 = arith.addf %548, %551 : vector<8x16xf32>
    %c5_249 = arith.constant 5 : index
    %553 = memref.load %arg10[%c5_249] : memref<16xf32, #tpu.memory_space<smem>>
    %554 = vector.broadcast %553 : f32 to vector<8x16xf32>
    %555 = arith.addf %552, %554 : vector<8x16xf32>
    %c0_250 = arith.constant 0 : index
    %c6_251 = arith.constant 6 : index
    %556 = memref.load %arg9[%c0_250, %c6_251] : memref<8x16xf32, #tpu.memory_space<smem>>
    %557 = vector.broadcast %556 : f32 to vector<8x16xf32>
    %558 = arith.mulf %337, %557 : vector<8x16xf32>
    %c1_252 = arith.constant 1 : index
    %c6_253 = arith.constant 6 : index
    %559 = memref.load %arg9[%c1_252, %c6_253] : memref<8x16xf32, #tpu.memory_space<smem>>
    %560 = vector.broadcast %559 : f32 to vector<8x16xf32>
    %561 = arith.mulf %339, %560 : vector<8x16xf32>
    %562 = arith.addf %558, %561 : vector<8x16xf32>
    %c2_254 = arith.constant 2 : index
    %c6_255 = arith.constant 6 : index
    %563 = memref.load %arg9[%c2_254, %c6_255] : memref<8x16xf32, #tpu.memory_space<smem>>
    %564 = vector.broadcast %563 : f32 to vector<8x16xf32>
    %565 = arith.mulf %341, %564 : vector<8x16xf32>
    %566 = arith.addf %562, %565 : vector<8x16xf32>
    %c3_256 = arith.constant 3 : index
    %c6_257 = arith.constant 6 : index
    %567 = memref.load %arg9[%c3_256, %c6_257] : memref<8x16xf32, #tpu.memory_space<smem>>
    %568 = vector.broadcast %567 : f32 to vector<8x16xf32>
    %569 = arith.mulf %343, %568 : vector<8x16xf32>
    %570 = arith.addf %566, %569 : vector<8x16xf32>
    %c4_258 = arith.constant 4 : index
    %c6_259 = arith.constant 6 : index
    %571 = memref.load %arg9[%c4_258, %c6_259] : memref<8x16xf32, #tpu.memory_space<smem>>
    %572 = vector.broadcast %571 : f32 to vector<8x16xf32>
    %573 = arith.mulf %345, %572 : vector<8x16xf32>
    %574 = arith.addf %570, %573 : vector<8x16xf32>
    %c5_260 = arith.constant 5 : index
    %c6_261 = arith.constant 6 : index
    %575 = memref.load %arg9[%c5_260, %c6_261] : memref<8x16xf32, #tpu.memory_space<smem>>
    %576 = vector.broadcast %575 : f32 to vector<8x16xf32>
    %577 = arith.mulf %347, %576 : vector<8x16xf32>
    %578 = arith.addf %574, %577 : vector<8x16xf32>
    %c6_262 = arith.constant 6 : index
    %c6_263 = arith.constant 6 : index
    %579 = memref.load %arg9[%c6_262, %c6_263] : memref<8x16xf32, #tpu.memory_space<smem>>
    %580 = vector.broadcast %579 : f32 to vector<8x16xf32>
    %581 = arith.mulf %349, %580 : vector<8x16xf32>
    %582 = arith.addf %578, %581 : vector<8x16xf32>
    %c7_264 = arith.constant 7 : index
    %c6_265 = arith.constant 6 : index
    %583 = memref.load %arg9[%c7_264, %c6_265] : memref<8x16xf32, #tpu.memory_space<smem>>
    %584 = vector.broadcast %583 : f32 to vector<8x16xf32>
    %585 = arith.mulf %351, %584 : vector<8x16xf32>
    %586 = arith.addf %582, %585 : vector<8x16xf32>
    %c6_266 = arith.constant 6 : index
    %587 = memref.load %arg10[%c6_266] : memref<16xf32, #tpu.memory_space<smem>>
    %588 = vector.broadcast %587 : f32 to vector<8x16xf32>
    %589 = arith.addf %586, %588 : vector<8x16xf32>
    %c0_267 = arith.constant 0 : index
    %c7_268 = arith.constant 7 : index
    %590 = memref.load %arg9[%c0_267, %c7_268] : memref<8x16xf32, #tpu.memory_space<smem>>
    %591 = vector.broadcast %590 : f32 to vector<8x16xf32>
    %592 = arith.mulf %337, %591 : vector<8x16xf32>
    %c1_269 = arith.constant 1 : index
    %c7_270 = arith.constant 7 : index
    %593 = memref.load %arg9[%c1_269, %c7_270] : memref<8x16xf32, #tpu.memory_space<smem>>
    %594 = vector.broadcast %593 : f32 to vector<8x16xf32>
    %595 = arith.mulf %339, %594 : vector<8x16xf32>
    %596 = arith.addf %592, %595 : vector<8x16xf32>
    %c2_271 = arith.constant 2 : index
    %c7_272 = arith.constant 7 : index
    %597 = memref.load %arg9[%c2_271, %c7_272] : memref<8x16xf32, #tpu.memory_space<smem>>
    %598 = vector.broadcast %597 : f32 to vector<8x16xf32>
    %599 = arith.mulf %341, %598 : vector<8x16xf32>
    %600 = arith.addf %596, %599 : vector<8x16xf32>
    %c3_273 = arith.constant 3 : index
    %c7_274 = arith.constant 7 : index
    %601 = memref.load %arg9[%c3_273, %c7_274] : memref<8x16xf32, #tpu.memory_space<smem>>
    %602 = vector.broadcast %601 : f32 to vector<8x16xf32>
    %603 = arith.mulf %343, %602 : vector<8x16xf32>
    %604 = arith.addf %600, %603 : vector<8x16xf32>
    %c4_275 = arith.constant 4 : index
    %c7_276 = arith.constant 7 : index
    %605 = memref.load %arg9[%c4_275, %c7_276] : memref<8x16xf32, #tpu.memory_space<smem>>
    %606 = vector.broadcast %605 : f32 to vector<8x16xf32>
    %607 = arith.mulf %345, %606 : vector<8x16xf32>
    %608 = arith.addf %604, %607 : vector<8x16xf32>
    %c5_277 = arith.constant 5 : index
    %c7_278 = arith.constant 7 : index
    %609 = memref.load %arg9[%c5_277, %c7_278] : memref<8x16xf32, #tpu.memory_space<smem>>
    %610 = vector.broadcast %609 : f32 to vector<8x16xf32>
    %611 = arith.mulf %347, %610 : vector<8x16xf32>
    %612 = arith.addf %608, %611 : vector<8x16xf32>
    %c6_279 = arith.constant 6 : index
    %c7_280 = arith.constant 7 : index
    %613 = memref.load %arg9[%c6_279, %c7_280] : memref<8x16xf32, #tpu.memory_space<smem>>
    %614 = vector.broadcast %613 : f32 to vector<8x16xf32>
    %615 = arith.mulf %349, %614 : vector<8x16xf32>
    %616 = arith.addf %612, %615 : vector<8x16xf32>
    %c7_281 = arith.constant 7 : index
    %c7_282 = arith.constant 7 : index
    %617 = memref.load %arg9[%c7_281, %c7_282] : memref<8x16xf32, #tpu.memory_space<smem>>
    %618 = vector.broadcast %617 : f32 to vector<8x16xf32>
    %619 = arith.mulf %351, %618 : vector<8x16xf32>
    %620 = arith.addf %616, %619 : vector<8x16xf32>
    %c7_283 = arith.constant 7 : index
    %621 = memref.load %arg10[%c7_283] : memref<16xf32, #tpu.memory_space<smem>>
    %622 = vector.broadcast %621 : f32 to vector<8x16xf32>
    %623 = arith.addf %620, %622 : vector<8x16xf32>
    %c0_284 = arith.constant 0 : index
    %c8 = arith.constant 8 : index
    %624 = memref.load %arg9[%c0_284, %c8] : memref<8x16xf32, #tpu.memory_space<smem>>
    %625 = vector.broadcast %624 : f32 to vector<8x16xf32>
    %626 = arith.mulf %337, %625 : vector<8x16xf32>
    %c1_285 = arith.constant 1 : index
    %c8_286 = arith.constant 8 : index
    %627 = memref.load %arg9[%c1_285, %c8_286] : memref<8x16xf32, #tpu.memory_space<smem>>
    %628 = vector.broadcast %627 : f32 to vector<8x16xf32>
    %629 = arith.mulf %339, %628 : vector<8x16xf32>
    %630 = arith.addf %626, %629 : vector<8x16xf32>
    %c2_287 = arith.constant 2 : index
    %c8_288 = arith.constant 8 : index
    %631 = memref.load %arg9[%c2_287, %c8_288] : memref<8x16xf32, #tpu.memory_space<smem>>
    %632 = vector.broadcast %631 : f32 to vector<8x16xf32>
    %633 = arith.mulf %341, %632 : vector<8x16xf32>
    %634 = arith.addf %630, %633 : vector<8x16xf32>
    %c3_289 = arith.constant 3 : index
    %c8_290 = arith.constant 8 : index
    %635 = memref.load %arg9[%c3_289, %c8_290] : memref<8x16xf32, #tpu.memory_space<smem>>
    %636 = vector.broadcast %635 : f32 to vector<8x16xf32>
    %637 = arith.mulf %343, %636 : vector<8x16xf32>
    %638 = arith.addf %634, %637 : vector<8x16xf32>
    %c4_291 = arith.constant 4 : index
    %c8_292 = arith.constant 8 : index
    %639 = memref.load %arg9[%c4_291, %c8_292] : memref<8x16xf32, #tpu.memory_space<smem>>
    %640 = vector.broadcast %639 : f32 to vector<8x16xf32>
    %641 = arith.mulf %345, %640 : vector<8x16xf32>
    %642 = arith.addf %638, %641 : vector<8x16xf32>
    %c5_293 = arith.constant 5 : index
    %c8_294 = arith.constant 8 : index
    %643 = memref.load %arg9[%c5_293, %c8_294] : memref<8x16xf32, #tpu.memory_space<smem>>
    %644 = vector.broadcast %643 : f32 to vector<8x16xf32>
    %645 = arith.mulf %347, %644 : vector<8x16xf32>
    %646 = arith.addf %642, %645 : vector<8x16xf32>
    %c6_295 = arith.constant 6 : index
    %c8_296 = arith.constant 8 : index
    %647 = memref.load %arg9[%c6_295, %c8_296] : memref<8x16xf32, #tpu.memory_space<smem>>
    %648 = vector.broadcast %647 : f32 to vector<8x16xf32>
    %649 = arith.mulf %349, %648 : vector<8x16xf32>
    %650 = arith.addf %646, %649 : vector<8x16xf32>
    %c7_297 = arith.constant 7 : index
    %c8_298 = arith.constant 8 : index
    %651 = memref.load %arg9[%c7_297, %c8_298] : memref<8x16xf32, #tpu.memory_space<smem>>
    %652 = vector.broadcast %651 : f32 to vector<8x16xf32>
    %653 = arith.mulf %351, %652 : vector<8x16xf32>
    %654 = arith.addf %650, %653 : vector<8x16xf32>
    %c8_299 = arith.constant 8 : index
    %655 = memref.load %arg10[%c8_299] : memref<16xf32, #tpu.memory_space<smem>>
    %656 = vector.broadcast %655 : f32 to vector<8x16xf32>
    %657 = arith.addf %654, %656 : vector<8x16xf32>
    %c0_300 = arith.constant 0 : index
    %c9 = arith.constant 9 : index
    %658 = memref.load %arg9[%c0_300, %c9] : memref<8x16xf32, #tpu.memory_space<smem>>
    %659 = vector.broadcast %658 : f32 to vector<8x16xf32>
    %660 = arith.mulf %337, %659 : vector<8x16xf32>
    %c1_301 = arith.constant 1 : index
    %c9_302 = arith.constant 9 : index
    %661 = memref.load %arg9[%c1_301, %c9_302] : memref<8x16xf32, #tpu.memory_space<smem>>
    %662 = vector.broadcast %661 : f32 to vector<8x16xf32>
    %663 = arith.mulf %339, %662 : vector<8x16xf32>
    %664 = arith.addf %660, %663 : vector<8x16xf32>
    %c2_303 = arith.constant 2 : index
    %c9_304 = arith.constant 9 : index
    %665 = memref.load %arg9[%c2_303, %c9_304] : memref<8x16xf32, #tpu.memory_space<smem>>
    %666 = vector.broadcast %665 : f32 to vector<8x16xf32>
    %667 = arith.mulf %341, %666 : vector<8x16xf32>
    %668 = arith.addf %664, %667 : vector<8x16xf32>
    %c3_305 = arith.constant 3 : index
    %c9_306 = arith.constant 9 : index
    %669 = memref.load %arg9[%c3_305, %c9_306] : memref<8x16xf32, #tpu.memory_space<smem>>
    %670 = vector.broadcast %669 : f32 to vector<8x16xf32>
    %671 = arith.mulf %343, %670 : vector<8x16xf32>
    %672 = arith.addf %668, %671 : vector<8x16xf32>
    %c4_307 = arith.constant 4 : index
    %c9_308 = arith.constant 9 : index
    %673 = memref.load %arg9[%c4_307, %c9_308] : memref<8x16xf32, #tpu.memory_space<smem>>
    %674 = vector.broadcast %673 : f32 to vector<8x16xf32>
    %675 = arith.mulf %345, %674 : vector<8x16xf32>
    %676 = arith.addf %672, %675 : vector<8x16xf32>
    %c5_309 = arith.constant 5 : index
    %c9_310 = arith.constant 9 : index
    %677 = memref.load %arg9[%c5_309, %c9_310] : memref<8x16xf32, #tpu.memory_space<smem>>
    %678 = vector.broadcast %677 : f32 to vector<8x16xf32>
    %679 = arith.mulf %347, %678 : vector<8x16xf32>
    %680 = arith.addf %676, %679 : vector<8x16xf32>
    %c6_311 = arith.constant 6 : index
    %c9_312 = arith.constant 9 : index
    %681 = memref.load %arg9[%c6_311, %c9_312] : memref<8x16xf32, #tpu.memory_space<smem>>
    %682 = vector.broadcast %681 : f32 to vector<8x16xf32>
    %683 = arith.mulf %349, %682 : vector<8x16xf32>
    %684 = arith.addf %680, %683 : vector<8x16xf32>
    %c7_313 = arith.constant 7 : index
    %c9_314 = arith.constant 9 : index
    %685 = memref.load %arg9[%c7_313, %c9_314] : memref<8x16xf32, #tpu.memory_space<smem>>
    %686 = vector.broadcast %685 : f32 to vector<8x16xf32>
    %687 = arith.mulf %351, %686 : vector<8x16xf32>
    %688 = arith.addf %684, %687 : vector<8x16xf32>
    %c9_315 = arith.constant 9 : index
    %689 = memref.load %arg10[%c9_315] : memref<16xf32, #tpu.memory_space<smem>>
    %690 = vector.broadcast %689 : f32 to vector<8x16xf32>
    %691 = arith.addf %688, %690 : vector<8x16xf32>
    %c0_316 = arith.constant 0 : index
    %c10 = arith.constant 10 : index
    %692 = memref.load %arg9[%c0_316, %c10] : memref<8x16xf32, #tpu.memory_space<smem>>
    %693 = vector.broadcast %692 : f32 to vector<8x16xf32>
    %694 = arith.mulf %337, %693 : vector<8x16xf32>
    %c1_317 = arith.constant 1 : index
    %c10_318 = arith.constant 10 : index
    %695 = memref.load %arg9[%c1_317, %c10_318] : memref<8x16xf32, #tpu.memory_space<smem>>
    %696 = vector.broadcast %695 : f32 to vector<8x16xf32>
    %697 = arith.mulf %339, %696 : vector<8x16xf32>
    %698 = arith.addf %694, %697 : vector<8x16xf32>
    %c2_319 = arith.constant 2 : index
    %c10_320 = arith.constant 10 : index
    %699 = memref.load %arg9[%c2_319, %c10_320] : memref<8x16xf32, #tpu.memory_space<smem>>
    %700 = vector.broadcast %699 : f32 to vector<8x16xf32>
    %701 = arith.mulf %341, %700 : vector<8x16xf32>
    %702 = arith.addf %698, %701 : vector<8x16xf32>
    %c3_321 = arith.constant 3 : index
    %c10_322 = arith.constant 10 : index
    %703 = memref.load %arg9[%c3_321, %c10_322] : memref<8x16xf32, #tpu.memory_space<smem>>
    %704 = vector.broadcast %703 : f32 to vector<8x16xf32>
    %705 = arith.mulf %343, %704 : vector<8x16xf32>
    %706 = arith.addf %702, %705 : vector<8x16xf32>
    %c4_323 = arith.constant 4 : index
    %c10_324 = arith.constant 10 : index
    %707 = memref.load %arg9[%c4_323, %c10_324] : memref<8x16xf32, #tpu.memory_space<smem>>
    %708 = vector.broadcast %707 : f32 to vector<8x16xf32>
    %709 = arith.mulf %345, %708 : vector<8x16xf32>
    %710 = arith.addf %706, %709 : vector<8x16xf32>
    %c5_325 = arith.constant 5 : index
    %c10_326 = arith.constant 10 : index
    %711 = memref.load %arg9[%c5_325, %c10_326] : memref<8x16xf32, #tpu.memory_space<smem>>
    %712 = vector.broadcast %711 : f32 to vector<8x16xf32>
    %713 = arith.mulf %347, %712 : vector<8x16xf32>
    %714 = arith.addf %710, %713 : vector<8x16xf32>
    %c6_327 = arith.constant 6 : index
    %c10_328 = arith.constant 10 : index
    %715 = memref.load %arg9[%c6_327, %c10_328] : memref<8x16xf32, #tpu.memory_space<smem>>
    %716 = vector.broadcast %715 : f32 to vector<8x16xf32>
    %717 = arith.mulf %349, %716 : vector<8x16xf32>
    %718 = arith.addf %714, %717 : vector<8x16xf32>
    %c7_329 = arith.constant 7 : index
    %c10_330 = arith.constant 10 : index
    %719 = memref.load %arg9[%c7_329, %c10_330] : memref<8x16xf32, #tpu.memory_space<smem>>
    %720 = vector.broadcast %719 : f32 to vector<8x16xf32>
    %721 = arith.mulf %351, %720 : vector<8x16xf32>
    %722 = arith.addf %718, %721 : vector<8x16xf32>
    %c10_331 = arith.constant 10 : index
    %723 = memref.load %arg10[%c10_331] : memref<16xf32, #tpu.memory_space<smem>>
    %724 = vector.broadcast %723 : f32 to vector<8x16xf32>
    %725 = arith.addf %722, %724 : vector<8x16xf32>
    %c0_332 = arith.constant 0 : index
    %c11 = arith.constant 11 : index
    %726 = memref.load %arg9[%c0_332, %c11] : memref<8x16xf32, #tpu.memory_space<smem>>
    %727 = vector.broadcast %726 : f32 to vector<8x16xf32>
    %728 = arith.mulf %337, %727 : vector<8x16xf32>
    %c1_333 = arith.constant 1 : index
    %c11_334 = arith.constant 11 : index
    %729 = memref.load %arg9[%c1_333, %c11_334] : memref<8x16xf32, #tpu.memory_space<smem>>
    %730 = vector.broadcast %729 : f32 to vector<8x16xf32>
    %731 = arith.mulf %339, %730 : vector<8x16xf32>
    %732 = arith.addf %728, %731 : vector<8x16xf32>
    %c2_335 = arith.constant 2 : index
    %c11_336 = arith.constant 11 : index
    %733 = memref.load %arg9[%c2_335, %c11_336] : memref<8x16xf32, #tpu.memory_space<smem>>
    %734 = vector.broadcast %733 : f32 to vector<8x16xf32>
    %735 = arith.mulf %341, %734 : vector<8x16xf32>
    %736 = arith.addf %732, %735 : vector<8x16xf32>
    %c3_337 = arith.constant 3 : index
    %c11_338 = arith.constant 11 : index
    %737 = memref.load %arg9[%c3_337, %c11_338] : memref<8x16xf32, #tpu.memory_space<smem>>
    %738 = vector.broadcast %737 : f32 to vector<8x16xf32>
    %739 = arith.mulf %343, %738 : vector<8x16xf32>
    %740 = arith.addf %736, %739 : vector<8x16xf32>
    %c4_339 = arith.constant 4 : index
    %c11_340 = arith.constant 11 : index
    %741 = memref.load %arg9[%c4_339, %c11_340] : memref<8x16xf32, #tpu.memory_space<smem>>
    %742 = vector.broadcast %741 : f32 to vector<8x16xf32>
    %743 = arith.mulf %345, %742 : vector<8x16xf32>
    %744 = arith.addf %740, %743 : vector<8x16xf32>
    %c5_341 = arith.constant 5 : index
    %c11_342 = arith.constant 11 : index
    %745 = memref.load %arg9[%c5_341, %c11_342] : memref<8x16xf32, #tpu.memory_space<smem>>
    %746 = vector.broadcast %745 : f32 to vector<8x16xf32>
    %747 = arith.mulf %347, %746 : vector<8x16xf32>
    %748 = arith.addf %744, %747 : vector<8x16xf32>
    %c6_343 = arith.constant 6 : index
    %c11_344 = arith.constant 11 : index
    %749 = memref.load %arg9[%c6_343, %c11_344] : memref<8x16xf32, #tpu.memory_space<smem>>
    %750 = vector.broadcast %749 : f32 to vector<8x16xf32>
    %751 = arith.mulf %349, %750 : vector<8x16xf32>
    %752 = arith.addf %748, %751 : vector<8x16xf32>
    %c7_345 = arith.constant 7 : index
    %c11_346 = arith.constant 11 : index
    %753 = memref.load %arg9[%c7_345, %c11_346] : memref<8x16xf32, #tpu.memory_space<smem>>
    %754 = vector.broadcast %753 : f32 to vector<8x16xf32>
    %755 = arith.mulf %351, %754 : vector<8x16xf32>
    %756 = arith.addf %752, %755 : vector<8x16xf32>
    %c11_347 = arith.constant 11 : index
    %757 = memref.load %arg10[%c11_347] : memref<16xf32, #tpu.memory_space<smem>>
    %758 = vector.broadcast %757 : f32 to vector<8x16xf32>
    %759 = arith.addf %756, %758 : vector<8x16xf32>
    %c0_348 = arith.constant 0 : index
    %c12 = arith.constant 12 : index
    %760 = memref.load %arg9[%c0_348, %c12] : memref<8x16xf32, #tpu.memory_space<smem>>
    %761 = vector.broadcast %760 : f32 to vector<8x16xf32>
    %762 = arith.mulf %337, %761 : vector<8x16xf32>
    %c1_349 = arith.constant 1 : index
    %c12_350 = arith.constant 12 : index
    %763 = memref.load %arg9[%c1_349, %c12_350] : memref<8x16xf32, #tpu.memory_space<smem>>
    %764 = vector.broadcast %763 : f32 to vector<8x16xf32>
    %765 = arith.mulf %339, %764 : vector<8x16xf32>
    %766 = arith.addf %762, %765 : vector<8x16xf32>
    %c2_351 = arith.constant 2 : index
    %c12_352 = arith.constant 12 : index
    %767 = memref.load %arg9[%c2_351, %c12_352] : memref<8x16xf32, #tpu.memory_space<smem>>
    %768 = vector.broadcast %767 : f32 to vector<8x16xf32>
    %769 = arith.mulf %341, %768 : vector<8x16xf32>
    %770 = arith.addf %766, %769 : vector<8x16xf32>
    %c3_353 = arith.constant 3 : index
    %c12_354 = arith.constant 12 : index
    %771 = memref.load %arg9[%c3_353, %c12_354] : memref<8x16xf32, #tpu.memory_space<smem>>
    %772 = vector.broadcast %771 : f32 to vector<8x16xf32>
    %773 = arith.mulf %343, %772 : vector<8x16xf32>
    %774 = arith.addf %770, %773 : vector<8x16xf32>
    %c4_355 = arith.constant 4 : index
    %c12_356 = arith.constant 12 : index
    %775 = memref.load %arg9[%c4_355, %c12_356] : memref<8x16xf32, #tpu.memory_space<smem>>
    %776 = vector.broadcast %775 : f32 to vector<8x16xf32>
    %777 = arith.mulf %345, %776 : vector<8x16xf32>
    %778 = arith.addf %774, %777 : vector<8x16xf32>
    %c5_357 = arith.constant 5 : index
    %c12_358 = arith.constant 12 : index
    %779 = memref.load %arg9[%c5_357, %c12_358] : memref<8x16xf32, #tpu.memory_space<smem>>
    %780 = vector.broadcast %779 : f32 to vector<8x16xf32>
    %781 = arith.mulf %347, %780 : vector<8x16xf32>
    %782 = arith.addf %778, %781 : vector<8x16xf32>
    %c6_359 = arith.constant 6 : index
    %c12_360 = arith.constant 12 : index
    %783 = memref.load %arg9[%c6_359, %c12_360] : memref<8x16xf32, #tpu.memory_space<smem>>
    %784 = vector.broadcast %783 : f32 to vector<8x16xf32>
    %785 = arith.mulf %349, %784 : vector<8x16xf32>
    %786 = arith.addf %782, %785 : vector<8x16xf32>
    %c7_361 = arith.constant 7 : index
    %c12_362 = arith.constant 12 : index
    %787 = memref.load %arg9[%c7_361, %c12_362] : memref<8x16xf32, #tpu.memory_space<smem>>
    %788 = vector.broadcast %787 : f32 to vector<8x16xf32>
    %789 = arith.mulf %351, %788 : vector<8x16xf32>
    %790 = arith.addf %786, %789 : vector<8x16xf32>
    %c12_363 = arith.constant 12 : index
    %791 = memref.load %arg10[%c12_363] : memref<16xf32, #tpu.memory_space<smem>>
    %792 = vector.broadcast %791 : f32 to vector<8x16xf32>
    %793 = arith.addf %790, %792 : vector<8x16xf32>
    %c0_364 = arith.constant 0 : index
    %c13 = arith.constant 13 : index
    %794 = memref.load %arg9[%c0_364, %c13] : memref<8x16xf32, #tpu.memory_space<smem>>
    %795 = vector.broadcast %794 : f32 to vector<8x16xf32>
    %796 = arith.mulf %337, %795 : vector<8x16xf32>
    %c1_365 = arith.constant 1 : index
    %c13_366 = arith.constant 13 : index
    %797 = memref.load %arg9[%c1_365, %c13_366] : memref<8x16xf32, #tpu.memory_space<smem>>
    %798 = vector.broadcast %797 : f32 to vector<8x16xf32>
    %799 = arith.mulf %339, %798 : vector<8x16xf32>
    %800 = arith.addf %796, %799 : vector<8x16xf32>
    %c2_367 = arith.constant 2 : index
    %c13_368 = arith.constant 13 : index
    %801 = memref.load %arg9[%c2_367, %c13_368] : memref<8x16xf32, #tpu.memory_space<smem>>
    %802 = vector.broadcast %801 : f32 to vector<8x16xf32>
    %803 = arith.mulf %341, %802 : vector<8x16xf32>
    %804 = arith.addf %800, %803 : vector<8x16xf32>
    %c3_369 = arith.constant 3 : index
    %c13_370 = arith.constant 13 : index
    %805 = memref.load %arg9[%c3_369, %c13_370] : memref<8x16xf32, #tpu.memory_space<smem>>
    %806 = vector.broadcast %805 : f32 to vector<8x16xf32>
    %807 = arith.mulf %343, %806 : vector<8x16xf32>
    %808 = arith.addf %804, %807 : vector<8x16xf32>
    %c4_371 = arith.constant 4 : index
    %c13_372 = arith.constant 13 : index
    %809 = memref.load %arg9[%c4_371, %c13_372] : memref<8x16xf32, #tpu.memory_space<smem>>
    %810 = vector.broadcast %809 : f32 to vector<8x16xf32>
    %811 = arith.mulf %345, %810 : vector<8x16xf32>
    %812 = arith.addf %808, %811 : vector<8x16xf32>
    %c5_373 = arith.constant 5 : index
    %c13_374 = arith.constant 13 : index
    %813 = memref.load %arg9[%c5_373, %c13_374] : memref<8x16xf32, #tpu.memory_space<smem>>
    %814 = vector.broadcast %813 : f32 to vector<8x16xf32>
    %815 = arith.mulf %347, %814 : vector<8x16xf32>
    %816 = arith.addf %812, %815 : vector<8x16xf32>
    %c6_375 = arith.constant 6 : index
    %c13_376 = arith.constant 13 : index
    %817 = memref.load %arg9[%c6_375, %c13_376] : memref<8x16xf32, #tpu.memory_space<smem>>
    %818 = vector.broadcast %817 : f32 to vector<8x16xf32>
    %819 = arith.mulf %349, %818 : vector<8x16xf32>
    %820 = arith.addf %816, %819 : vector<8x16xf32>
    %c7_377 = arith.constant 7 : index
    %c13_378 = arith.constant 13 : index
    %821 = memref.load %arg9[%c7_377, %c13_378] : memref<8x16xf32, #tpu.memory_space<smem>>
    %822 = vector.broadcast %821 : f32 to vector<8x16xf32>
    %823 = arith.mulf %351, %822 : vector<8x16xf32>
    %824 = arith.addf %820, %823 : vector<8x16xf32>
    %c13_379 = arith.constant 13 : index
    %825 = memref.load %arg10[%c13_379] : memref<16xf32, #tpu.memory_space<smem>>
    %826 = vector.broadcast %825 : f32 to vector<8x16xf32>
    %827 = arith.addf %824, %826 : vector<8x16xf32>
    %c0_380 = arith.constant 0 : index
    %c14 = arith.constant 14 : index
    %828 = memref.load %arg9[%c0_380, %c14] : memref<8x16xf32, #tpu.memory_space<smem>>
    %829 = vector.broadcast %828 : f32 to vector<8x16xf32>
    %830 = arith.mulf %337, %829 : vector<8x16xf32>
    %c1_381 = arith.constant 1 : index
    %c14_382 = arith.constant 14 : index
    %831 = memref.load %arg9[%c1_381, %c14_382] : memref<8x16xf32, #tpu.memory_space<smem>>
    %832 = vector.broadcast %831 : f32 to vector<8x16xf32>
    %833 = arith.mulf %339, %832 : vector<8x16xf32>
    %834 = arith.addf %830, %833 : vector<8x16xf32>
    %c2_383 = arith.constant 2 : index
    %c14_384 = arith.constant 14 : index
    %835 = memref.load %arg9[%c2_383, %c14_384] : memref<8x16xf32, #tpu.memory_space<smem>>
    %836 = vector.broadcast %835 : f32 to vector<8x16xf32>
    %837 = arith.mulf %341, %836 : vector<8x16xf32>
    %838 = arith.addf %834, %837 : vector<8x16xf32>
    %c3_385 = arith.constant 3 : index
    %c14_386 = arith.constant 14 : index
    %839 = memref.load %arg9[%c3_385, %c14_386] : memref<8x16xf32, #tpu.memory_space<smem>>
    %840 = vector.broadcast %839 : f32 to vector<8x16xf32>
    %841 = arith.mulf %343, %840 : vector<8x16xf32>
    %842 = arith.addf %838, %841 : vector<8x16xf32>
    %c4_387 = arith.constant 4 : index
    %c14_388 = arith.constant 14 : index
    %843 = memref.load %arg9[%c4_387, %c14_388] : memref<8x16xf32, #tpu.memory_space<smem>>
    %844 = vector.broadcast %843 : f32 to vector<8x16xf32>
    %845 = arith.mulf %345, %844 : vector<8x16xf32>
    %846 = arith.addf %842, %845 : vector<8x16xf32>
    %c5_389 = arith.constant 5 : index
    %c14_390 = arith.constant 14 : index
    %847 = memref.load %arg9[%c5_389, %c14_390] : memref<8x16xf32, #tpu.memory_space<smem>>
    %848 = vector.broadcast %847 : f32 to vector<8x16xf32>
    %849 = arith.mulf %347, %848 : vector<8x16xf32>
    %850 = arith.addf %846, %849 : vector<8x16xf32>
    %c6_391 = arith.constant 6 : index
    %c14_392 = arith.constant 14 : index
    %851 = memref.load %arg9[%c6_391, %c14_392] : memref<8x16xf32, #tpu.memory_space<smem>>
    %852 = vector.broadcast %851 : f32 to vector<8x16xf32>
    %853 = arith.mulf %349, %852 : vector<8x16xf32>
    %854 = arith.addf %850, %853 : vector<8x16xf32>
    %c7_393 = arith.constant 7 : index
    %c14_394 = arith.constant 14 : index
    %855 = memref.load %arg9[%c7_393, %c14_394] : memref<8x16xf32, #tpu.memory_space<smem>>
    %856 = vector.broadcast %855 : f32 to vector<8x16xf32>
    %857 = arith.mulf %351, %856 : vector<8x16xf32>
    %858 = arith.addf %854, %857 : vector<8x16xf32>
    %c14_395 = arith.constant 14 : index
    %859 = memref.load %arg10[%c14_395] : memref<16xf32, #tpu.memory_space<smem>>
    %860 = vector.broadcast %859 : f32 to vector<8x16xf32>
    %861 = arith.addf %858, %860 : vector<8x16xf32>
    %c0_396 = arith.constant 0 : index
    %c15 = arith.constant 15 : index
    %862 = memref.load %arg9[%c0_396, %c15] : memref<8x16xf32, #tpu.memory_space<smem>>
    %863 = vector.broadcast %862 : f32 to vector<8x16xf32>
    %864 = arith.mulf %337, %863 : vector<8x16xf32>
    %c1_397 = arith.constant 1 : index
    %c15_398 = arith.constant 15 : index
    %865 = memref.load %arg9[%c1_397, %c15_398] : memref<8x16xf32, #tpu.memory_space<smem>>
    %866 = vector.broadcast %865 : f32 to vector<8x16xf32>
    %867 = arith.mulf %339, %866 : vector<8x16xf32>
    %868 = arith.addf %864, %867 : vector<8x16xf32>
    %c2_399 = arith.constant 2 : index
    %c15_400 = arith.constant 15 : index
    %869 = memref.load %arg9[%c2_399, %c15_400] : memref<8x16xf32, #tpu.memory_space<smem>>
    %870 = vector.broadcast %869 : f32 to vector<8x16xf32>
    %871 = arith.mulf %341, %870 : vector<8x16xf32>
    %872 = arith.addf %868, %871 : vector<8x16xf32>
    %c3_401 = arith.constant 3 : index
    %c15_402 = arith.constant 15 : index
    %873 = memref.load %arg9[%c3_401, %c15_402] : memref<8x16xf32, #tpu.memory_space<smem>>
    %874 = vector.broadcast %873 : f32 to vector<8x16xf32>
    %875 = arith.mulf %343, %874 : vector<8x16xf32>
    %876 = arith.addf %872, %875 : vector<8x16xf32>
    %c4_403 = arith.constant 4 : index
    %c15_404 = arith.constant 15 : index
    %877 = memref.load %arg9[%c4_403, %c15_404] : memref<8x16xf32, #tpu.memory_space<smem>>
    %878 = vector.broadcast %877 : f32 to vector<8x16xf32>
    %879 = arith.mulf %345, %878 : vector<8x16xf32>
    %880 = arith.addf %876, %879 : vector<8x16xf32>
    %c5_405 = arith.constant 5 : index
    %c15_406 = arith.constant 15 : index
    %881 = memref.load %arg9[%c5_405, %c15_406] : memref<8x16xf32, #tpu.memory_space<smem>>
    %882 = vector.broadcast %881 : f32 to vector<8x16xf32>
    %883 = arith.mulf %347, %882 : vector<8x16xf32>
    %884 = arith.addf %880, %883 : vector<8x16xf32>
    %c6_407 = arith.constant 6 : index
    %c15_408 = arith.constant 15 : index
    %885 = memref.load %arg9[%c6_407, %c15_408] : memref<8x16xf32, #tpu.memory_space<smem>>
    %886 = vector.broadcast %885 : f32 to vector<8x16xf32>
    %887 = arith.mulf %349, %886 : vector<8x16xf32>
    %888 = arith.addf %884, %887 : vector<8x16xf32>
    %c7_409 = arith.constant 7 : index
    %c15_410 = arith.constant 15 : index
    %889 = memref.load %arg9[%c7_409, %c15_410] : memref<8x16xf32, #tpu.memory_space<smem>>
    %890 = vector.broadcast %889 : f32 to vector<8x16xf32>
    %891 = arith.mulf %351, %890 : vector<8x16xf32>
    %892 = arith.addf %888, %891 : vector<8x16xf32>
    %c15_411 = arith.constant 15 : index
    %893 = memref.load %arg10[%c15_411] : memref<16xf32, #tpu.memory_space<smem>>
    %894 = vector.broadcast %893 : f32 to vector<8x16xf32>
    %895 = arith.addf %892, %894 : vector<8x16xf32>
    %896 = vector.shape_cast %385 : vector<8x16xf32> to vector<1x8x16xf32>
    %897 = vector.shape_cast %419 : vector<8x16xf32> to vector<1x8x16xf32>
    %898 = vector.shape_cast %453 : vector<8x16xf32> to vector<1x8x16xf32>
    %899 = vector.shape_cast %487 : vector<8x16xf32> to vector<1x8x16xf32>
    %900 = vector.shape_cast %521 : vector<8x16xf32> to vector<1x8x16xf32>
    %901 = vector.shape_cast %555 : vector<8x16xf32> to vector<1x8x16xf32>
    %902 = vector.shape_cast %589 : vector<8x16xf32> to vector<1x8x16xf32>
    %903 = vector.shape_cast %623 : vector<8x16xf32> to vector<1x8x16xf32>
    %904 = vector.shape_cast %657 : vector<8x16xf32> to vector<1x8x16xf32>
    %905 = vector.shape_cast %691 : vector<8x16xf32> to vector<1x8x16xf32>
    %906 = vector.shape_cast %725 : vector<8x16xf32> to vector<1x8x16xf32>
    %907 = vector.shape_cast %759 : vector<8x16xf32> to vector<1x8x16xf32>
    %908 = vector.shape_cast %793 : vector<8x16xf32> to vector<1x8x16xf32>
    %909 = vector.shape_cast %827 : vector<8x16xf32> to vector<1x8x16xf32>
    %910 = vector.shape_cast %861 : vector<8x16xf32> to vector<1x8x16xf32>
    %911 = vector.shape_cast %895 : vector<8x16xf32> to vector<1x8x16xf32>
    %912 = tpu.concatenate %896, %897, %898, %899, %900, %901, %902, %903, %904, %905, %906, %907, %908, %909, %910, %911 in 0 : vector<1x8x16xf32>, vector<1x8x16xf32>, vector<1x8x16xf32>, vector<1x8x16xf32>, vector<1x8x16xf32>, vector<1x8x16xf32>, vector<1x8x16xf32>, vector<1x8x16xf32>, vector<1x8x16xf32>, vector<1x8x16xf32>, vector<1x8x16xf32>, vector<1x8x16xf32>, vector<1x8x16xf32>, vector<1x8x16xf32>, vector<1x8x16xf32>, vector<1x8x16xf32> -> vector<16x8x16xf32>
    %cst_412 = arith.constant 0.000000e+00 : f32
    %913 = vector.broadcast %cst_412 : f32 to vector<16x8x16xf32>
    %914 = arith.maximumf %912, %913 : vector<16x8x16xf32>
    %cst_413 = arith.constant dense<0xFF800000> : vector<16x16xf32>
    %915 = vector.multi_reduction <maximumf>, %914, %cst_413 [1] : vector<16x8x16xf32> to vector<16x16xf32>
    %c0_414 = arith.constant 0 : index
    %c0_415 = arith.constant 0 : index
    %c0_416 = arith.constant 0 : index
    %916 = vector.load %arg11[%c0_414, %c0_415, %c0_416] : memref<1x16x16xf32, #tpu.memory_space<vmem>>, vector<1x16x16xf32>
    %917 = vector.shape_cast %916 : vector<1x16x16xf32> to vector<16x16xf32>
    %918 = arith.addf %917, %915 : vector<16x16xf32>
    %c0_417 = arith.constant 0 : index
    %c0_418 = arith.constant 0 : index
    %c0_419 = arith.constant 0 : index
    %919 = vector.load %arg11[%c0_417, %c0_418, %c0_419] : memref<1x16x16xf32, #tpu.memory_space<vmem>>, vector<1x16x16xf32>
    %920 = vector.shape_cast %919 : vector<1x16x16xf32> to vector<16x16xf32>
    %921 = vector.shape_cast %918 : vector<16x16xf32> to vector<1x16x16xf32>
    tpu.vector_store %arg11[%c0_417, %c0_418, %c0_419], %921 {strides = array<i32>} : memref<1x16x16xf32, #tpu.memory_space<vmem>>, vector<1x16x16xf32>,
    return
  }
  func.func @transform_0(%arg0: i32, %arg1: i32, %arg2: i32) -> (i32, i32, i32, i32, i32) {
    %c0_i32 = arith.constant 0 : i32
    %c0_i32_0 = arith.constant 0 : i32
    %c0_i32_1 = arith.constant 0 : i32
    return %arg0, %arg2, %c0_i32, %c0_i32_0, %arg1 : i32, i32, i32, i32, i32
  }
  func.func @transform_1(%arg0: i32, %arg1: i32, %arg2: i32) -> (i32, i32, i32, i32, i32) {
    %c0_i32 = arith.constant 0 : i32
    %c0_i32_0 = arith.constant 0 : i32
    %c0_i32_1 = arith.constant 0 : i32
    return %arg0, %arg2, %c0_i32, %c0_i32_0, %arg1 : i32, i32, i32, i32, i32
  }
  func.func @transform_2(%arg0: i32, %arg1: i32, %arg2: i32) -> (i32, i32) {
    %c0_i32 = arith.constant 0 : i32
    %c0_i32_0 = arith.constant 0 : i32
    %c0_i32_1 = arith.constant 0 : i32
    return %c0_i32, %c0_i32_0 : i32, i32
  }
  func.func @transform_3(%arg0: i32, %arg1: i32, %arg2: i32) -> i32 {
    %c0_i32 = arith.constant 0 : i32
    %c0_i32_0 = arith.constant 0 : i32
    return %c0_i32 : i32
  }
  func.func @transform_4(%arg0: i32, %arg1: i32, %arg2: i32) -> (i32, i32) {
    %c0_i32 = arith.constant 0 : i32
    %c0_i32_0 = arith.constant 0 : i32
    %c0_i32_1 = arith.constant 0 : i32
    return %c0_i32, %c0_i32_0 : i32, i32
  }
  func.func @transform_5(%arg0: i32, %arg1: i32, %arg2: i32) -> i32 {
    %c0_i32 = arith.constant 0 : i32
    %c0_i32_0 = arith.constant 0 : i32
    return %c0_i32 : i32
  }
  func.func @transform_6(%arg0: i32, %arg1: i32, %arg2: i32) -> (i32, i32) {
    %c0_i32 = arith.constant 0 : i32
    %c0_i32_0 = arith.constant 0 : i32
    %c0_i32_1 = arith.constant 0 : i32
    return %c0_i32, %c0_i32_0 : i32, i32
  }
  func.func @transform_7(%arg0: i32, %arg1: i32, %arg2: i32) -> i32 {
    %c0_i32 = arith.constant 0 : i32
    %c0_i32_0 = arith.constant 0 : i32
    return %c0_i32 : i32
  }
  func.func @transform_8(%arg0: i32, %arg1: i32, %arg2: i32) -> (i32, i32, i32) {
    %c0_i32 = arith.constant 0 : i32
    %c0_i32_0 = arith.constant 0 : i32
    return %arg0, %c0_i32, %arg1 : i32, i32, i32
  }
}

</mosaic_0001>

<bundles_post_ra>
// kernel: tpu_custom_call.1
= control target key start
LH: loop header
LB: loop body
LE: loop exit
PB: predicated region body
PF: predicated region fallthrough
CT: control target
= control target key end

     0   :  { %s3872_s0 = inlined_call_operand.hbm [shape: bf16[4,3,4,8,16], index: 0, kind: input, shape index: {}]   ;;  %s3873_s1 = inlined_call_operand.hbm [shape: bf16[4,3,4,8,16], index: 1, kind: input, shape index: {}]   ;;  %s3874_s2 = inlined_call_operand.hbm [shape: f32[4,8], index: 2, kind: input, shape index: {}]   ;;  %s3875_s3 = inlined_call_operand.vmem [shape: f32[8], index: 3, kind: input, shape index: {}]   ;;  %s3876_s4 = inlined_call_operand.hbm [shape: f32[4,8], index: 4, kind: input, shape index: {}]   ;;  %s3877_s5 = inlined_call_operand.vmem [shape: f32[8], index: 5, kind: input, shape index: {}]   ;;  %s3878_s6 = inlined_call_operand.hbm [shape: f32[8,16], index: 6, kind: input, shape index: {}]   ;;  %s3879_s7 = inlined_call_operand.vmem [shape: f32[16], index: 7, kind: input, shape index: {}]   ;;  %s3880_s8 = inlined_call_operand.hbm [shape: f32[4,16,16], index: 8, kind: output, shape index: {}]  }
   0x1   :  { %3902 = sst [smem:[#allocation76_spill]] %s3872_s0 }
   0x2   :  { %3903 = sst [smem:[#allocation77_spill]] %s3873_s1 }
   0x3   :  { %3904 = sst [smem:[#allocation78_spill]] %s3874_s2 }
   0x4   :  { %3905 = sst [smem:[#allocation79_spill]] %s3875_s3 }
   0x5   :  { %3906 = sst [smem:[#allocation80_spill]] %s3876_s4 }
   0x6   :  { %3907 = sst [smem:[#allocation81_spill]] %s3877_s5 }
   0x7   :  { %3908 = sst [smem:[#allocation82_spill]] %s3878_s6 }
   0x8   :  { %3909 = sst [smem:[#allocation83_spill]] %s3879_s7 }
   0x9   :  { %3910 = sst [smem:[#allocation84_spill]] %s3880_s8 }
   0xa   :  { %13 = vsyncpa [#allocation3], 0 }
   0xb   :  { %15 = vsyncpa [#allocation3 + $0x1], 0 }
   0xc   :  { %16 = vsyncpa [#allocation8], 0 }
   0xd   :  { %18 = vsyncpa [#allocation8 + $0x1], 0 }
   0xe   :  { %19 = vsyncpa [#allocation5], 0 }
   0xf   :  { %20 = vsyncpa [#allocation6], 0 }
  0x10   :  { %21 = vsyncpa [#allocation12], 0 }
  0x11   :  { %22 = vsyncpa [#allocation14], 0 }
  0x12   :  { %23 = vsyncpa [#allocation4], 0 }
  0x13   :  { %25 = vsyncpa [#allocation4 + $0x1], 0  ;;  %s2534_s27 = smov 0   ;;  %s2536_s28 = smov 0  }
  0x14   :  { %s2538_s29 = smov 0   ;;  %s2540_s30 = smov 0  }
  0x15   :  { %s2542_s9 = smov 0   ;;  %s2544_s10 = smov 0  }
  0x16   :  { %s2546_s11 = smov 0   ;;  %s2548_s12 = smov 0  }
  0x17   :  { %s2550_s13 = smov 0   ;;  %s2552_s14 = smov 0  }
  0x18   :  { %s2554_s15 = smov 0  }
  0x19 LB: > { %3911 = sst [smem:[#allocation27_spill]] %s2436_s27  ;;  %s1732_s19 = sadd.s32 4294967295, %s2476_s15   ;;  %s2476_s15 = sphi %s2554_s15, %s31_s15   ;;  %s2472_s14 = sphi %s2552_s14, %s4067_s14   ;;  %s2468_s13 = sphi %s2550_s13, %s4066_s13   ;;  %s2464_s12 = sphi %s2548_s12, %s4065_s12   ;;  %s2460_s11 = sphi %s2546_s11, %s4064_s11   ;;  %s2456_s10 = sphi %s2544_s10, %s4063_s10   ;;  %s2452_s9 = sphi %s2542_s9, %s4062_s9   ;;  %s2448_s30 = sphi %s2540_s30, %s4061_s30   ;;  %s2444_s29 = sphi %s2538_s29, %s4060_s29   ;;  %s2440_s28 = sphi %s2536_s28, %s4059_s28   ;;  %s2436_s27 = sphi %s2534_s27, %s4058_s27  }
  0x1a   : > { %3912 = sst [smem:[#allocation28_spill]] %s2440_s28  ;;  %p1734_p0 = scmp.ge.s32.totalorder %s2476_s15, 1 }
  0x1b   : > { %3913 = sst [smem:[#allocation29_spill]] %s2444_s29  ;;  %p2594_p1 = scmp.eq.s32.totalorder %s1732_s19, 0 }
  0x1c   : > { %3914 = sst [smem:[#allocation30_spill]] %s2452_s9  ;;  %p2598_p2 = scmp.eq.s32.totalorder %s1732_s19, 11 }
  0x1d   : > { %3915 = sst [smem:[#allocation31_spill]] %s2456_s10  ;;  %p269_p3 = scmp.lt.s32.totalorder %s2476_s15, 13 }
  0x1e   : > { %3916 = sst [smem:[#allocation32_spill]] %s2464_s12  ;;  %s2478_s23 = smov [#allocation11]  }
  0x1f   : > { %3917 = sst [smem:[#allocation33_spill]] %s2468_s13  ;;  %p2603_p4 = pnand %p1734_p0, %p269_p3 }
  0x20   : > { %3918 = sst [smem:[#allocation34_spill]] %s2472_s14  ;;  %s2479_s24 = smov [#allocation13]  }
  0x21   : > { %3919 = sst [smem:[#allocation35_spill]] %s2476_s15  ;;  %p2033_p5 = pneg %p2603_p4 }
  0x22   : > { %s3920_s4 = sld [smem:[#allocation80_spill]]  ;;  %s43_s8 = sadd.s32 1, %s2468_s13 }
  0x23   : > { %s3924_s5 = sld [smem:[#allocation81_spill]]  ;;  %p2614_p6 = pnand %p2033_p5, %p2594_p1 }
  0x24   : > { %s3926_s2 = sld [smem:[#allocation78_spill]]  ;;  %s50_s16 = sadd.s32 1, %s2472_s14 }
  0x25   : > { %s3927_s3 = sld [smem:[#allocation79_spill]]  ;;  %p44_p7 = scmp.ge.s32.totalorder %s43_s8, 3 }
  0x26   : > { %s3928_s6 = sld [smem:[#allocation82_spill]]  ;;  %s61_s17 = sadd.s32 1, %s2456_s10 }
  0x27   : > { %s3929_s7 = sld [smem:[#allocation83_spill]]  ;;  %p68_p8 = scmp.ne.s32.totalorder %s2456_s10, %s2452_s9 }
  0x28   : > { %s301_s18 = sshll.u32 %s3920_s4, 4  ;;  %s2480_s4 = smov [#allocation9]   ;;  %s302_s18 = int_to_ptr.hbm [resolvable:$true] %s301_s18 }
  0x29   : > { %s311_s25 = sshll.u32 %s3924_s5, 4  ;;  %p69_p9 = scmp.eq.s32.totalorder %s2476_s15, 0  ;;  %s312_s25 = int_to_ptr.vmem [resolvable:$true] %s311_s25 }
  0x2a   : > { %s281_s19 = sshll.u32 %s3926_s2, 4  ;;  %s2483_s2 = smov [#allocation16]   ;;  %s282_s19 = int_to_ptr.hbm [resolvable:$true] %s281_s19 }
  0x2b   : > { %2042 = dma.hbm_to_smem (!%p2614_p6), %s302_s18, 64, %s2478_s23, [#allocation12]  }
  0x2c   : > { %2045 = dma.vmem_to_smem (!%p2614_p6), %s312_s25, 16, %s2479_s24, [#allocation14]  }
  0x2d   : > { %2036 = dma.hbm_to_smem (!%p2614_p6), %s282_s19, 64, %s2480_s4, [#allocation5]  }
  0x2e   : > { %s291_s5 = sshll.u32 %s3927_s3, 4  ;;  %s321_s18 = sshll.u32 %s3928_s6, 4  ;;  %s292_s5 = int_to_ptr.vmem [resolvable:$true] %s291_s5  ;;  %s322_s18 = int_to_ptr.hbm [resolvable:$true] %s321_s18 }
  0x2f   : > { %s2481_s23 = smov [#allocation10]   ;;  %s2482_s4 = smov [#allocation15]  }
  0x30   : > { %2039 = dma.vmem_to_smem (!%p2614_p6), %s292_s5, 16, %s2481_s23, [#allocation6]  }
  0x31   : > { %2048 = dma.hbm_to_smem (!%p2614_p6), %s322_s18, 128, %s2482_s4, [#allocation12]  }
  0x32   : > { %s331_s24 = sshll.u32 %s3929_s7, 4  ;;  %s1733_s5 = sadd.s32 4294967294, %s2476_s15   ;;  %s332_s24 = int_to_ptr.vmem [resolvable:$true] %s331_s24 }
  0x33   : > { %2051 = dma.vmem_to_smem (!%p2614_p6), %s332_s24, 16, %s2483_s2, [#allocation14]  }
  0x34   : > { %s4069_s8 = smov (%p44_p7, %s43_s8), 0  ;;  %s4071_s16 = smov (!%p44_p7, %s50_s16), %s2472_s14 }
  0x35   : > { %3930 = sst [smem:[#allocation36_spill]] %s4069_s8  ;;  %s55_s26 = ssub.s32 %s2468_s13, %s4069_s8 }
  0x36   : > { %p2654_p10 = por %p69_p9, %p68_p8  ;;  %p52_p11 = scmp.ge.s32.totalorder %s4071_s16, 4 }
  0x37   : > { %p74_p12 = scmp.ne.s32.totalorder %s2452_s9, %s2448_s30  ;;  %s245_s23 = sadd.s32 1, %s2444_s29 }
  0x38   : > { %p255_p13 = scmp.ne.s32.totalorder %s2444_s29, %s2440_s28  ;;  %s4073_s16 = smov (%p52_p11, %s4071_s16), 0 }
  0x39   : > { %3932 = sst [smem:[#allocation37_spill]] %s4073_s16  ;;  %p2667_p0 = por %p2594_p1, %p74_p12 }
  0x3a   : > { %p2673_p3 = por %p2598_p2, %p255_p13  ;;  %s54_s19 = ssub.s32 %s2472_s14, %s4073_s16 }
  0x3b   : > { %p261_p5 = scmp.ne.s32.totalorder %s2440_s28, %s2436_s27  ;;  %s56_s30 = sor.u32 %s55_s26, %s54_s19 }
  0x3c   : > { %s3934_s25 = scalar_select %p2673_p3, 1, 0 }
  0x3d   : > { %p243_p6 = scmp.eq.s32.totalorder %s54_s19, 0  ;;  %p59_p7 = scmp.eq.s32.totalorder %s56_s30, 0 }
  0x3e   : > { %3935 = sst [smem:[#allocation38_spill]] %s3934_s25  ;;  %p262_p8 = scmp.eq.s32.totalorder %s1733_s5, 11 }
  0x3f   : > { %s2682_s24 = scalar_select %p243_p6, %s2444_s29, %s245_s23  }
  0x40   : > { %s2685_s2 = scalar_select %p59_p7, %s2456_s10, %s61_s17  }
  0x41   : > { %3936 = sst [smem:[#allocation39_spill]] %s2682_s24  ;;  %p2687_p9 = por %p262_p8, %p261_p5 }
  0x42   : > { %3937 = sst [smem:[#allocation40_spill]] %s2685_s2  ;;  %p2069_p11 = scmp.lt.s32.totalorder %s2476_s15, 12 }
  0x43   : > { %s3938_s3 = scalar_select %p2687_p9, 1, 0 }
  0x44   : > { %s2693_s21 = sand.u32 1, %s2456_s10   ;;  %s1743_s6 = sshll.u32 %s2468_s13, 2 }
  0x45   : > { %3939 = sst [smem:[#allocation41_spill]] %s3938_s3  ;;  %s1742_s7 = sshll.u32 %s2693_s21, 4 }
  0x46   : > { %s2001_s16 = smul.u32 12, %s2472_s14  ;;  %s346_s26 = scalar_lea.vmem [#allocation2], %s1742_s7 }
  0x47   : > { %s357_s19 = sshll.u32 %s346_s26, 4  ;;  %p2700_p2 = pnand %p2069_p11, %p2654_p10  ;;  %s358_s19 = int_to_ptr.vmem [resolvable:$true] %s357_s19 }
  0x48   : > { %s352_s17 = sadd.s32 %s2001_s16, %s1743_s6  ;;  %s3941_s0 = sld [smem:[#allocation76_spill]] }
  0x49   : > { %s1744_s23 = sshll.u32 %s352_s17, 2  ;;  %s343_s14 = scalar_lea.sflag [#allocation3], %s2693_s21 }
  0x4a   : > { %s2484_s10 = smov 64   ;;  %s2485_s26 = smov 4  }
  0x4b   : > { %s3942_s1 = sld [smem:[#allocation77_spill]]  ;;  %s371_s16 = scalar_lea.vmem [#allocation7], %s1742_s7 }
  0x4c   : > { %s382_s3 = sshll.u32 %s371_s16, 4  ;;  %s368_s17 = scalar_lea.sflag [#allocation8], %s2693_s21  ;;  %s383_s3 = int_to_ptr.vmem [resolvable:$true] %s382_s3 }
  0x4e   : > { %s354_s2 = scalar_lea.hbm %s3941_s0, %s1744_s23 }
  0x4f   : > { %s355_s13 = sshll.u32 %s354_s2, 4  ;;  %394 = sbr.rel (%p2603_p4) target bundleno = 484 (0x1e4), region = 52  ;;  %s356_s13 = int_to_ptr.hbm [resolvable:$true] %s355_s13 }
  0x50   : > { %2055 = dma.hbm_to_vmem [thread:$0]  (!%p2700_p2), %s356_s13, 256, %s358_s19, %s343_s14, %s2484_s10, %s2484_s10, %s2485_s26  }
  0x51   : > { %s379_s29 = scalar_lea.hbm %s3942_s1, %s1744_s23 }
  0x52   : > { %s380_s6 = sshll.u32 %s379_s29, 4  ;;  %s381_s6 = int_to_ptr.hbm [resolvable:$true] %s380_s6 }
  0x53   : > { %2058 = dma.hbm_to_vmem [thread:$0]  (!%p2700_p2), %s381_s6, 256, %s383_s3, %s368_s17, %s2484_s10, %s2484_s10, %s2485_s26  }
  0x54   : > { %s396_s8 = sand.u32 1, %s2452_s9  }
  0x55   : > { %s1749_s2 = sshll.u32 %s396_s8, 4  ;;  %s397_s13 = scalar_lea.sflag [#allocation3], %s396_s8 }
  0x56   : > { %s2719_s14 = scalar_lea.vmem [#allocation2], %s1749_s2 }
  0x57   : > { %2399 = dma.done.wait (%p2667_p0), %s397_s13, 256  }
  0x58   : > { %2401 = vsyncadd (%p2667_p0), %s397_s13, 4294967040  ;;  %s407_s7 = scalar_lea.sflag [#allocation8], %s396_s8  ;;  %s2725_s29 = scalar_lea.vmem [#allocation7], %s1749_s2 }
  0x59   : > { %2403 = dma.done.wait (%p2667_p0), %s407_s7, 256  }
  0x5a   : > { %2405 = vsyncadd (%p2667_p0), %s407_s7, 4294967040 }
  0x5b   : > { %2407 = dma.done.wait (%p2594_p1), [#allocation5], 64  }
  0x5c   : > { %2409 = vsyncadd (%p2594_p1), [#allocation5], 4294967232 }
  0x5d   : > { %2411 = dma.done.wait (%p2594_p1), [#allocation6], 16  }
  0x5e   : > { %2413 = vsyncadd (%p2594_p1), [#allocation6], 4294967280 }
  0x5f   : > { %2415 = dma.done.wait (%p2594_p1), [#allocation12], 64  }
  0x60   : > { %2417 = vsyncadd (%p2594_p1), [#allocation12], 4294967232 }
  0x61   : > { %2419 = dma.done.wait (%p2594_p1), [#allocation14], 16  }
  0x62   : > { %2421 = vsyncadd (%p2594_p1), [#allocation14], 4294967280 }
  0x63   : > { %2423 = dma.done.wait (%p2594_p1), [#allocation12], 128  }
  0x64   : > { %2425 = vsyncadd (%p2594_p1), [#allocation12], 4294967168 }
  0x65   : > { %2427 = dma.done.wait (%p2594_p1), [#allocation14], 16  }
  0x66   : > { %2429 = vsyncadd (%p2594_p1), [#allocation14], 4294967280 }
  0x67   : > { %446 = sfence }
  0x68   : > { %s3889_s3 = sand.u32 1, %s2440_s28   ;;  %p1758_p4 = scmp.ne.s32.totalorder %s2460_s11, 0 }
  0x69   : > { %s1757_s10 = sshll.u32 %s3889_s3, 4 }
  0x6a   : > { %s2758_s22 = scalar_lea.vmem [#allocation17], %s1757_s10  ;;  %483 = sbr.rel (%p1758_p4) target bundleno = 114 (0x72), region = 88 }
  0x6b   : > { %3943 = sst [smem:[#allocation42_spill]] %s2758_s22 }
  0x6f   : > { %vm484_vm0 = vcmask 130048   ;;  %v2486_v0 = vmov 0.0  }
  0x70   : > { %485 = vst.msk [vmem:[%s2758_s22] sm:$0xff] %vm484_vm0, %v2486_v0 }
  0x71   : > { %486 = vst.msk [vmem:[%s2758_s22 + $0x8] sm:$0xff] %vm484_vm0, %v2486_v0 }
  0x72 PF: > { %s2763_s20 = sld [smem:[#allocation9]]  ;;  %v1984_v1 = vld [vmem:[%s2719_s14] sm:$0xff]   ;;  %v1999_v4 = vld [vmem:[%s2719_s14 + $0x8] sm:$0xff]   ;;  %vm1375_vm1 = vcmask 130048   ;;  %vm1506_vm2 = vcmask 1041409   ;;  %vm1508_vm3 = vcmask 1042434  }
  0x73   : > { %s2765_s4 = sld [smem:[#allocation9 + $0x80]]  ;;  %v2876_v2 = vunpack.c.l.bf16 %v1984_v1  ;;  %v2878_v3 = vunpack.c.h.bf16 %v1984_v1  ;;  %v2889_v7 = vunpack.c.l.bf16 %v1999_v4  ;;  %v2915_v22 = vunpack.c.h.bf16 %v1999_v4  ;;  %v1992_v40 = vld [vmem:[%s2725_s29] sm:$0xff]   ;;  %v2000_v47 = vld [vmem:[%s2725_s29 + $0x8] sm:$0xff]  }
  0x74   : > { %s2767_s24 = sld [smem:[#allocation9 + $0x100]]  ;;  %v2955_v52 = vunpack.c.l.bf16 %v1992_v40  ;;  %v2957_v53 = vunpack.c.h.bf16 %v1992_v40  ;;  %v2966_v59 = vunpack.c.l.bf16 %v2000_v47  ;;  %v2972_v63 = vunpack.c.h.bf16 %v2000_v47 }
  0x75   : > { %s2769_s21 = sld [smem:[#allocation9 + $0x180]]  ;;  %vm1510_vm4 = vcmask 1043459   ;;  %vm1512_vm5 = vcmask 1044484   ;;  %vm1514_vm6 = vcmask 1045509   ;;  %vm1516_vm7 = vcmask 1046534  }
  0x76   : > { %s2771_s19 = sld [smem:[#allocation10]]  ;;  %vm1518_vm8 = vcmask 1047559  }
  0x77   : > { %s2773_s5 = sld [smem:[#allocation9 + $0x1]] }
  0x78   : > { %s2775_s11 = sld [smem:[#allocation9 + $0x81]]  ;;  %v504_v5 = vstv %s2763_s20 }
  0x79   : > { %s2777_s23 = sld [smem:[#allocation9 + $0x101]]  ;;  %v507_v6 = vstv %s2765_s4  ;;  %v505_v10 = vmul.f32 %v2876_v2, %v504_v5 }
  0x7a   : > { %s2779_s30 = sld [smem:[#allocation9 + $0x181]]  ;;  %v508_v11 = vmul.f32 %v2878_v3, %v507_v6  ;;  %v511_v14 = vstv %s2767_s24 }
  0x7b   : > { %s2781_s26 = sld [smem:[#allocation10 + $0x1]]  ;;  %v512_v24 = vmul.f32 %v2889_v7, %v511_v14  ;;  %v515_v26 = vstv %s2769_s21 }
  0x7c   : > { %3944 = sst [smem:[#allocation43_spill]] %s2771_s19  ;;  %v509_v23 = vadd.f32 %v508_v11, %v505_v10  ;;  %v516_v38 = vmul.f32 %v2915_v22, %v515_v26 }
  0x7d   : > { %s2783_s18 = sld [smem:[#allocation9 + $0x2]]  ;;  %v522_v8 = vstv %s2773_s5 }
  0x7e   : > { %s2785_s6 = sld [smem:[#allocation9 + $0x82]]  ;;  %v525_v9 = vstv %s2775_s11  ;;  %v523_v15 = vmul.f32 %v2876_v2, %v522_v8  ;;  %v513_v37 = vadd.f32 %v512_v24, %v509_v23 }
  0x7f   : > { %s2787_s16 = sld [smem:[#allocation9 + $0x102]]  ;;  %v526_v16 = vmul.f32 %v2878_v3, %v525_v9  ;;  %v529_v19 = vstv %s2777_s23 }
  0x80   : > { %s2789_s17 = sld [smem:[#allocation9 + $0x182]]  ;;  %v530_v30 = vmul.f32 %v2889_v7, %v529_v19  ;;  %v533_v31 = vstv %s2779_s30  ;;  %v517_v54 = vadd.f32 %v516_v38, %v513_v37 }
  0x81   : > { %3945 = sst [smem:[#allocation44_spill]] %s2781_s26  ;;  %v527_v29 = vadd.f32 %v526_v16, %v523_v15  ;;  %v534_v43 = vmul.f32 %v2915_v22, %v533_v31 }
  0x82   : > { %s2791_s8 = sld [smem:[#allocation10 + $0x2]] }
  0x83   : > { %s2793_s2 = sld [smem:[#allocation9 + $0x3]]  ;;  %v540_v12 = vstv %s2783_s18  ;;  %v531_v48 = vadd.f32 %v530_v30, %v527_v29 }
  0x84   : > { %s2795_s13 = sld [smem:[#allocation9 + $0x83]]  ;;  %v543_v13 = vstv %s2785_s6  ;;  %v541_v20 = vmul.f32 %v2876_v2, %v540_v12 }
  0x85   : > { %s2797_s7 = sld [smem:[#allocation9 + $0x103]]  ;;  %v544_v21 = vmul.f32 %v2878_v3, %v543_v13  ;;  %v547_v25 = vstv %s2787_s16  ;;  %v535_v0 = vadd.f32 %v534_v43, %v531_v48 }
  0x86   : > { %s2799_s10 = sld [smem:[#allocation9 + $0x183]]  ;;  %v548_v34 = vmul.f32 %v2889_v7, %v547_v25  ;;  %v551_v39 = vstv %s2789_s17 }
  0x87   : > { %s2801_s3 = sld [smem:[#allocation10 + $0x3]]  ;;  %v545_v33 = vadd.f32 %v544_v21, %v541_v20  ;;  %v552_v50 = vmul.f32 %v2915_v22, %v551_v39 }
  0x88   : > { %3946 = sst [smem:[#allocation45_spill]] %s2791_s8 }
  0x89   : > { %s2803_s0 = sld [smem:[#allocation9 + $0x4]]  ;;  %v558_v17 = vstv %s2793_s2  ;;  %v549_v49 = vadd.f32 %v548_v34, %v545_v33 }
  0x8a   : > { %s2805_s1 = sld [smem:[#allocation9 + $0x84]]  ;;  %v561_v18 = vstv %s2795_s13  ;;  %v559_v27 = vmul.f32 %v2876_v2, %v558_v17 }
  0x8b   : > { %s2807_s9 = sld [smem:[#allocation9 + $0x104]]  ;;  %v562_v28 = vmul.f32 %v2878_v3, %v561_v18  ;;  %v565_v32 = vstv %s2797_s7  ;;  %v553_v1 = vadd.f32 %v552_v50, %v549_v49 }
  0x8c   : > { %s2809_s27 = sld [smem:[#allocation9 + $0x184]]  ;;  %v566_v42 = vmul.f32 %v2889_v7, %v565_v32  ;;  %v569_v44 = vstv %s2799_s10 }
  0x8d   : > { %3947 = sst [smem:[#allocation46_spill]] %s2801_s3  ;;  %v563_v41 = vadd.f32 %v562_v28, %v559_v27  ;;  %v570_v56 = vmul.f32 %v2915_v22, %v569_v44 }
  0x8e   : > { %s2811_s15 = sld [smem:[#allocation10 + $0x4]] }
  0x8f   : > { %s2813_s25 = sld [smem:[#allocation9 + $0x5]]  ;;  %v576_v35 = vstv %s2803_s0  ;;  %v567_v55 = vadd.f32 %v566_v42, %v563_v41 }
  0x90   : > { %s2815_s28 = sld [smem:[#allocation9 + $0x85]]  ;;  %v579_v36 = vstv %s2805_s1  ;;  %v577_v45 = vmul.f32 %v2876_v2, %v576_v35 }
  0x91   : > { %3948 = sst [smem:[#allocation47_spill]] %s2807_s9  ;;  %v580_v46 = vmul.f32 %v2878_v3, %v579_v36  ;;  %v571_v11 = vadd.f32 %v570_v56, %v567_v55 }
  0x92   : > { %3949 = sst [smem:[#allocation48_spill]] %s2809_s27 }
  0x93   : > { %s2817_s22 = sld [smem:[#allocation9 + $0x105]]  ;;  %v581_v61 = vadd.f32 %v580_v46, %v577_v45 }
  0x94   : > { %3950 = sst [smem:[#allocation49_spill]] %s2811_s15 }
  0x95   : > { %3951 = sst [smem:[#allocation50_spill]] %s2813_s25 }
  0x96   : > { %3952 = sst [smem:[#allocation51_spill]] %s2815_s28 }
  0x97   : > { %s2819_s12 = sld [smem:[#allocation9 + $0x185]] }
  0x98   : > { %s2821_s8 = sld [smem:[#allocation10 + $0x5]] }
  0x99   : > { %s2823_s3 = sld [smem:[#allocation9 + $0x6]]  ;;  %v601_v13 = vstv %s2817_s22 }
  0x9a   : > { %s2825_s26 = sld [smem:[#allocation9 + $0x86]]  ;;  %v602_v24 = vmul.f32 %v2889_v7, %v601_v13 }
  0x9b   : > { %s2827_s19 = sld [smem:[#allocation9 + $0x106]] }
  0x9c   : > { %s2829_s9 = sld [smem:[#allocation9 + $0x186]] }
  0x9d   : > { %3953 = sst [smem:[#allocation52_spill]] %s2819_s12 }
  0x9e   : > { %3954 = sst [smem:[#allocation53_spill]] %s2821_s8 }
  0x9f   : > { %3955 = sst [smem:[#allocation54_spill]] %s2823_s3 }
  0xa0   : > { %3956 = sst [smem:[#allocation55_spill]] %s2825_s26 }
  0xa1   : > { %3957 = sst [smem:[#allocation56_spill]] %s2827_s19 }
  0xa2   : > { %3958 = sst [smem:[#allocation57_spill]] %s2829_s9 }
  0xa3   : > { %s2831_s27 = sld [smem:[#allocation10 + $0x6]] }
  0xa4   : > { %s2833_s15 = sld [smem:[#allocation9 + $0x7]] }
  0xa5   : > { %s2835_s25 = sld [smem:[#allocation9 + $0x87]] }
  0xa6   : > { %s2837_s28 = sld [smem:[#allocation9 + $0x107]] }
  0xa7   : > { %s2839_s12 = sld [smem:[#allocation9 + $0x187]] }
  0xa8   : > { %s2841_s8 = sld [smem:[#allocation10 + $0x7]] }
  0xa9   : > { %3959 = sst [smem:[#allocation58_spill]] %s2831_s27 }
  0xaa   : > { %3960 = sst [smem:[#allocation59_spill]] %s2833_s15 }
  0xab   : > { %3961 = sst [smem:[#allocation60_spill]] %s2835_s25 }
  0xac   : > { %3962 = sst [smem:[#allocation61_spill]] %s2837_s28 }
  0xad   : > { %3963 = sst [smem:[#allocation62_spill]] %s2839_s12 }
  0xae   : > { %3964 = sst [smem:[#allocation63_spill]] %s2841_s8 }
  0xaf   : > { %s2843_s3 = sld [smem:[#allocation11]] }
  0xb0   : > { %s2845_s26 = sld [smem:[#allocation11 + $0x80]] }
  0xb1   : > { %s2847_s19 = sld [smem:[#allocation11 + $0x100]] }
  0xb2   : > { %s2849_s9 = sld [smem:[#allocation11 + $0x180]] }
  0xb3   : > { %s2851_s27 = sld [smem:[#allocation13]] }
  0xb4   : > { %s2853_s15 = sld [smem:[#allocation11 + $0x1]] }
  0xb5   : > { %s2855_s28 = sld [smem:[#allocation11 + $0x81]]  ;;  %v648_v16 = vstv %s2843_s3 }
  0xb6   : > { %3965 = sst [smem:[#allocation64_spill]] %s2845_s26  ;;  %v649_v28 = vmul.f32 %v2955_v52, %v648_v16 }
  0xb7   : > { %3966 = sst [smem:[#allocation65_spill]] %s2847_s19 }
  0xb8   : > { %3967 = sst [smem:[#allocation66_spill]] %s2849_s9 }
  0xb9   : > { %3968 = sst [smem:[#allocation67_spill]] %s2851_s27 }
  0xba   : > { %3969 = sst [smem:[#allocation68_spill]] %s2853_s15 }
  0xbb   : > { %3970 = sst [smem:[#allocation69_spill]] %s2855_s28 }
  0xbc   : > { %s2857_s12 = sld [smem:[#allocation11 + $0x101]] }
  0xbd   : > { %s2859_s8 = sld [smem:[#allocation11 + $0x181]] }
  0xbe   : > { %s2861_s25 = sld [smem:[#allocation13 + $0x1]] }
  0xbf   : > { %s2863_s26 = sld [smem:[#allocation11 + $0x2]] }
  0xc0   : > { %s2865_s19 = sld [smem:[#allocation11 + $0x82]] }
  0xc1   : > { %s2867_s9 = sld [smem:[#allocation11 + $0x102]] }
  0xc2   : > { %s2870_s27 = sld [smem:[#allocation11 + $0x182]]  ;;  %v673_v48 = vstv %s2857_s12 }
  0xc3   : > { %3971 = sst [smem:[#allocation70_spill]] %s2859_s8 }
  0xc4   : > { %3972 = sst [smem:[#allocation71_spill]] %s2861_s25 }
  0xc5   : > { %s2872_s15 = sld [smem:[#allocation13 + $0x2]]  ;;  %v684_v37 = vstv %s2863_s26 }
  0xc6   : > { %s2874_s28 = sld [smem:[#allocation11 + $0x3]]  ;;  %v687_v38 = vstv %s2865_s19  ;;  %v685_v49 = vmul.f32 %v2955_v52, %v684_v37 }
  0xc7   : > { %s2881_s25 = sld [smem:[#allocation11 + $0x83]]  ;;  %v688_v50 = vmul.f32 %v2957_v53, %v687_v38  ;;  %v691_v56 = vstv %s2867_s9 }
  0xc8   : > { %3973 = sst [smem:[#allocation72_spill]] %s2870_s27 }
  0xc9   : > { %s2885_s8 = sld [smem:[#allocation11 + $0x103]] }
  0xca   : > { %s2887_s27 = sld [smem:[#allocation11 + $0x183]] }
  0xcb   : > { %3974 = sst [smem:[#allocation73_spill]] %s2872_s15 }
  0xcc   : > { %s2893_s15 = sld [smem:[#allocation13 + $0x3]] }
  0xcd   : > { %s2899_s14 = sld [smem:[#allocation11 + $0x4]] }
  0xce   : > { %s2902_s20 = sld [smem:[#allocation11 + $0x84]] }
  0xcf   : > { %s2908_s4 = sld [smem:[#allocation11 + $0x104]] }
  0xd0   : > { %s2913_s5 = sld [smem:[#allocation11 + $0x184]] }
  0xd1   : > { %s2919_s24 = sld [smem:[#allocation13 + $0x4]] }
  0xd2   : > { %3975 = sst [smem:[#allocation74_spill]] %s2893_s15 }
  0xd3   : > { %s2924_s11 = sld [smem:[#allocation11 + $0x5]] }
  0xd4   : > { %s2929_s23 = sld [smem:[#allocation11 + $0x85]] }
  0xd5   : > { %s2934_s21 = sld [smem:[#allocation11 + $0x105]] }
  0xd6   : > { %s3977_s18 = sld [smem:[#allocation47_spill]] }
  0xd7   : > { %3976 = sst [smem:[#allocation75_spill]] %s2919_s24 }
  0xd8   : > { %s2938_s6 = sld [smem:[#allocation11 + $0x185]] }
  0xd9   : > { %s2942_s30 = sld [smem:[#allocation13 + $0x5]] }
  0xda   : > { %s3979_s0 = sld [smem:[#allocation50_spill]]  ;;  %v741_v37 = vstv %s2929_s23 }
  0xdb   : > { %s3980_s1 = sld [smem:[#allocation51_spill]] }
  0xdc   : > { %s2948_s16 = sld [smem:[#allocation11 + $0x6]]  ;;  %v583_v51 = vstv %s3977_s18 }
  0xdd   : > { %s3981_s17 = sld [smem:[#allocation43_spill]]  ;;  %v584_v62 = vmul.f32 %v2889_v7, %v583_v51 }
  0xde   : > { %s2953_s2 = sld [smem:[#allocation11 + $0x86]] }
  0xdf   : > { %3978 = sst [smem:[#allocation47_spill]] %s2942_s30  ;;  %v585_v14 = vadd.f32 %v584_v62, %v581_v61 }
  0xe0   : > { %s3982_s13 = sld [smem:[#allocation48_spill]]  ;;  %v594_v57 = vstv %s3979_s0 }
  0xe1   : > { %s2959_s7 = sld [smem:[#allocation11 + $0x106]]  ;;  %v597_v58 = vstv %s3980_s1  ;;  %v595_v8 = vmul.f32 %v2876_v2, %v594_v57 }
  0xe2   : > { %s3984_s10 = sld [smem:[#allocation44_spill]]  ;;  %v598_v9 = vmul.f32 %v2878_v3, %v597_v58 }
  0xe3   : > { %s3985_s29 = sld [smem:[#allocation45_spill]]  ;;  %v519_v60 = vstv %s3981_s17 }
  0xe4   : > { %s2964_s30 = sld [smem:[#allocation11 + $0x186]]  ;;  %v2983_v10 = vadd.f32 %v519_v60, %v517_v54  ;;  %v599_v23 = vadd.f32 %v598_v9, %v595_v8  ;;  %v702_v8 = vstv %s2874_s28  ;;  %v705_v9 = vstv %s2881_s25 }
  0xe5   : > { %s3987_s18 = sld [smem:[#allocation46_spill]] }
  0xe6   : > { %s2970_s24 = sld [smem:[#allocation13 + $0x6]]  ;;  %v587_v4 = vstv %s3982_s13  ;;  %v603_v39 = vadd.f32 %v602_v24, %v599_v23  ;;  %v703_v23 = vmul.f32 %v2955_v52, %v702_v8  ;;  %v723_v24 = vstv %s2902_s20 }
  0xe7   : > { %3983 = sst [smem:[#allocation50_spill]] %s2959_s7  ;;  %v588_v15 = vmul.f32 %v2915_v22, %v587_v4 }
  0xe8   : > { %s3989_s15 = sld [smem:[#allocation64_spill]]  ;;  %v537_v5 = vstv %s3984_s10 }
  0xe9   : > { %s2975_s0 = sld [smem:[#allocation11 + $0x7]]  ;;  %v555_v6 = vstv %s3985_s29  ;;  %v2994_v18 = vadd.f32 %v537_v5, %v535_v0  ;;  %v589_v31 = vadd.f32 %v588_v15, %v585_v14  ;;  %v689_v5 = vadd.f32 %v688_v50, %v685_v49 }
  0xea   : > { %3986 = sst [smem:[#allocation51_spill]] %s2964_s30  ;;  %v2996_v19 = vadd.f32 %v555_v6, %v553_v1  ;;  %v674_v1 = vmul.f32 %v2966_v59, %v673_v48  ;;  %v692_v6 = vmul.f32 %v2966_v59, %v691_v56  ;;  %v742_v48 = vmul.f32 %v2957_v53, %v741_v37 }
  0xeb   : > { %s3991_s1 = sld [smem:[#allocation49_spill]]  ;;  %v573_v12 = vstv %s3987_s18  ;;  %v745_v50 = vstv %s2934_s21 }
  0xec   : > { %3988 = sst [smem:[#allocation43_spill]] %s2970_s24  ;;  %v3007_v27 = vadd.f32 %v573_v12, %v571_v11  ;;  %v746_v8 = vmul.f32 %v2966_v59, %v745_v50 }
  0xed   : > { %s3992_s17 = sld [smem:[#allocation52_spill]] }
  0xee   : > { %s2981_s30 = sld [smem:[#allocation11 + $0x87]]  ;;  %v651_v17 = vstv %s3989_s15 }
  0xef   : > { %3990 = sst [smem:[#allocation48_spill]] %s2975_s0  ;;  %v652_v29 = vmul.f32 %v2957_v53, %v651_v17 }
  0xf0   : > { %s3994_s24 = sld [smem:[#allocation54_spill]] }
  0xf1   : > { %s3995_s7 = sld [smem:[#allocation55_spill]]  ;;  %v591_v20 = vstv %s3991_s1  ;;  %v653_v43 = vadd.f32 %v652_v29, %v649_v28  ;;  %v709_v29 = vstv %s2885_s8 }
  0xf2   : > { %s2987_s13 = sld [smem:[#allocation11 + $0x107]]  ;;  %v3041_v51 = vadd.f32 %v591_v20, %v589_v31  ;;  %v720_v20 = vstv %s2899_s14 }
  0xf3   : > { %s3996_s10 = sld [smem:[#allocation65_spill]]  ;;  %v605_v21 = vstv %s3992_s17 }
  0xf4   : > { %3993 = sst [smem:[#allocation44_spill]] %s2981_s30  ;;  %v606_v32 = vmul.f32 %v2915_v22, %v605_v21 }
  0xf5   : > { %s2992_s29 = sld [smem:[#allocation11 + $0x187]] }
  0xf6   : > { %s3997_s30 = sld [smem:[#allocation68_spill]]  ;;  %v612_v25 = vstv %s3994_s24  ;;  %v3047_v57 = vadd.f32 %v606_v32, %v603_v39  ;;  %v710_v39 = vmul.f32 %v2966_v59, %v709_v29 }
  0xf7   : > { %s3998_s0 = sld [smem:[#allocation69_spill]]  ;;  %v615_v26 = vstv %s3995_s7  ;;  %v613_v35 = vmul.f32 %v2876_v2, %v612_v25 }
  0xf8   : > { %s3000_s18 = sld [smem:[#allocation13 + $0x7]]  ;;  %v616_v36 = vmul.f32 %v2878_v3, %v615_v26  ;;  %v693_v26 = vadd.f32 %v692_v6, %v689_v5 }
  0xf9   : > { %s3005_s15 = sld [smem:[#allocation15]]  ;;  %v655_v30 = vstv %s3996_s10 }
  0xfa   : > { %s4000_s3 = sld [smem:[#allocation56_spill]]  ;;  %v656_v42 = vmul.f32 %v2966_v59, %v655_v30  ;;  %v617_v54 = vadd.f32 %v616_v36, %v613_v35  ;;  %v727_v35 = vstv %s2908_s4  ;;  %v738_v36 = vstv %s2924_s11 }
  0xfb   : > { %s4001_s22 = sld [smem:[#allocation57_spill]] }
  0xfc   : > { %s3012_s1 = sld [smem:[#allocation15 + $0x80]]  ;;  %v666_v33 = vstv %s3997_s30  ;;  %v657_v62 = vadd.f32 %v656_v42, %v653_v43  ;;  %v713_v43 = vstv %s2887_s27 }
  0xfd   : > { %s4002_s17 = sld [smem:[#allocation66_spill]]  ;;  %v669_v34 = vstv %s3998_s0  ;;  %v667_v45 = vmul.f32 %v2955_v52, %v666_v33  ;;  %v721_v33 = vmul.f32 %v2955_v52, %v720_v20 }
  0xfe   : > { %3999 = sst [smem:[#allocation45_spill]] %s3000_s18  ;;  %v670_v46 = vmul.f32 %v2957_v53, %v669_v34  ;;  %v724_v34 = vmul.f32 %v2957_v53, %v723_v24  ;;  %v793_v24 = vmax.f32 %v2996_v19, 0.0 }
  0xff   : > { %s3017_s24 = sld [smem:[#allocation15 + $0x100]] }
 0x100   : > { %s4003_s7 = sld [smem:[#allocation53_spill]]  ;;  %v619_v40 = vstv %s4000_s3  ;;  %v671_v0 = vadd.f32 %v670_v46, %v667_v45  ;;  %v728_v45 = vmul.f32 %v2966_v59, %v727_v35  ;;  %v739_v46 = vmul.f32 %v2955_v52, %v738_v36 }
 0x101   : > { %s3023_s18 = sld [smem:[#allocation15 + $0x180]]  ;;  %v623_v41 = vstv %s4001_s22  ;;  %v620_v55 = vmul.f32 %v2889_v7, %v619_v40  ;;  %v725_v49 = vadd.f32 %v724_v34, %v721_v33 }
 0x102   : > { %s3028_s30 = sld [smem:[#allocation15 + $0x200]]  ;;  %v3050_v58 = vmul.f32 %v2915_v22, %v623_v41  ;;  %v675_v21 = vadd.f32 %v674_v1, %v671_v0  ;;  %v791_v1 = vmax.f32 %v2983_v10, 0.0  ;;  %v743_v6 = vadd.f32 %v742_v48, %v739_v46 }
 0x103   : > { %v659_v44 = vstv %s4002_s17  ;;  %s4004_s0 = sld [smem:[#allocation59_spill]]  ;;  %v3065_v11 = vadd.f32 %v620_v55, %v617_v54  ;;  %v756_v54 = vstv %s2948_s16  ;;  %v759_v55 = vstv %s2953_s2 }
 0x104   : > { %s3033_s10 = sld [smem:[#allocation15 + $0x280]]  ;;  %v660_v61 = vmul.f32 %v2972_v63, %v659_v44  ;;  %v749_v10 = vstv %s2938_s6 }
 0x105   : > { %s4006_s19 = sld [smem:[#allocation70_spill]]  ;;  %v750_v29 = vmul.f32 %v2972_v63, %v749_v10 }
 0x106   : > { %v609_v47 = vstv %s4003_s7  ;;  %s3039_s26 = sld [smem:[#allocation15 + $0x300]]  ;;  %v661_v25 = vadd.f32 %v660_v61, %v657_v62  ;;  %v714_v61 = vmul.f32 %v2972_v63, %v713_v43  ;;  %v731_v62 = vstv %s2913_s5 }
 0x107   : > { %s3045_s3 = sld [smem:[#allocation15 + $0x380]] }
 0x108   : > { %s4008_s12 = sld [smem:[#allocation58_spill]] }
 0x109   : > { %v630_v60 = vstv %s4004_s0  ;;  %s4009_s22 = sld [smem:[#allocation72_spill]] }
 0x10a   : > { %4005 = sst [smem:[#allocation46_spill]] %s3033_s10  ;;  %v3069_v13 = vmul.f32 %v2876_v2, %v630_v60  ;;  %v706_v2 = vmul.f32 %v2957_v53, %v705_v9  ;;  %v757_v9 = vmul.f32 %v2955_v52, %v756_v54 }
 0x10b   : > { %s3054_s17 = sld [smem:[#allocation16]]  ;;  %v677_v4 = vstv %s4006_s19 }
 0x10c   : > { %4007 = sst [smem:[#allocation64_spill]] %s3039_s26  ;;  %v678_v17 = vmul.f32 %v2972_v63, %v677_v4  ;;  %v792_v4 = vmax.f32 %v2994_v18, 0.0 }
 0x10d   : > { %s4011_s26 = sld [smem:[#allocation60_spill]] }
 0x10e   : > { %s4012_s10 = sld [smem:[#allocation61_spill]]  ;;  %v627_v12 = vstv %s4008_s12  ;;  %v679_v38 = vadd.f32 %v678_v17, %v675_v21 }
 0x10f   : > { %s3058_s9 = sld [smem:[#allocation15 + $0x1]]  ;;  %v695_v14 = vstv %s4009_s22 }
 0x110   : > { %s3063_s0 = sld [smem:[#allocation15 + $0x81]]  ;;  %v696_v28 = vmul.f32 %v2972_v63, %v695_v14  ;;  %v760_v14 = vmul.f32 %v2957_v53, %v759_v55  ;;  %v610_v55 = vadd.f32 %v609_v47, %v3047_v57 }
 0x111   : > { %4010 = sst [smem:[#allocation49_spill]] %s3054_s17 }
 0x112   : > { %s3072_s17 = sld [smem:[#allocation15 + $0x101]]  ;;  %v697_v42 = vadd.f32 %v696_v28, %v693_v26  ;;  %v747_v28 = vadd.f32 %v746_v8, %v743_v6  ;;  %v796_v8 = vmax.f32 %v610_v55, 0.0 }
 0x113   : > { %v633_v15 = vstv %s4011_s26  ;;  %s4013_s19 = sld [smem:[#allocation67_spill]] }
 0x114   : > { %v637_v16 = vstv %s4012_s10  ;;  %s3078_s28 = sld [smem:[#allocation15 + $0x181]]  ;;  %v3090_v30 = vmul.f32 %v2878_v3, %v633_v15  ;;  %v729_v15 = vadd.f32 %v728_v45, %v725_v49 }
 0x115   : > { %s3083_s25 = sld [smem:[#allocation15 + $0x201]]  ;;  %v3093_v31 = vmul.f32 %v2889_v7, %v637_v16  ;;  %v707_v7 = vadd.f32 %v706_v2, %v703_v23  ;;  %v732_v16 = vmul.f32 %v2972_v63, %v731_v62 }
 0x116   : > { %s4014_s22 = sld [smem:[#allocation62_spill]] }
 0x117   : > { %s3087_s14 = sld [smem:[#allocation15 + $0x281]]  ;;  %v711_v60 = vadd.f32 %v710_v39, %v707_v7  ;;  %v733_v34 = vadd.f32 %v732_v16, %v729_v15  ;;  %v781_v7 = vstv %s2987_s13 }
 0x118   : > { %s4015_s10 = sld [smem:[#allocation71_spill]] }
 0x119   : > { %v663_v32 = vstv %s4013_s19  ;;  %s3097_s20 = sld [smem:[#allocation15 + $0x301]]  ;;  %v715_v18 = vadd.f32 %v714_v61, %v711_v60  ;;  %v625_v61 = vadd.f32 %v3050_v58, %v3065_v11 }
 0x11a   : > { %s4017_s26 = sld [smem:[#allocation73_spill]]  ;;  %v664_v40 = vadd.f32 %v663_v32, %v661_v25  ;;  %v761_v32 = vadd.f32 %v760_v14, %v757_v9 }
 0x11b   : > { %s3103_s8 = sld [smem:[#allocation15 + $0x381]] }
 0x11c   : > { %v641_v3 = vstv %s4014_s22  ;;  %s3107_s19 = sld [smem:[#allocation16 + $0x1]]  ;;  %v799_v5 = vmax.f32 %v664_v40, 0.0  ;;  %v635_v40 = vadd.f32 %v3090_v30, %v3069_v13  ;;  %v785_v30 = vstv %s2992_s29 }
 0x11d   : > { %s3111_s4 = sld [smem:[#allocation15 + $0x2]]  ;;  %v642_v60 = vmul.f32 %v2915_v22, %v641_v3 }
 0x11e   : > { %v681_v41 = vstv %s4015_s10  ;;  %s3117_s11 = sld [smem:[#allocation15 + $0x82]]  ;;  %v3148_v26 = vadd.f32 %v799_v5, %v791_v1  ;;  %v795_v1 = vmax.f32 %v3041_v51, 0.0  ;;  %v827_v5 = vstv %s3023_s18 }
 0x11f   : > { %4016 = sst [smem:[#allocation52_spill]] %s3097_s20  ;;  %v682_v56 = vadd.f32 %v681_v41, %v679_v38  ;;  %v794_v41 = vmax.f32 %v3007_v27, 0.0  ;;  %v782_v27 = vmul.f32 %v2966_v59, %v781_v7 }
 0x120   : > { %v699_v44 = vstv %s4017_s26  ;;  %s3122_s23 = sld [smem:[#allocation15 + $0x102]] }
 0x121   : > { %4018 = sst [smem:[#allocation54_spill]] %s3103_s8  ;;  %v700_v0 = vadd.f32 %v699_v44, %v697_v42  ;;  %v800_v23 = vmax.f32 %v682_v56, 0.0  ;;  %v816_v42 = vstv %s3005_s15  ;;  %v639_v56 = vadd.f32 %v3093_v31, %v635_v40 }
 0x122   : > { %4019 = sst [smem:[#allocation55_spill]] %s3107_s19  ;;  %v817_v50 = vmul.f32 %v816_v42, %v3148_v26  ;;  %v786_v31 = vmul.f32 %v2972_v63, %v785_v30 }
 0x123   : > { %s4020_s27 = sld [smem:[#allocation50_spill]]  ;;  %v801_v25 = vmax.f32 %v700_v0, 0.0  ;;  %v3163_v39 = vadd.f32 %v800_v23, %v792_v4  ;;  %v643_v11 = vadd.f32 %v642_v60, %v639_v56 }
 0x124   : > { %s3126_s10 = sld [smem:[#allocation15 + $0x182]]  ;;  %v887_v7 = vstv %s3117_s11 }
 0x125   : > { %s4021_s26 = sld [smem:[#allocation48_spill]]  ;;  %v3175_v45 = vadd.f32 %v801_v25, %v793_v24 }
 0x126   : > { %s4022_s19 = sld [smem:[#allocation44_spill]]  ;;  %v891_v30 = vstv %s3122_s23 }
 0x127   : > { %s3130_s21 = sld [smem:[#allocation15 + $0x202]] }
 0x128   : > { %s4024_s16 = sld [smem:[#allocation74_spill]] }
 0x129   : > { %s3135_s5 = sld [smem:[#allocation15 + $0x282]]  ;;  %v763_v17 = vstv %s4020_s27 }
 0x12a   : > { %s3140_s2 = sld [smem:[#allocation15 + $0x302]]  ;;  %v764_v33 = vmul.f32 %v2966_v59, %v763_v17  ;;  %v823_v59 = vstv %s3017_s24  ;;  %v850_v17 = vstv %s3058_s9 }
 0x12b   : > { %s4026_s8 = sld [smem:[#allocation51_spill]]  ;;  %v774_v20 = vstv %s4021_s26  ;;  %v824_v58 = vmul.f32 %v823_v59, %v3175_v45 }
 0x12c   : > { %v777_v21 = vstv %s4022_s19  ;;  %s4027_s20 = sld [smem:[#allocation75_spill]]  ;;  %v775_v19 = vmul.f32 %v2955_v52, %v774_v20  ;;  %v819_v52 = vstv %s3012_s1  ;;  %v765_v43 = vadd.f32 %v764_v33, %v761_v32 }
 0x12d   : > { %4023 = sst [smem:[#allocation65_spill]] %s3130_s21  ;;  %v778_v36 = vmul.f32 %v2957_v53, %v777_v21  ;;  %v751_v53 = vadd.f32 %v750_v29, %v747_v28  ;;  %v820_v54 = vmul.f32 %v819_v52, %v3163_v39  ;;  %v831_v21 = vstv %s3028_s30 }
 0x12e   : > { %s3144_s21 = sld [smem:[#allocation15 + $0x382]]  ;;  %v717_v2 = vstv %s4024_s16  ;;  %v851_v28 = vmul.f32 %v850_v17, %v3148_v26 }
 0x12f   : > { %4025 = sst [smem:[#allocation68_spill]] %s3135_s5  ;;  %v718_v37 = vadd.f32 %v717_v2, %v715_v18  ;;  %v779_v13 = vadd.f32 %v778_v36, %v775_v19  ;;  %v821_v4 = vadd.f32 %v820_v54, %v817_v50  ;;  %v853_v18 = vstv %s3063_s0 }
 0x130   : > { %s3150_s5 = sld [smem:[#allocation16 + $0x2]]  ;;  %v854_v29 = vmul.f32 %v853_v18, %v3163_v39 }
 0x131   : > { %s3154_s6 = sld [smem:[#allocation15 + $0x3]]  ;;  %v767_v35 = vstv %s4026_s8  ;;  %v802_v49 = vmax.f32 %v718_v37, 0.0  ;;  %v783_v57 = vadd.f32 %v782_v27, %v779_v13  ;;  %v825_v16 = vadd.f32 %v824_v58, %v821_v4 }
 0x132   : > { %s3159_s19 = sld [smem:[#allocation15 + $0x83]]  ;;  %v735_v38 = vstv %s4027_s20  ;;  %v768_v44 = vmul.f32 %v2972_v63, %v767_v35  ;;  %v628_v63 = vadd.f32 %v627_v12, %v625_v61  ;;  %v857_v35 = vstv %s3072_s17 }
 0x133   : > { %s4029_s27 = sld [smem:[#allocation47_spill]]  ;;  %v736_v46 = vadd.f32 %v735_v38, %v733_v34  ;;  %v3207_v3 = vadd.f32 %v802_v49, %v794_v41  ;;  %v787_v14 = vadd.f32 %v786_v31, %v783_v57  ;;  %v884_v38 = vstv %s3111_s4 }
 0x134   : > { %s3165_s26 = sld [smem:[#allocation15 + $0x103]]  ;;  %v769_v0 = vadd.f32 %v768_v44, %v765_v43  ;;  %v797_v23 = vmax.f32 %v628_v63, 0.0  ;;  %v855_v40 = vadd.f32 %v854_v29, %v851_v28  ;;  %v858_v41 = vmul.f32 %v857_v35, %v3175_v45 }
 0x135   : > { %s3172_s8 = sld [smem:[#allocation15 + $0x183]]  ;;  %v803_v22 = vmax.f32 %v736_v46, 0.0  ;;  %v828_v10 = vmul.f32 %v827_v5, %v3207_v3  ;;  %v861_v46 = vstv %s3078_s28  ;;  %v888_v13 = vmul.f32 %v887_v7, %v3163_v39 }
 0x136   : > { %4028 = sst [smem:[#allocation69_spill]] %s3150_s5  ;;  %v865_v27 = vstv %s3083_s25  ;;  %v859_v55 = vadd.f32 %v858_v41, %v855_v40  ;;  %v862_v56 = vmul.f32 %v861_v46, %v3207_v3  ;;  %v892_v31 = vmul.f32 %v891_v30, %v3175_v45 }
 0x137   : > { %s3177_s13 = sld [smem:[#allocation15 + $0x203]]  ;;  %v3220_v15 = vadd.f32 %v803_v22, %v795_v1  ;;  %v829_v33 = vadd.f32 %v828_v10, %v825_v16  ;;  %v918_v42 = vstv %s3154_s6  ;;  %v843_v1 = vstv %s3045_s3 }
 0x138   : > { %s3181_s15 = sld [smem:[#allocation15 + $0x283]]  ;;  %v921_v52 = vstv %s3159_s19  ;;  %v919_v49 = vmul.f32 %v918_v42, %v3148_v26  ;;  %v869_v22 = vstv %s3087_s14  ;;  %v895_v4 = vstv %s3126_s10 }
 0x139   : > { %v753_v48 = vstv %s4029_s27  ;;  %s4030_s1 = sld [smem:[#allocation43_spill]]  ;;  %v832_v34 = vmul.f32 %v831_v21, %v3220_v15  ;;  %v922_v50 = vmul.f32 %v921_v52, %v3163_v39  ;;  %v896_v18 = vmul.f32 %v895_v4, %v3207_v3 }
 0x13a   : > { %s3186_s20 = sld [smem:[#allocation15 + $0x303]]  ;;  %v754_v62 = vadd.f32 %v753_v48, %v751_v53  ;;  %v885_v48 = vmul.f32 %v884_v38, %v3148_v26  ;;  %v925_v60 = vstv %s3165_s26 }
 0x13b   : > { %s3196_s16 = sld [smem:[#allocation15 + $0x383]]  ;;  %v833_v43 = vadd.f32 %v832_v34, %v829_v33  ;;  %v923_v58 = vadd.f32 %v922_v50, %v919_v49  ;;  %v929_v5 = vstv %s3172_s8 }
 0x13c   : > { %s4032_s29 = sld [smem:[#allocation63_spill]]  ;;  %v804_v9 = vmax.f32 %v754_v62, 0.0  ;;  %v889_v57 = vadd.f32 %v888_v13, %v885_v48 }
 0x13d   : > { %s3201_s7 = sld [smem:[#allocation16 + $0x3]] }
 0x13e   : > { %s3205_s24 = sld [smem:[#allocation15 + $0x4]]  ;;  %v3233_v24 = vadd.f32 %v804_v9, %v796_v8  ;;  %v893_v17 = vadd.f32 %v892_v31, %v889_v57 }
 0x13f   : > { %v771_v47 = vstv %s4030_s1  ;;  %s3210_s22 = sld [smem:[#allocation15 + $0x84]] }
 0x140   : > { %s4034_s27 = sld [smem:[#allocation45_spill]]  ;;  %v772_v6 = vadd.f32 %v771_v47, %v769_v0  ;;  %v866_v47 = vmul.f32 %v865_v27, %v3220_v15  ;;  %v870_v16 = vmul.f32 %v869_v22, %v3233_v24 }
 0x141   : > { %4031 = sst [smem:[#allocation56_spill]] %s3196_s16 }
 0x142   : > { %v645_v51 = vstv %s4032_s29  ;;  %s3214_s1 = sld [smem:[#allocation15 + $0x104]]  ;;  %v805_v2 = vmax.f32 %v772_v6, 0.0 }
 0x143   : > { %4033 = sst [smem:[#allocation57_spill]] %s3201_s7  ;;  %v646_v12 = vadd.f32 %v645_v51, %v643_v11  ;;  %v926_v11 = vmul.f32 %v925_v60, %v3175_v45  ;;  %v863_v51 = vadd.f32 %v862_v56, %v859_v55 }
 0x144   : > { %s3218_s7 = sld [smem:[#allocation15 + $0x184]]  ;;  %v3248_v36 = vadd.f32 %v805_v2, %v797_v23  ;;  %v952_v62 = vstv %s3205_s24  ;;  %v930_v23 = vmul.f32 %v929_v5, %v3207_v3 }
 0x145   : > { %s4035_s5 = sld [smem:[#allocation46_spill]]  ;;  %v798_v19 = vmax.f32 %v646_v12, 0.0  ;;  %v955_v0 = vstv %s3210_s22  ;;  %v953_v63 = vmul.f32 %v952_v62, %v3148_v26  ;;  %v927_v21 = vadd.f32 %v926_v11, %v923_v58 }
 0x146   : > { %s3222_s16 = sld [smem:[#allocation15 + $0x204]]  ;;  %v789_v20 = vstv %s4034_s27  ;;  %v956_v6 = vmul.f32 %v955_v0, %v3163_v39  ;;  %v867_v2 = vadd.f32 %v866_v47, %v863_v51  ;;  %v911_v11 = vstv %s3144_s21 }
 0x147   : > { %s3227_s18 = sld [smem:[#allocation15 + $0x284]]  ;;  %v790_v32 = vadd.f32 %v789_v20, %v787_v14  ;;  %v931_v42 = vadd.f32 %v930_v23, %v927_v21 }
 0x148   : > { %s3231_s12 = sld [smem:[#allocation15 + $0x304]]  ;;  %v959_v14 = vstv %s3214_s1  ;;  %v957_v28 = vadd.f32 %v956_v6, %v953_v63 }
 0x149   : > { %s3235_s29 = sld [smem:[#allocation15 + $0x384]]  ;;  %v806_v53 = vmax.f32 %v790_v32, 0.0  ;;  %v960_v29 = vmul.f32 %v959_v14, %v3175_v45 }
 0x14a   : > { %s3240_s9 = sld [smem:[#allocation16 + $0x4]]  ;;  %v963_v35 = vstv %s3218_s7 }
 0x14b   : > { %v835_v25 = vstv %s4035_s5  ;;  %s4037_s30 = sld [smem:[#allocation64_spill]]  ;;  %v3279_v59 = vadd.f32 %v806_v53, %v798_v19  ;;  %v897_v19 = vadd.f32 %v896_v18, %v893_v17  ;;  %v871_v53 = vadd.f32 %v870_v16, %v867_v2 }
 0x14c   : > { %s3244_s0 = sld [smem:[#allocation15 + $0x5]]  ;;  %v836_v37 = vmul.f32 %v835_v25, %v3233_v24  ;;  %v933_v25 = vstv %s3177_s13  ;;  %v964_v46 = vmul.f32 %v963_v35, %v3207_v3  ;;  %v967_v13 = vstv %s3222_s16 }
 0x14d   : > { %s3246_s27 = sld [smem:[#allocation15 + $0x85]]  ;;  %v844_v9 = vmul.f32 %v843_v1, %v3279_v59  ;;  %v934_v52 = vmul.f32 %v933_v25, %v3220_v15  ;;  %v941_v1 = vstv %s3186_s20  ;;  %v968_v57 = vmul.f32 %v967_v13, %v3220_v15 }
 0x14e   : > { %s3253_s5 = sld [smem:[#allocation15 + $0x105]]  ;;  %v837_v61 = vadd.f32 %v836_v37, %v833_v43  ;;  %v937_v43 = vstv %s3181_s15  ;;  %v971_v22 = vstv %s3227_s18  ;;  %v912_v2 = vmul.f32 %v911_v11, %v3279_v59 }
 0x14f   : > { %s3258_s17 = sld [smem:[#allocation15 + $0x185]]  ;;  %v935_v56 = vadd.f32 %v934_v52, %v931_v42  ;;  %v938_v60 = vmul.f32 %v937_v43, %v3233_v24  ;;  %v972_v18 = vmul.f32 %v971_v22, %v3233_v24 }
 0x150   : > { %4036 = sst [smem:[#allocation66_spill]] %s3240_s9 }
 0x151   : > { %v839_v44 = vstv %s4037_s30  ;;  %s3262_s9 = sld [smem:[#allocation15 + $0x205]] }
 0x152   : > { %s3266_s4 = sld [smem:[#allocation15 + $0x285]]  ;;  %v840_v54 = vmul.f32 %v839_v44, %v3248_v36  ;;  %v986_v38 = vstv %s3244_s0  ;;  %v961_v44 = vadd.f32 %v960_v29, %v957_v28 }
 0x153   : > { %s3272_s11 = sld [smem:[#allocation15 + $0x305]]  ;;  %v989_v7 = vstv %s3246_s27  ;;  %v987_v27 = vmul.f32 %v986_v38, %v3148_v26 }
 0x154   : > { %s3277_s28 = sld [smem:[#allocation15 + $0x385]]  ;;  %v841_v8 = vadd.f32 %v840_v54, %v837_v61  ;;  %v990_v30 = vmul.f32 %v989_v7, %v3163_v39  ;;  %v907_v54 = vstv %s3140_s2  ;;  %v993_v55 = vstv %s3253_s5 }
 0x155   : > { %s3283_s25 = sld [smem:[#allocation16 + $0x5]]  ;;  %v965_v47 = vadd.f32 %v964_v46, %v961_v44  ;;  %v908_v31 = vmul.f32 %v907_v54, %v3248_v36  ;;  %v994_v58 = vmul.f32 %v993_v55, %v3175_v45  ;;  %v997_v51 = vstv %s3258_s17 }
 0x156   : > { %s3288_s23 = sld [smem:[#allocation15 + $0x6]]  ;;  %v845_v32 = vadd.f32 %v844_v9, %v841_v8  ;;  %v991_v4 = vadd.f32 %v990_v30, %v987_v27  ;;  %v939_v8 = vadd.f32 %v938_v60, %v935_v56  ;;  %v942_v9 = vmul.f32 %v941_v1, %v3248_v36 }
 0x157   : > { %s4038_s6 = sld [smem:[#allocation52_spill]]  ;;  %v969_v17 = vadd.f32 %v968_v57, %v965_v47  ;;  %v998_v23 = vmul.f32 %v997_v51, %v3207_v3  ;;  %v1001_v25 = vstv %s3262_s9 }
 0x158   : > { %s4039_s19 = sld [smem:[#allocation54_spill]]  ;;  %v995_v21 = vadd.f32 %v994_v58, %v991_v4  ;;  %v1002_v42 = vmul.f32 %v1001_v25, %v3220_v15  ;;  %v1005_v52 = vstv %s3266_s4 }
 0x159   : > { %s3293_s26 = sld [smem:[#allocation15 + $0x86]]  ;;  %v973_v38 = vadd.f32 %v972_v18, %v969_v17  ;;  %v1006_v56 = vmul.f32 %v1005_v52, %v3233_v24  ;;  %v1009_v60 = vstv %s3272_s11 }
 0x15a   : > { %s4040_s24 = sld [smem:[#allocation65_spill]] }
 0x15b   : > { %s3298_s3 = sld [smem:[#allocation15 + $0x106]] }
 0x15c   : > { %s3302_s14 = sld [smem:[#allocation15 + $0x186]]  ;;  %v1020_v61 = vstv %s3288_s23 }
 0x15d   : > { %s4041_s10 = sld [smem:[#allocation49_spill]]  ;;  %v873_v10 = vstv %s4038_s6  ;;  %v1021_v5 = vmul.f32 %v1020_v61, %v3148_v26 }
 0x15e   : > { %s3307_s8 = sld [smem:[#allocation15 + $0x206]]  ;;  %v877_v12 = vstv %s4039_s19  ;;  %v874_v34 = vmul.f32 %v873_v10, %v3248_v36 }
 0x15f   : > { %s3312_s22 = sld [smem:[#allocation15 + $0x286]]  ;;  %v878_v40 = vmul.f32 %v877_v12, %v3279_v59  ;;  %v1023_v62 = vstv %s3293_s26 }
 0x160   : > { %v899_v20 = vstv %s4040_s24  ;;  %s4042_s1 = sld [smem:[#allocation68_spill]]  ;;  %v875_v0 = vadd.f32 %v874_v34, %v871_v53  ;;  %v1024_v63 = vmul.f32 %v1023_v62, %v3163_v39 }
 0x161   : > { %s3316_s30 = sld [smem:[#allocation15 + $0x306]]  ;;  %v900_v37 = vmul.f32 %v899_v20, %v3220_v15  ;;  %v1027_v14 = vstv %s3298_s3  ;;  %v975_v20 = vstv %s3231_s12 }
 0x162   : > { %s3321_s6 = sld [smem:[#allocation15 + $0x386]]  ;;  %v879_v16 = vadd.f32 %v878_v40, %v875_v0  ;;  %v1025_v28 = vadd.f32 %v1024_v63, %v1021_v5  ;;  %v1028_v29 = vmul.f32 %v1027_v14, %v3175_v45  ;;  %v1031_v35 = vstv %s3302_s14 }
 0x163   : > { %v847_v33 = vstv %s4041_s10  ;;  %s4043_s19 = sld [smem:[#allocation55_spill]]  ;;  %v901_v49 = vadd.f32 %v900_v37, %v897_v19  ;;  %v976_v7 = vmul.f32 %v975_v20, %v3248_v36  ;;  %v979_v40 = vstv %s3235_s29 }
 0x164   : > { %s3326_s13 = sld [smem:[#allocation16 + $0x6]]  ;;  %v3376_v12 = vadd.f32 %v847_v33, %v845_v32  ;;  %v943_v32 = vadd.f32 %v942_v9, %v939_v8  ;;  %v1029_v53 = vadd.f32 %v1028_v29, %v1025_v28  ;;  %v1032_v43 = vmul.f32 %v1031_v35, %v3207_v3 }
 0x165   : > { %s3331_s7 = sld [smem:[#allocation15 + $0x7]]  ;;  %v1035_v30 = vstv %s3307_s8  ;;  %v1039_v22 = vstv %s3312_s22  ;;  %v1013_v8 = vstv %s3277_s28 }
 0x166   : > { %v903_v41 = vstv %s4042_s1  ;;  %s3335_s0 = sld [smem:[#allocation15 + $0x87]]  ;;  %v1033_v1 = vadd.f32 %v1032_v43, %v1029_v53  ;;  %v1036_v47 = vmul.f32 %v1035_v30, %v3220_v15  ;;  %v1040_v17 = vmul.f32 %v1039_v22, %v3233_v24 }
 0x167   : > { %s3341_s27 = sld [smem:[#allocation15 + $0x107]]  ;;  %v904_v50 = vmul.f32 %v903_v41, %v3233_v24  ;;  %v999_v41 = vadd.f32 %v998_v23, %v995_v21  ;;  %v1043_v20 = vstv %s3316_s30  ;;  %v1014_v25 = vmul.f32 %v1013_v8, %v3279_v59 }
 0x168   : > { %s3346_s15 = sld [smem:[#allocation15 + $0x187]]  ;;  %v1047_v52 = vstv %s3321_s6 }
 0x169   : > { %v881_v48 = vstv %s4043_s19  ;;  %s3351_s16 = sld [smem:[#allocation15 + $0x207]]  ;;  %v905_v6 = vadd.f32 %v904_v50, %v901_v49  ;;  %v977_v49 = vadd.f32 %v976_v7, %v973_v38  ;;  %v980_v50 = vmul.f32 %v979_v40, %v3279_v59 }
 0x16a   : > { %s3355_s24 = sld [smem:[#allocation15 + $0x287]]  ;;  %v3391_v19 = vadd.f32 %v881_v48, %v879_v16  ;;  %v1003_v0 = vadd.f32 %v1002_v42, %v999_v41  ;;  %v1044_v40 = vmul.f32 %v1043_v20, %v3248_v36  ;;  %v1017_v42 = vstv %s3283_s25 }
 0x16b   : > { %s4044_s2 = sld [smem:[#allocation56_spill]]  ;;  %v909_v34 = vadd.f32 %v908_v31, %v905_v6  ;;  %v1054_v44 = vstv %s3331_s7  ;;  %v981_v51 = vadd.f32 %v980_v50, %v977_v49  ;;  %v1010_v6 = vmul.f32 %v1009_v60, %v3248_v36 }
 0x16c   : > { %s3360_s5 = sld [smem:[#allocation15 + $0x307]]  ;;  %v1057_v46 = vstv %s3335_s0  ;;  %v1055_v61 = vmul.f32 %v1054_v44, %v3148_v26  ;;  %v1007_v16 = vadd.f32 %v1006_v56, %v1003_v0  ;;  %v1048_v56 = vmul.f32 %v1047_v52, %v3279_v59 }
 0x16d   : > { %s3366_s20 = sld [smem:[#allocation15 + $0x387]]  ;;  %v913_v48 = vadd.f32 %v912_v2, %v909_v34  ;;  %v1058_v62 = vmul.f32 %v1057_v46, %v3163_v39  ;;  %v1061_v57 = vstv %s3341_s27  ;;  %v1051_v60 = vstv %s3326_s13 }
 0x16e   : > { %s3370_s18 = sld [smem:[#allocation16 + $0x7]]  ;;  %v1062_v14 = vmul.f32 %v1061_v57, %v3175_v45  ;;  %v1065_v18 = vstv %s3346_s15  ;;  %v1011_v38 = vadd.f32 %v1010_v6, %v1007_v16 }
 0x16f   : > { %s3374_s21 = sld [smem:[#allocation15 + $0x8]]  ;;  %v1059_v9 = vadd.f32 %v1058_v62, %v1055_v61  ;;  %v1069_v41 = vstv %s3351_s16 }
 0x170   : > { %s4045_s17 = sld [smem:[#allocation69_spill]]  ;;  %v1073_v44 = vstv %s3355_s24  ;;  %v1070_v49 = vmul.f32 %v1069_v41, %v3220_v15 }
 0x171   : > { %v945_v10 = vstv %s4044_s2  ;;  %s3380_s23 = sld [smem:[#allocation15 + $0x88]]  ;;  %v1074_v61 = vmul.f32 %v1073_v44, %v3233_v24 }
 0x172   : > { %s3385_s26 = sld [smem:[#allocation15 + $0x108]]  ;;  %v946_v33 = vmul.f32 %v945_v10, %v3279_v59  ;;  %v1037_v10 = vadd.f32 %v1036_v47, %v1033_v1 }
 0x173   : > { %s3389_s12 = sld [smem:[#allocation15 + $0x188]] }
 0x174   : > { %s4046_s3 = sld [smem:[#allocation57_spill]]  ;;  %v947_v13 = vadd.f32 %v946_v33, %v943_v32  ;;  %v1063_v32 = vadd.f32 %v1062_v14, %v1059_v9  ;;  %v1066_v33 = vmul.f32 %v1065_v18, %v3207_v3  ;;  %v1041_v7 = vadd.f32 %v1040_v17, %v1037_v10 }
 0x175   : > { %s3395_s9 = sld [smem:[#allocation15 + $0x208]]  ;;  %v1088_v54 = vstv %s3374_s21 }
 0x176   : > { %v915_v37 = vstv %s4045_s17  ;;  %s3400_s14 = sld [smem:[#allocation15 + $0x288]]  ;;  %v1089_v4 = vmul.f32 %v1088_v54, %v3148_v26  ;;  %v1067_v30 = vadd.f32 %v1066_v33, %v1063_v32  ;;  %v1015_v54 = vadd.f32 %v1014_v25, %v1011_v38 }
 0x177   : > { %s3405_s10 = sld [smem:[#allocation15 + $0x308]]  ;;  %v1091_v55 = vstv %s3380_s23  ;;  %v3426_v31 = vadd.f32 %v915_v37, %v913_v48 }
 0x178   : > { %s3409_s29 = sld [smem:[#allocation15 + $0x388]]  ;;  %v1092_v58 = vmul.f32 %v1091_v55, %v3163_v39  ;;  %v1095_v63 = vstv %s3385_s26  ;;  %v1045_v55 = vadd.f32 %v1044_v40, %v1041_v7  ;;  %v3523_v32 = vadd.f32 %v1017_v42, %v1015_v54 }
 0x179   : > { %s3414_s4 = sld [smem:[#allocation16 + $0x8]]  ;;  %v1096_v23 = vmul.f32 %v1095_v63, %v3175_v45  ;;  %v1099_v28 = vstv %s3389_s12 }
 0x17a   : > { %v949_v27 = vstv %s4046_s3  ;;  %s4047_s1 = sld [smem:[#allocation66_spill]]  ;;  %v1093_v21 = vadd.f32 %v1092_v58, %v1089_v4  ;;  %v1100_v43 = vmul.f32 %v1099_v28, %v3207_v3  ;;  %v1071_v58 = vadd.f32 %v1070_v49, %v1067_v30 }
 0x17b   : > { %s3420_s8 = sld [smem:[#allocation15 + $0x9]]  ;;  %v3433_v11 = vadd.f32 %v949_v27, %v947_v13  ;;  %v1103_v46 = vstv %s3395_s9  ;;  %v1049_v38 = vadd.f32 %v1048_v56, %v1045_v55 }
 0x17c   : > { %s3424_s19 = sld [smem:[#allocation15 + $0x89]]  ;;  %v1097_v53 = vadd.f32 %v1096_v23, %v1093_v21  ;;  %v1104_v0 = vmul.f32 %v1103_v46, %v3220_v15  ;;  %v1107_v1 = vstv %s3400_s14  ;;  %v1075_v25 = vadd.f32 %v1074_v61, %v1071_v58 }
 0x17d   : > { %s3431_s11 = sld [smem:[#allocation15 + $0x109]]  ;;  %v1108_v6 = vmul.f32 %v1107_v1, %v3233_v24  ;;  %v1111_v8 = vstv %s3405_s10 }
 0x17e   : > { %s3437_s7 = sld [smem:[#allocation15 + $0x189]]  ;;  %v1101_v62 = vadd.f32 %v1100_v43, %v1097_v53  ;;  %v1115_v33 = vstv %s3409_s29  ;;  %v1112_v40 = vmul.f32 %v1111_v8, %v3248_v36 }
 0x17f   : > { %s3442_s22 = sld [smem:[#allocation15 + $0x209]]  ;;  %v1116_v46 = vmul.f32 %v1115_v33, %v3279_v59 }
 0x180   : > { %v983_v5 = vstv %s4047_s1  ;;  %s3446_s0 = sld [smem:[#allocation15 + $0x289]]  ;;  %v1105_v16 = vadd.f32 %v1104_v0, %v1101_v62 }
 0x181   : > { %v1122_v2 = vstv %s3420_s8  ;;  %s3451_s28 = sld [smem:[#allocation15 + $0x309]]  ;;  %v3478_v27 = vadd.f32 %v983_v5, %v981_v51  ;;  %v1077_v51 = vstv %s3360_s5 }
 0x182   : > { %v1123_v29 = vmul.f32 %v1122_v2, %v3148_v26  ;;  %v1125_v34 = vstv %s3424_s19  ;;  %s3457_s27 = sld [smem:[#allocation15 + $0x389]]  ;;  %v1078_v28 = vmul.f32 %v1077_v51, %v3248_v36  ;;  %v1109_v7 = vadd.f32 %v1108_v6, %v1105_v16 }
 0x183   : > { %v1126_v35 = vmul.f32 %v1125_v34, %v3163_v39  ;;  %v1129_v37 = vstv %s3431_s11  ;;  %s3462_s30 = sld [smem:[#allocation16 + $0x9]] }
 0x184   : > { %s3466_s15 = sld [smem:[#allocation15 + $0xa]]  ;;  %v1130_v13 = vmul.f32 %v1129_v37, %v3175_v45  ;;  %v1133_v50 = vstv %s3437_s7  ;;  %v1079_v44 = vadd.f32 %v1078_v28, %v1075_v25  ;;  %v1113_v55 = vadd.f32 %v1112_v40, %v1109_v7 }
 0x185   : > { %s3471_s2 = sld [smem:[#allocation15 + $0x8a]]  ;;  %v1127_v48 = vadd.f32 %v1126_v35, %v1123_v29  ;;  %v1134_v57 = vmul.f32 %v1133_v50, %v3207_v3  ;;  %v1137_v22 = vstv %s3442_s22  ;;  %v1081_v29 = vstv %s3366_s20 }
 0x186   : > { %s3476_s21 = sld [smem:[#allocation15 + $0x10a]]  ;;  %v1138_v10 = vmul.f32 %v1137_v22, %v3220_v15  ;;  %v1141_v34 = vstv %s3446_s0  ;;  %v1082_v52 = vmul.f32 %v1081_v29, %v3279_v59 }
 0x187   : > { %s3482_s25 = sld [smem:[#allocation15 + $0x18a]]  ;;  %v1131_v47 = vadd.f32 %v1130_v13, %v1127_v48  ;;  %v1142_v53 = vmul.f32 %v1141_v34, %v3233_v24  ;;  %v1145_v48 = vstv %s3451_s28 }
 0x188   : > { %s3486_s6 = sld [smem:[#allocation15 + $0x20a]]  ;;  %v1146_v1 = vmul.f32 %v1145_v48, %v3248_v36  ;;  %v1149_v22 = vstv %s3457_s27 }
 0x189   : > { %s3491_s16 = sld [smem:[#allocation15 + $0x28a]]  ;;  %v1135_v20 = vadd.f32 %v1134_v57, %v1131_v47 }
 0x18a   : > { %v1156_v4 = vstv %s3466_s15  ;;  %s3496_s24 = sld [smem:[#allocation15 + $0x30a]] }
 0x18b   : > { %v1157_v5 = vmul.f32 %v1156_v4, %v3148_v26  ;;  %v1159_v63 = vstv %s3471_s2  ;;  %s3501_s17 = sld [smem:[#allocation15 + $0x38a]]  ;;  %v1139_v42 = vadd.f32 %v1138_v10, %v1135_v20  ;;  %v1150_v20 = vmul.f32 %v1149_v22, %v3279_v59 }
 0x18c   : > { %v1160_v9 = vmul.f32 %v1159_v63, %v3163_v39  ;;  %v1163_v14 = vstv %s3476_s21  ;;  %s3507_s23 = sld [smem:[#allocation16 + $0xa]] }
 0x18d   : > { %v1164_v17 = vmul.f32 %v1163_v14, %v3175_v45  ;;  %v1167_v18 = vstv %s3482_s25  ;;  %s3512_s5 = sld [smem:[#allocation15 + $0xb]]  ;;  %v1143_v0 = vadd.f32 %v1142_v53, %v1139_v42 }
 0x18e   : > { %v1161_v21 = vadd.f32 %v1160_v9, %v1157_v5  ;;  %v1168_v23 = vmul.f32 %v1167_v18, %v3207_v3  ;;  %v1171_v2 = vstv %s3486_s6  ;;  %s3516_s26 = sld [smem:[#allocation15 + $0x8b]]  ;;  %v1085_v5 = vstv %s3370_s18 }
 0x18f   : > { %s3521_s12 = sld [smem:[#allocation15 + $0x10b]]  ;;  %v1172_v37 = vmul.f32 %v1171_v2, %v3220_v15  ;;  %v1175_v41 = vstv %s3491_s16  ;;  %v3569_v9 = vadd.f32 %v1051_v60, %v1049_v38  ;;  %v1147_v18 = vadd.f32 %v1146_v1, %v1143_v0 }
 0x190   : > { %v1165_v35 = vadd.f32 %v1164_v17, %v1161_v21  ;;  %s3527_s3 = sld [smem:[#allocation15 + $0x18b]]  ;;  %v1176_v49 = vmul.f32 %v1175_v41, %v3233_v24  ;;  %v1179_v56 = vstv %s3496_s24  ;;  %v1083_v17 = vadd.f32 %v1082_v52, %v1079_v44 }
 0x191   : > { %s3531_s20 = sld [smem:[#allocation15 + $0x20b]]  ;;  %v1180_v6 = vmul.f32 %v1179_v56, %v3248_v36  ;;  %v1183_v14 = vstv %s3501_s17  ;;  %v1119_v60 = vstv %s3414_s4  ;;  %v1151_v40 = vadd.f32 %v1150_v20, %v1147_v18 }
 0x192   : > { %v1169_v43 = vadd.f32 %v1168_v23, %v1165_v35  ;;  %s3535_s9 = sld [smem:[#allocation15 + $0x28b]]  ;;  %v1117_v23 = vadd.f32 %v1116_v46, %v1113_v55  ;;  %v1184_v29 = vmul.f32 %v1183_v14, %v3279_v59  ;;  %v1153_v41 = vstv %s3462_s30 }
 0x193   : > { %v1190_v13 = vstv %s3512_s5  ;;  %s3540_s14 = sld [smem:[#allocation15 + $0x30b]]  ;;  %v1359_v20 = vmax.f32 %v3376_v12, 0.0 }
 0x194   : > { %v1173_v30 = vadd.f32 %v1172_v37, %v1169_v43  ;;  %v1191_v50 = vmul.f32 %v1190_v13, %v3148_v26  ;;  %v1193_v54 = vstv %s3516_s26  ;;  %s3545_s10 = sld [smem:[#allocation15 + $0x38b]] }
 0x195   : > { %v1194_v61 = vmul.f32 %v1193_v54, %v3163_v39  ;;  %v1197_v62 = vstv %s3521_s12  ;;  %s3550_s29 = sld [smem:[#allocation16 + $0xb]]  ;;  %v1187_v54 = vstv %s3507_s23 }
 0x196   : > { %v1198_v47 = vmul.f32 %v1197_v62, %v3175_v45  ;;  %v1201_v57 = vstv %s3527_s3  ;;  %s3555_s1 = sld [smem:[#allocation15 + $0xc]]  ;;  %v1177_v63 = vadd.f32 %v1176_v49, %v1173_v30 }
 0x197   : > { %v1195_v4 = vadd.f32 %v1194_v61, %v1191_v50  ;;  %v1202_v58 = vmul.f32 %v1201_v57, %v3207_v3  ;;  %v1205_v51 = vstv %s3531_s20  ;;  %s3560_s8 = sld [smem:[#allocation15 + $0x8c]]  ;;  %v3607_v50 = vadd.f32 %v1085_v5, %v1083_v17 }
 0x198   : > { %v1209_v8 = vstv %s3535_s9  ;;  %s3565_s19 = sld [smem:[#allocation15 + $0x10c]]  ;;  %v1206_v10 = vmul.f32 %v1205_v51, %v3220_v15  ;;  %v1181_v28 = vadd.f32 %v1180_v6, %v1177_v63  ;;  %v3620_v57 = vadd.f32 %v1153_v41, %v1151_v40 }
 0x199   : > { %v1199_v16 = vadd.f32 %v1198_v47, %v1195_v4  ;;  %s3573_s11 = sld [smem:[#allocation15 + $0x18c]]  ;;  %v1213_v21 = vstv %s3540_s14  ;;  %v1210_v25 = vmul.f32 %v1209_v8, %v3233_v24  ;;  %v3618_v47 = vadd.f32 %v1119_v60, %v1117_v23 }
 0x19a   : > { %s3577_s18 = sld [smem:[#allocation15 + $0x20c]]  ;;  %v1217_v34 = vstv %s3545_s10  ;;  %v1214_v37 = vmul.f32 %v1213_v21, %v3248_v36  ;;  %v1185_v48 = vadd.f32 %v1184_v29, %v1181_v28  ;;  %v1360_v60 = vmax.f32 %v3391_v19, 0.0 }
 0x19b   : > { %v1203_v2 = vadd.f32 %v1202_v58, %v1199_v16  ;;  %s3581_s13 = sld [smem:[#allocation15 + $0x28c]]  ;;  %v1218_v43 = vmul.f32 %v1217_v34, %v3279_v59  ;;  %v1221_v61 = vstv %s3550_s29  ;;  %v1362_v34 = vmax.f32 %v3433_v11, 0.0 }
 0x19c   : > { %v1224_v33 = vstv %s3555_s1  ;;  %s3586_s7 = sld [smem:[#allocation15 + $0x30c]]  ;;  %v3625_v58 = vadd.f32 %v1187_v54, %v1185_v48  ;;  %v1367_v19 = vmax.f32 %v3618_v47, 0.0  ;;  %v1364_v40 = vmax.f32 %v3523_v32, 0.0 }
 0x19d   : > { %v1207_v35 = vadd.f32 %v1206_v10, %v1203_v2  ;;  %v1225_v38 = vmul.f32 %v1224_v33, %v3148_v26  ;;  %v1227_v7 = vstv %s3560_s8  ;;  %s3591_s4 = sld [smem:[#allocation15 + $0x38c]]  ;;  %v1361_v2 = vmax.f32 %v3426_v31, 0.0 }
 0x19e   : > { %v1228_v52 = vmul.f32 %v1227_v7, %v3163_v39  ;;  %v1231_v42 = vstv %s3565_s19  ;;  %s3596_s22 = sld [smem:[#allocation16 + $0xc]]  ;;  %v1363_v7 = vmax.f32 %v3478_v27, 0.0  ;;  %v1366_v48 = vmax.f32 %v3607_v50, 0.0 }
 0x19f   : > { %v1211_v53 = vadd.f32 %v1210_v25, %v1207_v35  ;;  %v1232_v44 = vmul.f32 %v1231_v42, %v3175_v45  ;;  %v1235_v46 = vstv %s3573_s11  ;;  %s3601_s0 = sld [smem:[#allocation15 + $0xd]]  ;;  %v1368_v54 = vmax.f32 %v3620_v57, 0.0 }
 0x1a0   : > { %v1229_v13 = vadd.f32 %v1228_v52, %v1225_v38  ;;  %v1236_v30 = vmul.f32 %v1235_v46, %v3207_v3  ;;  %v1239_v49 = vstv %s3577_s18  ;;  %s3605_s28 = sld [smem:[#allocation15 + $0x8d]]  ;;  %v1425_v27 = vsel %vm1375_vm1, %v1366_v48, -inf }
 0x1a1   : > { %v1215_v55 = vadd.f32 %v1214_v37, %v1211_v53  ;;  %v1243_v56 = vstv %s3581_s13  ;;  %s3611_s27 = sld [smem:[#allocation15 + $0x10d]]  ;;  %v1240_v0 = vmul.f32 %v1239_v49, %v3220_v15  ;;  %v1365_v53 = vmax.f32 %v3569_v9, 0.0 }
 0x1a2   : > { %v1233_v62 = vadd.f32 %v1232_v44, %v1229_v13  ;;  %v1247_v1 = vstv %s3586_s7  ;;  %s3616_s30 = sld [smem:[#allocation15 + $0x18d]]  ;;  %v1244_v5 = vmul.f32 %v1243_v56, %v3233_v24 }
 0x1a3   : > { %v1219_v22 = vadd.f32 %v1218_v43, %v1215_v55  ;;  %v1251_v4 = vstv %s3591_s4  ;;  %s3623_s15 = sld [smem:[#allocation15 + $0x20d]]  ;;  %v1248_v63 = vmul.f32 %v1247_v1, %v3248_v36 }
 0x1a4   : > { %v1237_v51 = vadd.f32 %v1236_v30, %v1233_v62  ;;  %s3629_s2 = sld [smem:[#allocation15 + $0x28d]]  ;;  %v1252_v8 = vmul.f32 %v1251_v4, %v3279_v59  ;;  %v1255_v14 = vstv %s3596_s22 }
 0x1a5   : > { %v3631_v6 = vadd.f32 %v1221_v61, %v1219_v22  ;;  %v1258_v16 = vstv %s3601_s0  ;;  %s3636_s21 = sld [smem:[#allocation15 + $0x30d]]  ;;  %v1369_v61 = vmax.f32 %v3625_v58, 0.0  ;;  %v1376_v22 = vsel %vm1375_vm1, %v1359_v20, -inf }
 0x1a6   : > { %v1241_v10 = vadd.f32 %v1240_v0, %v1237_v51  ;;  %v1259_v17 = vmul.f32 %v1258_v16, %v3148_v26  ;;  %v1261_v18 = vstv %s3605_s28  ;;  %s3640_s25 = sld [smem:[#allocation15 + $0x38d]] }
 0x1a7   : > { %v1262_v21 = vmul.f32 %v1261_v18, %v3163_v39  ;;  %v1265_v23 = vstv %s3611_s27  ;;  %s3645_s6 = sld [smem:[#allocation16 + $0xd]]  ;;  %v1446_v57 = vsel %vm1375_vm1, %v1369_v61, -inf }
 0x1a8   : > { %v1245_v25 = vadd.f32 %v1244_v5, %v1241_v10  ;;  %v1266_v28 = vmul.f32 %v1265_v23, %v3175_v45  ;;  %v1269_v29 = vstv %s3616_s30  ;;  %s3651_s16 = sld [smem:[#allocation15 + $0xe]] }
 0x1a9   : > { %v1263_v12 = vadd.f32 %v1262_v21, %v1259_v17  ;;  %v1270_v33 = vmul.f32 %v1269_v29, %v3207_v3  ;;  %v1273_v35 = vstv %s3623_s15  ;;  %s3656_s24 = sld [smem:[#allocation15 + $0x8e]]  ;;  %v1383_v17 = vsel %vm1375_vm1, %v1360_v60, -inf }
 0x1aa   : > { %v1249_v37 = vadd.f32 %v1248_v63, %v1245_v25  ;;  %v1277_v38 = vstv %s3629_s2  ;;  %s3660_s17 = sld [smem:[#allocation15 + $0x10e]]  ;;  %v1274_v52 = vmul.f32 %v1273_v35, %v3220_v15  ;;  %v1377_v63 = vrot.slane %v1376_v22, 4 }
 0x1ab   : > { %v1267_v41 = vadd.f32 %v1266_v28, %v1263_v12  ;;  %v1281_v42 = vstv %s3636_s21  ;;  %s3666_s23 = sld [smem:[#allocation15 + $0x18e]]  ;;  %v1278_v44 = vmul.f32 %v1277_v38, %v3233_v24  ;;  %v1370_v28 = vmax.f32 %v3631_v6, 0.0 }
 0x1ac   : > { %v1253_v43 = vadd.f32 %v1252_v8, %v1249_v37  ;;  %v1285_v46 = vstv %s3640_s25  ;;  %s3671_s5 = sld [smem:[#allocation15 + $0x20e]]  ;;  %v1282_v30 = vmul.f32 %v1281_v42, %v3248_v36  ;;  %v1378_v21 = vmax.f32 %v1376_v22, %v1377_v63 }
 0x1ad   : > { %v1271_v13 = vadd.f32 %v1270_v33, %v1267_v41  ;;  %v1286_v49 = vmul.f32 %v1285_v46, %v3279_v59  ;;  %s3676_s26 = sld [smem:[#allocation15 + $0x28e]]  ;;  %v1289_v55 = vstv %s3645_s6  ;;  %v1384_v29 = vrot.slane %v1383_v17, 4 }
 0x1ae   : > { %v1292_v56 = vstv %s3651_s16  ;;  %s3681_s12 = sld [smem:[#allocation15 + $0x30e]]  ;;  %v3689_v4 = vadd.f32 %v1255_v14, %v1253_v43  ;;  %v1379_v35 = vrot.slane %v1378_v21, 2 }
 0x1af   : > { %v1275_v62 = vadd.f32 %v1274_v52, %v1271_v13  ;;  %v1293_v0 = vmul.f32 %v1292_v56, %v3148_v26  ;;  %v1295_v1 = vstv %s3656_s24  ;;  %s3686_s3 = sld [smem:[#allocation15 + $0x38e]]  ;;  %v1385_v52 = vmax.f32 %v1383_v17, %v1384_v29 }
 0x1b0   : > { %v1296_v51 = vmul.f32 %v1295_v1, %v3163_v39  ;;  %v1299_v5 = vstv %s3660_s17  ;;  %s3693_s20 = sld [smem:[#allocation16 + $0xe]]  ;;  %v1371_v41 = vmax.f32 %v3689_v4, 0.0  ;;  %v1380_v46 = vmax.f32 %v1378_v21, %v1379_v35 }
 0x1b1   : > { %v1279_v8 = vadd.f32 %v1278_v44, %v1275_v62  ;;  %v1300_v16 = vmul.f32 %v1299_v5, %v3175_v45  ;;  %v1303_v10 = vstv %s3666_s23  ;;  %s3697_s9 = sld [smem:[#allocation15 + $0xf]]  ;;  %v1386_v56 = vrot.slane %v1385_v52, 2 }
 0x1b2   : > { %v1297_v18 = vadd.f32 %v1296_v51, %v1293_v0  ;;  %v1304_v14 = vmul.f32 %v1303_v10, %v3207_v3  ;;  %v1307_v20 = vstv %s3671_s5  ;;  %s3702_s14 = sld [smem:[#allocation15 + $0x8f]]  ;;  %v1381_v5 = vrot.slane %v1380_v46, 1 }
 0x1b3   : > { %v1283_v23 = vadd.f32 %v1282_v30, %v1279_v8  ;;  %v1311_v25 = vstv %s3676_s26  ;;  %s3705_s10 = sld [smem:[#allocation15 + $0x10f]]  ;;  %v1308_v33 = vmul.f32 %v1307_v20, %v3220_v15  ;;  %v1387_v63 = vmax.f32 %v1385_v52, %v1386_v56 }
 0x1b4   : > { %v1301_v12 = vadd.f32 %v1300_v16, %v1297_v18  ;;  %v1315_v60 = vstv %s3681_s12  ;;  %s3710_s29 = sld [smem:[#allocation15 + $0x18f]]  ;;  %v1312_v43 = vmul.f32 %v1311_v25, %v3233_v24  ;;  %v1397_v52 = vsel %vm1375_vm1, %v1362_v34, -inf }
 0x1b5   : > { %v1287_v37 = vadd.f32 %v1286_v49, %v1283_v23  ;;  %v1319_v38 = vstv %s3686_s3  ;;  %s3713_s1 = sld [smem:[#allocation15 + $0x20f]]  ;;  %v1316_v44 = vmul.f32 %v1315_v60, %v3248_v36 }
 0x1b6   : > { %v1305_v42 = vadd.f32 %v1304_v14, %v1301_v12  ;;  %s3718_s8 = sld [smem:[#allocation15 + $0x28f]]  ;;  %v1320_v30 = vmul.f32 %v1319_v38, %v3279_v59  ;;  %v1323_v16 = vstv %s3693_s20  ;;  %v1388_v14 = vrot.slane %v1387_v63, 1 }
 0x1b7   : > { %v3720_v13 = vadd.f32 %v1289_v55, %v1287_v37  ;;  %v1326_v49 = vstv %s3697_s9  ;;  %s3724_s19 = sld [smem:[#allocation15 + $0x30f]]  ;;  %v1390_v55 = vsel %vm1375_vm1, %v1361_v2, -inf  ;;  %v3746_v12 = vmax.f32 %v1380_v46, %v1381_v5 }
 0x1b8   : > { %v1309_v62 = vadd.f32 %v1308_v33, %v1305_v42  ;;  %v1327_v0 = vmul.f32 %v1326_v49, %v3148_v26  ;;  %v1329_v1 = vstv %s3702_s14  ;;  %s3728_s11 = sld [smem:[#allocation15 + $0x38f]]  ;;  %v1391_v21 = vrot.slane %v1390_v55, 4 }
 0x1b9   : > { %v1330_v22 = vmul.f32 %v1329_v1, %v3163_v39  ;;  %v1333_v51 = vstv %s3705_s10  ;;  %s3738_s18 = sld [smem:[#allocation16 + $0xf]]  ;;  %v1372_v39 = vmax.f32 %v3720_v13, 0.0  ;;  %v3750_v60 = vmax.f32 %v1387_v63, %v1388_v14 }
 0x1ba   : > { %v1313_v8 = vadd.f32 %v1312_v43, %v1309_v62  ;;  %v1334_v10 = vmul.f32 %v1333_v51, %v3175_v45  ;;  %v1337_v26 = vstv %s3710_s29  ;;  %v1398_v43 = vrot.slane %v1397_v52, 4  ;;  %s4048_s13 = sld [smem:[#allocation32_spill]] }
 0x1bb   : > { %v1331_v17 = vadd.f32 %v1330_v22, %v1327_v0  ;;  %v1338_v31 = vmul.f32 %v1337_v26, %v3207_v3  ;;  %v1341_v18 = vstv %s3713_s1  ;;  %v1392_v3 = vmax.f32 %v1390_v55, %v1391_v21  ;;  %s4049_s7 = sld [smem:[#allocation42_spill]] }
 0x1bc   : > { %v1317_v2 = vadd.f32 %v1316_v44, %v1313_v8  ;;  %v1345_v20 = vstv %s3718_s8  ;;  %v1342_v25 = vmul.f32 %v1341_v18, %v3220_v15  ;;  %v1399_v49 = vmax.f32 %v1397_v52, %v1398_v43  ;;  %s4050_s28 = sld [smem:[#allocation84_spill]] }
 0x1bd   : > { %v1335_v23 = vadd.f32 %v1334_v10, %v1331_v17  ;;  %v1349_v29 = vstv %s3724_s19  ;;  %v1346_v45 = vmul.f32 %v1345_v20, %v3233_v24  ;;  %v1393_v42 = vrot.slane %v1392_v3, 2  ;;  %s4052_s30 = sld [smem:[#allocation28_spill]] }
 0x1be   : > { %v1353_v33 = vstv %s3728_s11  ;;  %v1321_v35 = vadd.f32 %v1320_v30, %v1317_v2  ;;  %v1350_v38 = vmul.f32 %v1349_v29, %v3248_v36  ;;  %v1404_v24 = vsel %vm1375_vm1, %v1363_v7, -inf }
 0x1bf   : > { %v1339_v37 = vadd.f32 %v1338_v31, %v1335_v23  ;;  %v1354_v15 = vmul.f32 %v1353_v33, %v3279_v59  ;;  %v1405_v46 = vrot.slane %v1404_v24, 4  ;;  %v1411_v30 = vsel %vm1375_vm1, %v1364_v40, -inf }
 0x1c0   : > { %v1418_v36 = vsel %vm1375_vm1, %v1365_v53, -inf  ;;  %v1357_v11 = vstv %s3738_s18  ;;  %v1394_v34 = vmax.f32 %v1392_v3, %v1393_v42  ;;  %v1412_v59 = vrot.slane %v1411_v30, 4  ;;  %s1982_s4 = sshll.u32 %s4048_s13, 4 }
 0x1c1   : > { %v1343_v44 = vadd.f32 %v1342_v25, %v1339_v37  ;;  %v1406_v62 = vmax.f32 %v1404_v24, %v1405_v46  ;;  %v1419_v0 = vrot.slane %v1418_v36, 4  ;;  %v1324_v7 = vadd.f32 %v1323_v16, %v1321_v35  ;;  %s1547_s15 = sshll.u32 %s4049_s7, 4  ;;  %s1548_s15 = int_to_ptr.vmem [resolvable:$true] %s1547_s15 }
 0x1c2   : > { %v1400_v1 = vrot.slane %v1399_v49, 2  ;;  %v1413_v32 = vmax.f32 %v1411_v30, %v1412_v59  ;;  %v1426_v55 = vrot.slane %v1425_v27, 4  ;;  %v1432_v53 = vsel %vm1375_vm1, %v1367_v19, -inf  ;;  %s4051_s2 = smov %s4050_s28  ;;  %s1546_s27 = scalar_lea.hbm %s4050_s28, %s1982_s4 }
 0x1c3   : > { %v1347_v56 = vadd.f32 %v1346_v45, %v1343_v44  ;;  %v1407_v22 = vrot.slane %v1406_v62, 2  ;;  %v1420_v9 = vmax.f32 %v1418_v36, %v1419_v0  ;;  %v1395_v51 = vrot.slane %v1394_v34, 1  ;;  %s1549_s25 = sshll.u32 %s1546_s27, 4  ;;  %s4054_s6 = sand.u32 1, %s4052_s30   ;;  %s1550_s25 = int_to_ptr.hbm [resolvable:$true] %s1549_s25 }
 0x1c4   : > { %v1401_v5 = vmax.f32 %v1399_v49, %v1400_v1  ;;  %v1414_v63 = vrot.slane %v1413_v32, 2  ;;  %v1427_v8 = vmax.f32 %v1425_v27, %v1426_v55  ;;  %v1433_v17 = vrot.slane %v1432_v53, 4  ;;  %s1534_s16 = scalar_lea.sflag [#allocation4], %s4054_s6  ;;  %s2340_s24 = sshra.s32 %s1550_s25, 4  ;;  %s2341_s24 = int_to_ptr.hbm [resolvable:$true] %s2340_s24 }
 0x1c5   : > { %v1351_v40 = vadd.f32 %v1350_v38, %v1347_v56  ;;  %v1408_v26 = vmax.f32 %v1406_v62, %v1407_v22  ;;  %v1421_v50 = vrot.slane %v1420_v9, 2  ;;  %v1439_v18 = vsel %vm1375_vm1, %v1368_v54, -inf  ;;  %s2342_s17 = scalar_lea.hbm %s2341_s24, 16  ;;  %s2346_s26 = scalar_lea.hbm %s4051_s2, 64 }
 0x1c6   : > { %v1402_v48 = vrot.slane %v1401_v5, 1  ;;  %v1415_v16 = vmax.f32 %v1413_v32, %v1414_v63  ;;  %v1428_v31 = vrot.slane %v1427_v8, 2  ;;  %v1434_v20 = vmax.f32 %v1432_v53, %v1433_v17  ;;  %p2343_p1 = scmp.ne.s32.totalorder %s2341_s24, %s2342_s17  ;;  %p2347_p13 = scmp.lt.s32.totalorder %s2341_s24, %s4051_s2 }
 0x1c7   : > { %v1355_v10 = vadd.f32 %v1354_v15, %v1351_v40  ;;  %v1409_v2 = vrot.slane %v1408_v26, 1  ;;  %v1422_v47 = vmax.f32 %v1420_v9, %v1421_v50  ;;  %v1373_v19 = vmax.f32 %v1324_v7, 0.0  ;;  %p2348_p0 = scmp.lt.s32.totalorder %s2346_s26, %s2342_s17 }
 0x1c8   : > { %v1416_v21 = vrot.slane %v1415_v16, 1  ;;  %v1429_v23 = vmax.f32 %v1427_v8, %v1428_v31  ;;  %v1440_v25 = vrot.slane %v1439_v18, 4  ;;  %v1396_v29 = vmax.f32 %v1394_v34, %v1395_v51  ;;  %p2344_p10 = pnand %p2343_p1, %p2673_p3 }
 0x1c9   : > { %v1358_v14 = vadd.f32 %v1357_v11, %v1355_v10  ;;  %v1403_v45 = vmax.f32 %v1401_v5, %v1402_v48  ;;  %v1423_v33 = vrot.slane %v1422_v47, 1  ;;  %v1435_v3 = vrot.slane %v1434_v20, 2  ;;  %p2349_p5 = por %p2348_p0, %p2347_p13 }
 0x1ca   : > { %v3776_v37 = vmax.f32 %v1408_v26, %v1409_v2  ;;  %v1441_v38 = vmax.f32 %v1439_v18, %v1440_v25  ;;  %v3781_v54 = vmax.f32 %v1415_v16, %v1416_v21  ;;  %v1430_v52 = vrot.slane %v1429_v23, 1  ;;  %p2345_p12 = pneg %p2344_p10 }
 0x1cb   : > { %v1374_v35 = vmax.f32 %v1358_v14, 0.0  ;;  %v1447_v15 = vrot.slane %v1446_v57, 4  ;;  %v1453_v42 = vsel %vm1375_vm1, %v1370_v28, -inf  ;;  %v1436_v43 = vmax.f32 %v1434_v20, %v1435_v3 }
 0x1cc   : > { %v1442_v24 = vrot.slane %v1441_v38, 2  ;;  %v1454_v44 = vrot.slane %v1453_v42, 4  ;;  %v1460_v46 = vsel %vm1375_vm1, %v1371_v41, -inf  ;;  %v1424_v30 = vmax.f32 %v1422_v47, %v1423_v33  ;;  %p2350_p6 = pnand %p2349_p5, %p2345_p12 }
 0x1cd   : > { %v1448_v36 = vmax.f32 %v1446_v57, %v1447_v15  ;;  %v1461_v58 = vrot.slane %v1460_v46, 4  ;;  %v1467_v61 = vsel %vm1375_vm1, %v1372_v39, -inf  ;;  %v1474_v6 = vsel %vm1375_vm1, %v1373_v19, -inf }
 0x1ce   : > { %v1443_v11 = vmax.f32 %v1441_v38, %v1442_v24  ;;  %v1455_v34 = vmax.f32 %v1453_v42, %v1454_v44  ;;  %v1468_v49 = vrot.slane %v1467_v61, 4  ;;  %v1431_v28 = vmax.f32 %v1429_v23, %v1430_v52  ;;  %v1488_v23 = vld [vmem:[%s4049_s7] sm:$0xff]  ;;  %v1489_v52 = vld [vmem:[%s4049_s7 + $0x8] sm:$0xff] }
 0x1cf   : > { %v1449_v59 = vrot.slane %v1448_v36, 2  ;;  %v1462_v56 = vmax.f32 %v1460_v46, %v1461_v58  ;;  %v1475_v62 = vrot.slane %v1474_v6, 4  ;;  %v1437_v0 = vrot.slane %v1436_v43, 1 }
 0x1d0   : > { %v1456_v4 = vrot.slane %v1455_v34, 2  ;;  %v1469_v27 = vmax.f32 %v1467_v61, %v1468_v49  ;;  %v1481_v41 = vsel %vm1375_vm1, %v1374_v35, -inf  ;;  %v1444_v55 = vrot.slane %v1443_v11, 1 }
 0x1d1   : > { %v1450_v7 = vmax.f32 %v1448_v36, %v1449_v59  ;;  %v1463_v1 = vrot.slane %v1462_v56, 2  ;;  %v1476_v32 = vmax.f32 %v1474_v6, %v1475_v62  ;;  %v1482_v13 = vrot.slane %v1481_v41, 4 }
 0x1d2   : > { %v1457_v39 = vmax.f32 %v1455_v34, %v1456_v4  ;;  %v1470_v40 = vrot.slane %v1469_v27, 2  ;;  %v1507_v8 = vsel %vm1506_vm2, %v3750_v60, %v3746_v12  ;;  %v1438_v10 = vmax.f32 %v1436_v43, %v1437_v0 }
 0x1d3   : > { %v1451_v22 = vrot.slane %v1450_v7, 1  ;;  %v1464_v9 = vmax.f32 %v1462_v56, %v1463_v1  ;;  %v1477_v53 = vrot.slane %v1476_v32, 2  ;;  %v1483_v51 = vmax.f32 %v1481_v41, %v1482_v13 }
 0x1d4   : > { %v1458_v5 = vrot.slane %v1457_v39, 1  ;;  %v1471_v63 = vmax.f32 %v1469_v27, %v1470_v40  ;;  %v1445_v48 = vmax.f32 %v1443_v11, %v1444_v55  ;;  %v1509_v31 = vsel %vm1508_vm3, %v1396_v29, %v1507_v8 }
 0x1d5   : > { %v1465_v26 = vrot.slane %v1464_v9, 1  ;;  %v1478_v50 = vmax.f32 %v1476_v32, %v1477_v53  ;;  %v1484_v17 = vrot.slane %v1483_v51, 2  ;;  %v1452_v18 = vmax.f32 %v1450_v7, %v1451_v22 }
 0x1d6   : > { %v1472_v16 = vrot.slane %v1471_v63, 1  ;;  %v1511_v47 = vsel %vm1510_vm4, %v1403_v45, %v1509_v31  ;;  %v1459_v20 = vmax.f32 %v1457_v39, %v1458_v5  ;;  %v1520_v29 = vsel %vm1506_vm2, %v1445_v48, %v1438_v10 }
 0x1d7   : > { %v1479_v14 = vrot.slane %v1478_v50, 1  ;;  %v1485_v2 = vmax.f32 %v1483_v51, %v1484_v17  ;;  %v1466_v12 = vmax.f32 %v1464_v9, %v1465_v26  ;;  %v1513_v19 = vsel %vm1512_vm5, %v3776_v37, %v1511_v47 }
 0x1d8   : > { %v1473_v21 = vmax.f32 %v1471_v63, %v1472_v16  ;;  %v1515_v25 = vsel %vm1514_vm6, %v3781_v54, %v1513_v19  ;;  %v1521_v3 = vsel %vm1508_vm3, %v1452_v18, %v1520_v29 }
 0x1d9   : > { %v1486_v60 = vrot.slane %v1485_v2, 1  ;;  %v1480_v45 = vmax.f32 %v1478_v50, %v1479_v14  ;;  %v1517_v33 = vsel %vm1516_vm7, %v1424_v30, %v1515_v25  ;;  %v1522_v38 = vsel %vm1510_vm4, %v1459_v20, %v1521_v3 }
 0x1da   : > { %v1519_v37 = vsel %vm1518_vm8, %v1431_v28, %v1517_v33  ;;  %v1523_v57 = vsel %vm1512_vm5, %v1466_v12, %v1522_v38 }
 0x1db   : > { %v1487_v35 = vmax.f32 %v1485_v2, %v1486_v60  ;;  %v1529_v54 = vadd.f32 %v1519_v37, %v1488_v23  ;;  %v1524_v15 = vsel %vm1514_vm6, %v1473_v21, %v1523_v57 }
 0x1dc   : > { %v1525_v42 = vsel %vm1516_vm7, %v1480_v45, %v1524_v15 }
 0x1dd   : > { %1531 = vst.msk [vmem:[%s4049_s7] sm:$0xff] %vm1375_vm1, %v1529_v54  ;;  %v1526_v43 = vsel %vm1518_vm8, %v1487_v35, %v1525_v42 }
 0x1de   : > { %v1530_v24 = vadd.f32 %v1526_v43, %v1489_v52 }
 0x1e0   : > { %1532 = vst.msk [vmem:[%s4049_s7 + $0x8] sm:$0xff] %vm1375_vm1, %v1530_v24 }
 0x1e1   : > { %2353 = shalt.err (!%p2350_p6)
}
 0x1e2   : > { %s2487_s20 = smov 128   ;;  %s2488_s9 = smov 8  }
 0x1e3   : > { %2031 = dma.vmem_to_hbm [thread:$0]  (%p2673_p3), %s1548_s15, 256, %s1550_s25, %s1534_s16, %s2487_s20, %s2487_s20, %s2488_s9  }
 0x1e4 PF: > { %s4055_s14 = sld [smem:[#allocation35_spill]] }
 0x1e5   : > { %s4056_s10 = sld [smem:[#allocation27_spill]] }
 0x1ea   : > { %p2076_p7 = scmp.ge.s32.totalorder %s4055_s14, 2 }
 0x1eb   : > { %s1564_s1 = sand.u32 1, %s4056_s10  }
 0x1ec   : > { %p2060_p8 = pnand %p2076_p7, %p2687_p9  ;;  %s1565_s8 = scalar_lea.sflag [#allocation4], %s1564_s1 }
 0x1ee   : > { %p2061_p11 = pneg %p2060_p8 }
 0x1f0   : > { %2431 = dma.done.wait (%p2061_p11), %s1565_s8, 256  }
 0x1f1   : > { %2433 = vsyncadd (%p2061_p11), %s1565_s8, 4294967040  ;;  %s31_s15 = sadd.s32 1, %s4055_s14   ;;  %s4058_s27 = sld [smem:[#allocation28_spill]] }
 0x1f2   : > { %p28_p2 = scmp.ge.s32.totalorder %s31_s15, 14   ;;  %s4059_s28 = sld [smem:[#allocation29_spill]] }
 0x1f3   : > { %s4060_s29 = sld [smem:[#allocation39_spill]] }
 0x1f4   : > { %s4061_s30 = sld [smem:[#allocation30_spill]] }
 0x1f5   : > { %s4062_s9 = sld [smem:[#allocation31_spill]] }
 0x1f6   : > { %s4063_s10 = sld [smem:[#allocation40_spill]]  ;;  %30 = sbr.rel (!%p28_p2) target bundleno = 25 (0x19), region = 140 }
 0x1f7   : > { %s4064_s11 = sld [smem:[#allocation33_spill]] }
 0x1f8   : > { %s4065_s12 = sld [smem:[#allocation34_spill]] }
 0x1f9   : > { %s4066_s13 = sld [smem:[#allocation36_spill]] }
 0x1fa   : > { %s4067_s14 = sld [smem:[#allocation37_spill]] }
 0x1fb   :  { %1571 = vsyncpa [#allocation3], 1 }
 0x1fc   :  { %1573 = vsyncpa [#allocation3 + $0x1], 1 }
 0x1fd   :  { %1574 = vsyncpa [#allocation8], 1 }
 0x1fe   :  { %1576 = vsyncpa [#allocation8 + $0x1], 1 }
 0x1ff   :  { %1577 = vsyncpa [#allocation4], 1 }
 0x200   :  { %1579 = vsyncpa [#allocation4 + $0x1], 1 }
 0x201   :  { %1580 = vsyncpa [#allocation5], 1 }
 0x202   :  { %1582 = vsyncpa [#allocation5 + $0x1], 1 }
 0x203   :  { %1583 = vsyncpa [#allocation12], 1 }
 0x204   :  { %1584 = vsyncpa [#allocation6], 1 }
 0x205   :  { %1586 = vsyncpa [#allocation6 + $0x1], 1 }
 0x206   :  { %1587 = vsyncpa [#allocation14], 1 }

</bundles_post_ra>
